<compile_context>
chip_gen: v7x
topology: tpu7x:2x2x1
jax: 0.10.0
libtpu: 0.0.40
codegen_flags: <defaults>
</compile_context>

<pallas_src>
import functools
import math

import jax
import jax.numpy as jnp
from jax.experimental import pallas as pl
from jax.experimental.pallas import tpu as pltpu

# Keep both the Pallas path and the pure-JAX reference at full f32 matmul precision.
jax.config.update("jax_default_matmul_precision", "highest")

_LN_EPS = 1e-5


def _cdiv(a, b):
    return (a + b - 1) // b


def _round_up(n, m):
    return _cdiv(n, m) * m


# ---------------------------------------------------------------------------
# Exact (erf) GELU, built from ops that lower cleanly in Mosaic.
# ---------------------------------------------------------------------------
def _erf_approx(x):
    """Abramowitz & Stegun 7.1.26 rational erf approximation (|err| < 1.5e-7)."""
    p = 0.3275911
    a1, a2, a3, a4, a5 = 0.254829592, -0.284496736, 1.421413741, -1.453152027, 1.061405429
    ax = jnp.abs(x)
    t = 1.0 / (1.0 + p * ax)
    poly = ((((a5 * t + a4) * t + a3) * t + a2) * t + a1) * t
    y = 1.0 - poly * jnp.exp(-ax * ax)
    return jnp.where(x >= 0, y, -y)


def _gelu_exact(x):
    # torch.nn.GELU() default: 0.5 * x * (1 + erf(x / sqrt(2)))
    return 0.5 * x * (1.0 + _erf_approx(x * (1.0 / math.sqrt(2.0))))


# ---------------------------------------------------------------------------
# Fused MixerBlock kernel:
#   o = y + tokmix(LN1(y)) + chmix(LN2(y + tokmix(LN1(y))))
# ---------------------------------------------------------------------------
def _mixer_block_kernel(y_ref, ln1g_ref, ln1b_ref, tw1_ref, tb1_ref, tw2_ref, tb2_ref,
                        ln2g_ref, ln2b_ref, cw1_ref, cb1_ref, cw2_ref, cb2_ref,
                        o_ref, *, h_true):
    y = y_ref[...]                               # [bb, S, Hp]  (f32)
    bb, s_len, hp = y.shape
    tok = tw1_ref.shape[0]

    if h_true == hp:
        lane_mask = None
        inv_h = 1.0 / hp
    else:
        lane = jax.lax.broadcasted_iota(jnp.int32, (1, 1, hp), 2)
        lane_mask = (lane < h_true).astype(jnp.float32)
        inv_h = 1.0 / h_true

    def layernorm(x, g_ref, b_ref):
        # torch LayerNorm semantics: biased variance, eps=1e-5, affine.
        if lane_mask is None:
            mean = jnp.sum(x, axis=-1, keepdims=True) * inv_h
            d = x - mean
        else:
            mean = jnp.sum(x * lane_mask, axis=-1, keepdims=True) * inv_h
            d = (x - mean) * lane_mask          # padded lanes -> 0 (gamma/beta padded 0 too)
        var = jnp.sum(d * d, axis=-1, keepdims=True) * inv_h
        return d * jax.lax.rsqrt(var + _LN_EPS) * g_ref[...] + b_ref[...]

    # ---- token (spatial) mixing: contract over S, H stays on lanes (no transpose) ----
    z = layernorm(y, ln1g_ref, ln1b_ref)                              # [bb, S, Hp]
    w1t = jnp.broadcast_to(tw1_ref[...], (bb, tok, s_len))            # tiny [bb, T, S]
    h1 = jnp.einsum("bts,bsh->bth", w1t, z,
                    preferred_element_type=jnp.float32) + tb1_ref[...]
    a1 = _gelu_exact(h1)                                              # [bb, T, Hp]
    w2t = jnp.broadcast_to(tw2_ref[...], (bb, s_len, tok))            # tiny [bb, S, T]
    t = jnp.einsum("bst,bth->bsh", w2t, a1,
                   preferred_element_type=jnp.float32) + tb2_ref[...]
    if lane_mask is not None:
        t = t * lane_mask                      # keep padded H lanes exactly zero
    y1 = y + t                                                        # residual 1

    # ---- channel (temporal) mixing: fc2(gelu(fc1(LN2(y1)))) ----
    z2 = layernorm(y1, ln2g_ref, ln2b_ref).reshape(bb * s_len, hp)
    h2 = jnp.dot(z2, cw1_ref[...], preferred_element_type=jnp.float32) + cb1_ref[...]
    a2 = _gelu_exact(h2)
    c = jnp.dot(a2, cw2_ref[...], preferred_element_type=jnp.float32) + cb2_ref[...]
    o_ref[...] = (y1 + c.reshape(bb, s_len, hp)).astype(o_ref.dtype)  # residual 2


# ---------------------------------------------------------------------------
# Tiling / VMEM sizing
# ---------------------------------------------------------------------------
def _block_vmem_bytes(bb, s_len, hp, tok, cp):
    f32 = 4
    io = 2 * 2 * bb * s_len * hp * f32                  # double-buffered y in + out tiles
    weights = 2 * f32 * (4 * hp + tok * s_len + tok + s_len * tok + s_len
                         + hp * cp + cp + cp * hp + hp)  # (double-buffered residents)
    interm = f32 * bb * (3 * s_len * hp + tok * hp + s_len * cp)
    return io + weights + interm


def _vmem_cap_bytes():
    try:
        cap = int(pltpu.get_tpu_info().vmem_capacity_bytes)
    except Exception:
        cap = 64 * 1024 * 1024                          # conservative (v7x) fallback
    return (cap * 3) // 4                               # leave headroom for Mosaic scratch


def _choose_batch_tile(batch, s_len, hp, tok, cp, *, target_rows=512, min_steps=4):
    cap = _vmem_cap_bytes()
    bb = max(1, min(batch, target_rows // max(s_len, 1)))
    while bb > 1 and _block_vmem_bytes(bb, s_len, hp, tok, cp) > cap // 2:
        bb = max(1, bb // 2)
    steps = max(_cdiv(batch, bb), min(batch, min_steps))   # feed both v7x TensorCores
    bb = _cdiv(batch, steps)                               # balanced tile: avoid ~2x padding
    steps = _cdiv(batch, bb)
    vmem_limit = int(min(cap, max(32 * 1024 * 1024,
                                  2 * _block_vmem_bytes(bb, s_len, hp, tok, cp))))
    return bb, steps, vmem_limit


def _mixer_block_call(y_p, blk, *, bb, h_true, vmem_limit):
    b_pad, s_len, hp = y_p.shape
    grid = (b_pad // bb,)

    y_spec = pl.BlockSpec((bb, s_len, hp), lambda i: (i, 0, 0))

    def full(a):
        return pl.BlockSpec(a.shape, lambda i, _nd=a.ndim: (0,) * _nd)

    kernel = functools.partial(_mixer_block_kernel, h_true=h_true)
    return pl.pallas_call(
        kernel,
        out_shape=jax.ShapeDtypeStruct(y_p.shape, y_p.dtype),
        grid_spec=pltpu.PrefetchScalarGridSpec(
            num_scalar_prefetch=0,
            grid=grid,
            in_specs=[
                y_spec,                                     # y: tiled over batch
                full(blk["ln1_g"]), full(blk["ln1_b"]),     # resident params
                full(blk["tw1t"]), full(blk["tb1"]),
                full(blk["tw2t"]), full(blk["tb2"]),
                full(blk["ln2_g"]), full(blk["ln2_b"]),
                full(blk["cw1"]), full(blk["cb1"]),
                full(blk["cw2"]), full(blk["cb2"]),
            ],
            out_specs=y_spec,
        ),
        compiler_params=pltpu.CompilerParams(
            dimension_semantics=("parallel",),
            vmem_limit_bytes=vmem_limit,
        ),
    )(y_p, blk["ln1_g"], blk["ln1_b"], blk["tw1t"], blk["tb1"], blk["tw2t"],
      blk["tb2"], blk["ln2_g"], blk["ln2_b"], blk["cw1"], blk["cb1"],
      blk["cw2"], blk["cb2"])


# ---------------------------------------------------------------------------
# One-time parameter preparation (pad H/C to lane-dense widths, transpose token weights)
# ---------------------------------------------------------------------------
def prepare_params(params):
    h = params["conv_w"].shape[0]
    hp = _round_up(h, 128)

    def pad_h(v):
        return jnp.pad(v, [(0, 0)] * (v.ndim - 1) + [(0, hp - h)])

    blocks = []
    cp = hp
    for blk in params["blocks"]:
        c = blk["ch_w1"].shape[1]
        cp = _round_up(c, 128)
        s_len, tok = blk["tok_w1"].shape
        blocks.append({
            "ln1_g": pad_h(blk["ln1_g"]).reshape(1, hp),
            "ln1_b": pad_h(blk["ln1_b"]).reshape(1, hp),
            "tw1t": blk["tok_w1"].T,                              # [T, S]
            "tb1": blk["tok_b1"].reshape(tok, 1),
            "tw2t": blk["tok_w2"].T,                              # [S, T]
            "tb2": blk["tok_b2"].reshape(s_len, 1),
            "ln2_g": pad_h(blk["ln2_g"]).reshape(1, hp),
            "ln2_b": pad_h(blk["ln2_b"]).reshape(1, hp),
            "cw1": jnp.pad(blk["ch_w1"], ((0, hp - h), (0, cp - c))),
            "cb1": jnp.pad(blk["ch_b1"], (0, cp - c)).reshape(1, cp),
            "cw2": jnp.pad(blk["ch_w2"], ((0, cp - c), (0, hp - h))),
            "cb2": pad_h(blk["ch_b2"]).reshape(1, hp),
        })
    return {
        "hidden_dim": h, "hp": hp, "cp": cp,
        "conv_w": params["conv_w"], "conv_b": params["conv_b"],
        "ln_g": params["ln_g"], "ln_b": params["ln_b"],
        "convout_w": params["convout_w"], "convout_b": params["convout_b"],
        "fc_w": params["fc_w"], "fc_b": params["fc_b"],
        "blocks": blocks,
    }


# ---------------------------------------------------------------------------
# MlpMixer forward (default config: gelu, regularization=0, use_se=False)
# ---------------------------------------------------------------------------
def mlp_mixer_forward(x, prep):
    h, hp, cp = prep["hidden_dim"], prep["hp"], prep["cp"]

    # Conv2d(1, hidden_dim, (1, input_size)) + squeeze + transpose == linear over features.
    y = jnp.einsum("bsi,hi->bsh", x, prep["conv_w"]) + prep["conv_b"]

    batch, s_len, _ = y.shape
    if prep["blocks"]:
        tok = prep["blocks"][0]["tw1t"].shape[0]
        bb, steps, vmem_limit = _choose_batch_tile(batch, s_len, hp, tok, cp)
        b_pad = bb * steps
        # pad batch (ragged last tile) + hidden (lane-dense) ONCE for the whole block stack
        y = jnp.pad(y, ((0, b_pad - batch), (0, 0), (0, hp - h)))
        for blk in prep["blocks"]:
            y = _mixer_block_call(y, blk, bb=bb, h_true=h, vmem_limit=vmem_limit)
        y = y[:batch, :, :h]

    # Final LayerNorm + Conv1d(seq_len, pred_len, 1) + fc_out : tiny tail, left to XLA.
    y = _ref_layer_norm(y, prep["ln_g"], prep["ln_b"])
    y = jnp.einsum("bsh,ps->bph", y, prep["convout_w"]) + prep["convout_b"][None, :, None]
    return jnp.einsum("bph,ch->bpc", y, prep["fc_w"]) + prep["fc_b"]


# ---------------------------------------------------------------------------
# Pure-JAX reference (mirrors the PyTorch forward) for correctness checking
# ---------------------------------------------------------------------------
def _ref_layer_norm(x, gamma, beta, eps=_LN_EPS):
    mean = jnp.mean(x, axis=-1, keepdims=True)
    var = jnp.mean(jnp.square(x - mean), axis=-1, keepdims=True)
    return (x - mean) * jax.lax.rsqrt(var + eps) * gamma + beta


def _ref_mlp_block(x, w1, b1, w2, b2):
    hidden = jax.nn.gelu(x @ w1 + b1, approximate=False)
    return hidden @ w2 + b2


def _ref_forward(x, params):
    y = jnp.einsum("bsi,hi->bsh", x, params["conv_w"]) + params["conv_b"]
    for blk in params["blocks"]:
        t = _ref_layer_norm(y, blk["ln1_g"], blk["ln1_b"])
        t = jnp.swapaxes(t, 1, 2)
        t = _ref_mlp_block(t, blk["tok_w1"], blk["tok_b1"], blk["tok_w2"], blk["tok_b2"])
        t = jnp.swapaxes(t, 1, 2)
        y = y + t
        c = _ref_layer_norm(y, blk["ln2_g"], blk["ln2_b"])
        c = _ref_mlp_block(c, blk["ch_w1"], blk["ch_b1"], blk["ch_w2"], blk["ch_b2"])
        y = y + c
    y = _ref_layer_norm(y, params["ln_g"], params["ln_b"])
    y = jnp.einsum("bsh,ps->bph", y, params["convout_w"]) + params["convout_b"][None, :, None]
    return jnp.einsum("bph,ch->bpc", y, params["fc_w"]) + params["fc_b"]


# ---------------------------------------------------------------------------
# Deterministic parameter construction (weights stored pre-transposed: fcX.weight.T)
# ---------------------------------------------------------------------------
def init_params(key, *, input_size, hidden_dim, seq_len, tokens_mlp_dim,
                channels_mlp_dim, num_blocks, pred_len, num_classes, scale=0.1):
    keys = iter(jax.random.split(key, 16 + 16 * num_blocks))

    def nrm(shape):
        return jax.random.normal(next(keys), shape, dtype=jnp.float32) * scale

    params = {
        "conv_w": nrm((hidden_dim, input_size)),
        "conv_b": nrm((hidden_dim,)),
        "ln_g": 1.0 + nrm((hidden_dim,)),
        "ln_b": nrm((hidden_dim,)),
        "convout_w": nrm((pred_len, seq_len)),
        "convout_b": nrm((pred_len,)),
        "fc_w": nrm((num_classes, hidden_dim)),
        "fc_b": nrm((num_classes,)),
        "blocks": [],
    }
    for _ in range(num_blocks):
        params["blocks"].append({
            "ln1_g": 1.0 + nrm((hidden_dim,)),
            "ln1_b": nrm((hidden_dim,)),
            "tok_w1": nrm((seq_len, tokens_mlp_dim)),
            "tok_b1": nrm((tokens_mlp_dim,)),
            "tok_w2": nrm((tokens_mlp_dim, seq_len)),
            "tok_b2": nrm((seq_len,)),
            "ln2_g": 1.0 + nrm((hidden_dim,)),
            "ln2_b": nrm((hidden_dim,)),
            "ch_w1": nrm((hidden_dim, channels_mlp_dim)),
            "ch_b1": nrm((channels_mlp_dim,)),
            "ch_w2": nrm((channels_mlp_dim, hidden_dim)),
            "ch_b2": nrm((hidden_dim,)),
        })
    return params


if __name__ == "__main__":
    # Small shapes consistent with the module ([bs, seq_len, input_size] input).
    B, seq_len, input_size = 2, 8, 16
    hidden_dim, tokens_mlp_dim, channels_mlp_dim = 32, 24, 48
    num_blocks, pred_len, num_classes = 2, 4, 16

    key = jax.random.PRNGKey(0)
    kx, kp = jax.random.split(key)
    x = jax.random.normal(kx, (B, seq_len, input_size), dtype=jnp.float32)
    params = init_params(
        kp,
        input_size=input_size, hidden_dim=hidden_dim, seq_len=seq_len,
        tokens_mlp_dim=tokens_mlp_dim, channels_mlp_dim=channels_mlp_dim,
        num_blocks=num_blocks, pred_len=pred_len, num_classes=num_classes,
    )
    prep = prepare_params(params)

    fwd = jax.jit(lambda inp: mlp_mixer_forward(inp, prep))
    y = fwd(x)
    jax.block_until_ready(y)

    y_ref = _ref_forward(x, params)
    assert y.shape == (B, pred_len, num_classes)
    assert bool(jnp.allclose(y, y_ref, atol=1e-3, rtol=1e-3)), "mismatch vs. JAX reference"

    print("KERNEL_OK")
</pallas_src>

<mosaic_0001>
module attributes {stable_mosaic.version = 11 : i64} {
  func.func @_mixer_block_kernel(%arg0: i32, %arg1: memref<1x8x128xf32, #tpu.memory_space<vmem>>, %arg2: memref<1x128xf32, #tpu.memory_space<vmem>>, %arg3: memref<1x128xf32, #tpu.memory_space<vmem>>, %arg4: memref<24x8xf32, #tpu.memory_space<vmem>>, %arg5: memref<24x1xf32, #tpu.memory_space<vmem>>, %arg6: memref<8x24xf32, #tpu.memory_space<vmem>>, %arg7: memref<8x1xf32, #tpu.memory_space<vmem>>, %arg8: memref<1x128xf32, #tpu.memory_space<vmem>>, %arg9: memref<1x128xf32, #tpu.memory_space<vmem>>, %arg10: memref<128x128xf32, #tpu.memory_space<vmem>>, %arg11: memref<1x128xf32, #tpu.memory_space<vmem>>, %arg12: memref<128x128xf32, #tpu.memory_space<vmem>>, %arg13: memref<1x128xf32, #tpu.memory_space<vmem>>, %arg14: memref<1x8x128xf32, #tpu.memory_space<vmem>>) attributes {dimension_semantics = [#tpu.dimension_semantics<parallel>], iteration_bounds = array<i64: 2>, scalar_prefetch = 0 : i64, scratch_operands = 0 : i64, tpu.core_type = #tpu.core_type<tc>, window_params = [{transform_indices = @transform_0, window_bounds = array<i64: 1, 8, 128>}, {pipeline_mode = #tpu.pipeline_mode<synchronous>, transform_indices = @transform_1, window_bounds = array<i64: 1, 128>}, {pipeline_mode = #tpu.pipeline_mode<synchronous>, transform_indices = @transform_2, window_bounds = array<i64: 1, 128>}, {pipeline_mode = #tpu.pipeline_mode<synchronous>, transform_indices = @transform_3, window_bounds = array<i64: 24, 8>}, {pipeline_mode = #tpu.pipeline_mode<synchronous>, transform_indices = @transform_4, window_bounds = array<i64: 24, 1>}, {pipeline_mode = #tpu.pipeline_mode<synchronous>, transform_indices = @transform_5, window_bounds = array<i64: 8, 24>}, {pipeline_mode = #tpu.pipeline_mode<synchronous>, transform_indices = @transform_6, window_bounds = array<i64: 8, 1>}, {pipeline_mode = #tpu.pipeline_mode<synchronous>, transform_indices = @transform_7, window_bounds = array<i64: 1, 128>}, {pipeline_mode = #tpu.pipeline_mode<synchronous>, transform_indices = @transform_8, window_bounds = array<i64: 1, 128>}, {pipeline_mode = #tpu.pipeline_mode<synchronous>, transform_indices = @transform_9, window_bounds = array<i64: 128, 128>}, {pipeline_mode = #tpu.pipeline_mode<synchronous>, transform_indices = @transform_10, window_bounds = array<i64: 1, 128>}, {pipeline_mode = #tpu.pipeline_mode<synchronous>, transform_indices = @transform_11, window_bounds = array<i64: 128, 128>}, {pipeline_mode = #tpu.pipeline_mode<synchronous>, transform_indices = @transform_12, window_bounds = array<i64: 1, 128>}, {transform_indices = @transform_13, window_bounds = array<i64: 1, 8, 128>}]} {
    %c0 = arith.constant 0 : index
    %c0_0 = arith.constant 0 : index
    %c0_1 = arith.constant 0 : index
    %0 = vector.load %arg1[%c0, %c0_0, %c0_1] : memref<1x8x128xf32, #tpu.memory_space<vmem>>, vector<1x8x128xf32>
    %1 = tpu.iota {dimensions = array<i32: 2>} : vector<1x1x128xi32>
    %c32_i32 = arith.constant 32 : i32
    %2 = vector.broadcast %c32_i32 : i32 to vector<1x1x128xi32>
    %3 = arith.cmpi slt, %1, %2 : vector<1x1x128xi32>
    %4 = arith.extui %3 : vector<1x1x128xi1> to vector<1x1x128xi32>
    %5 = arith.sitofp %4 : vector<1x1x128xi32> to vector<1x1x128xf32>
    %6 = vector.broadcast %5 : vector<1x1x128xf32> to vector<1x8x128xf32>
    %7 = arith.mulf %0, %6 : vector<1x8x128xf32>
    %cst = arith.constant dense<0.000000e+00> : vector<1x8xf32>
    %8 = vector.multi_reduction <add>, %7, %cst [2] : vector<1x8x128xf32> to vector<1x8xf32>
    %9 = vector.shape_cast %8 : vector<1x8xf32> to vector<1x8x1xf32>
    %cst_2 = arith.constant 3.125000e-02 : f32
    %10 = vector.broadcast %cst_2 : f32 to vector<1x8x1xf32>
    %11 = arith.mulf %9, %10 : vector<1x8x1xf32>
    %12 = vector.broadcast %11 : vector<1x8x1xf32> to vector<1x8x128xf32>
    %13 = arith.subf %0, %12 : vector<1x8x128xf32>
    %14 = vector.broadcast %5 : vector<1x1x128xf32> to vector<1x8x128xf32>
    %15 = arith.mulf %13, %14 : vector<1x8x128xf32>
    %16 = arith.mulf %15, %15 : vector<1x8x128xf32>
    %cst_3 = arith.constant dense<0.000000e+00> : vector<1x8xf32>
    %17 = vector.multi_reduction <add>, %16, %cst_3 [2] : vector<1x8x128xf32> to vector<1x8xf32>
    %18 = vector.shape_cast %17 : vector<1x8xf32> to vector<1x8x1xf32>
    %cst_4 = arith.constant 3.125000e-02 : f32
    %19 = vector.broadcast %cst_4 : f32 to vector<1x8x1xf32>
    %20 = arith.mulf %18, %19 : vector<1x8x1xf32>
    %cst_5 = arith.constant 9.99999974E-6 : f32
    %21 = vector.broadcast %cst_5 : f32 to vector<1x8x1xf32>
    %22 = arith.addf %20, %21 : vector<1x8x1xf32>
    %23 = math.rsqrt %22 : vector<1x8x1xf32>
    %24 = vector.broadcast %23 : vector<1x8x1xf32> to vector<1x8x128xf32>
    %25 = arith.mulf %15, %24 : vector<1x8x128xf32>
    %c0_6 = arith.constant 0 : index
    %c0_7 = arith.constant 0 : index
    %26 = vector.load %arg2[%c0_6, %c0_7] : memref<1x128xf32, #tpu.memory_space<vmem>>, vector<1x128xf32>
    %27 = vector.shape_cast %26 : vector<1x128xf32> to vector<1x1x128xf32>
    %28 = vector.broadcast %27 : vector<1x1x128xf32> to vector<1x8x128xf32>
    %29 = arith.mulf %25, %28 : vector<1x8x128xf32>
    %c0_8 = arith.constant 0 : index
    %c0_9 = arith.constant 0 : index
    %30 = vector.load %arg3[%c0_8, %c0_9] : memref<1x128xf32, #tpu.memory_space<vmem>>, vector<1x128xf32>
    %31 = vector.shape_cast %30 : vector<1x128xf32> to vector<1x1x128xf32>
    %32 = vector.broadcast %31 : vector<1x1x128xf32> to vector<1x8x128xf32>
    %33 = arith.addf %29, %32 : vector<1x8x128xf32>
    %c0_10 = arith.constant 0 : index
    %c0_11 = arith.constant 0 : index
    %34 = vector.load %arg4[%c0_10, %c0_11] : memref<24x8xf32, #tpu.memory_space<vmem>>, vector<24x8xf32>
    %35 = vector.shape_cast %34 : vector<24x8xf32> to vector<1x24x8xf32>
    "tpu.trace_start"() <{level = 10 : i32, message = "bts,bsh->bth"}> : () -> ()
    %cst_12 = arith.constant dense<0.000000e+00> : vector<1x24x128xf32>
    %36 = tpu.matmul %35, %33, %cst_12 {dimension_numbers = #tpu.dot_dimension_numbers<[2], [1], [1], [2], [0, 0, 0, 1, 1, 2], [0], [0]>, precision = #tpu.contract_precision<fp32>} : vector<1x24x8xf32>, vector<1x8x128xf32>, vector<1x24x128xf32> -> vector<1x24x128xf32>
    "tpu.trace_stop"() : () -> ()
    %c0_13 = arith.constant 0 : index
    %c0_14 = arith.constant 0 : index
    %37 = vector.load %arg5[%c0_13, %c0_14] : memref<24x1xf32, #tpu.memory_space<vmem>>, vector<24x1xf32>
    %38 = vector.shape_cast %37 : vector<24x1xf32> to vector<1x24x1xf32>
    %39 = vector.broadcast %38 : vector<1x24x1xf32> to vector<1x24x128xf32>
    %40 = arith.addf %36, %39 : vector<1x24x128xf32>
    %cst_15 = arith.constant 5.000000e-01 : f32
    %41 = vector.broadcast %cst_15 : f32 to vector<1x24x128xf32>
    %42 = arith.mulf %41, %40 : vector<1x24x128xf32>
    %cst_16 = arith.constant 0.707106769 : f32
    %43 = vector.broadcast %cst_16 : f32 to vector<1x24x128xf32>
    %44 = arith.mulf %40, %43 : vector<1x24x128xf32>
    %45 = math.absf %44 : vector<1x24x128xf32>
    %cst_17 = arith.constant 0.327591091 : f32
    %46 = vector.broadcast %cst_17 : f32 to vector<1x24x128xf32>
    %47 = arith.mulf %46, %45 : vector<1x24x128xf32>
    %cst_18 = arith.constant 1.000000e+00 : f32
    %48 = vector.broadcast %cst_18 : f32 to vector<1x24x128xf32>
    %49 = arith.addf %48, %47 : vector<1x24x128xf32>
    %cst_19 = arith.constant 1.000000e+00 : f32
    %50 = vector.broadcast %cst_19 : f32 to vector<1x24x128xf32>
    %51 = arith.divf %50, %49 : vector<1x24x128xf32>
    %cst_20 = arith.constant 1.06140542 : f32
    %52 = vector.broadcast %cst_20 : f32 to vector<1x24x128xf32>
    %53 = arith.mulf %52, %51 : vector<1x24x128xf32>
    %cst_21 = arith.constant -1.45315206 : f32
    %54 = vector.broadcast %cst_21 : f32 to vector<1x24x128xf32>
    %55 = arith.addf %53, %54 : vector<1x24x128xf32>
    %56 = arith.mulf %55, %51 : vector<1x24x128xf32>
    %cst_22 = arith.constant 1.42141378 : f32
    %57 = vector.broadcast %cst_22 : f32 to vector<1x24x128xf32>
    %58 = arith.addf %56, %57 : vector<1x24x128xf32>
    %59 = arith.mulf %58, %51 : vector<1x24x128xf32>
    %cst_23 = arith.constant -0.284496725 : f32
    %60 = vector.broadcast %cst_23 : f32 to vector<1x24x128xf32>
    %61 = arith.addf %59, %60 : vector<1x24x128xf32>
    %62 = arith.mulf %61, %51 : vector<1x24x128xf32>
    %cst_24 = arith.constant 0.254829586 : f32
    %63 = vector.broadcast %cst_24 : f32 to vector<1x24x128xf32>
    %64 = arith.addf %62, %63 : vector<1x24x128xf32>
    %65 = arith.mulf %64, %51 : vector<1x24x128xf32>
    %cst_25 = arith.constant 0.000000e+00 : f32
    %66 = vector.broadcast %cst_25 : f32 to vector<1x24x128xf32>
    %67 = arith.subf %66, %45 : vector<1x24x128xf32>
    %68 = arith.mulf %67, %45 : vector<1x24x128xf32>
    %69 = math.exp %68 : vector<1x24x128xf32>
    %70 = arith.mulf %65, %69 : vector<1x24x128xf32>
    %cst_26 = arith.constant 1.000000e+00 : f32
    %71 = vector.broadcast %cst_26 : f32 to vector<1x24x128xf32>
    %72 = arith.subf %71, %70 : vector<1x24x128xf32>
    %cst_27 = arith.constant 0.000000e+00 : f32
    %73 = vector.broadcast %cst_27 : f32 to vector<1x24x128xf32>
    %74 = arith.cmpf oge, %44, %73 : vector<1x24x128xf32>
    %cst_28 = arith.constant 0.000000e+00 : f32
    %75 = vector.broadcast %cst_28 : f32 to vector<1x24x128xf32>
    %76 = arith.subf %75, %72 : vector<1x24x128xf32>
    %77 = arith.select %74, %72, %76 : vector<1x24x128xi1>, vector<1x24x128xf32>
    %cst_29 = arith.constant 1.000000e+00 : f32
    %78 = vector.broadcast %cst_29 : f32 to vector<1x24x128xf32>
    %79 = arith.addf %78, %77 : vector<1x24x128xf32>
    %80 = arith.mulf %42, %79 : vector<1x24x128xf32>
    %c0_30 = arith.constant 0 : index
    %c0_31 = arith.constant 0 : index
    %81 = vector.load %arg6[%c0_30, %c0_31] : memref<8x24xf32, #tpu.memory_space<vmem>>, vector<8x24xf32>
    %82 = vector.shape_cast %81 : vector<8x24xf32> to vector<1x8x24xf32>
    "tpu.trace_start"() <{level = 10 : i32, message = "bst,bth->bsh"}> : () -> ()
    %cst_32 = arith.constant dense<0.000000e+00> : vector<1x8x128xf32>
    %83 = tpu.matmul %82, %80, %cst_32 {dimension_numbers = #tpu.dot_dimension_numbers<[2], [1], [1], [2], [0, 0, 0, 1, 1, 2], [0], [0]>, precision = #tpu.contract_precision<fp32>} : vector<1x8x24xf32>, vector<1x24x128xf32>, vector<1x8x128xf32> -> vector<1x8x128xf32>
    "tpu.trace_stop"() : () -> ()
    %c0_33 = arith.constant 0 : index
    %c0_34 = arith.constant 0 : index
    %84 = vector.load %arg7[%c0_33, %c0_34] : memref<8x1xf32, #tpu.memory_space<vmem>>, vector<8x1xf32>
    %85 = vector.shape_cast %84 : vector<8x1xf32> to vector<1x8x1xf32>
    %86 = vector.broadcast %85 : vector<1x8x1xf32> to vector<1x8x128xf32>
    %87 = arith.addf %83, %86 : vector<1x8x128xf32>
    %88 = vector.broadcast %5 : vector<1x1x128xf32> to vector<1x8x128xf32>
    %89 = arith.mulf %87, %88 : vector<1x8x128xf32>
    %90 = arith.addf %0, %89 : vector<1x8x128xf32>
    %91 = vector.broadcast %5 : vector<1x1x128xf32> to vector<1x8x128xf32>
    %92 = arith.mulf %90, %91 : vector<1x8x128xf32>
    %cst_35 = arith.constant dense<0.000000e+00> : vector<1x8xf32>
    %93 = vector.multi_reduction <add>, %92, %cst_35 [2] : vector<1x8x128xf32> to vector<1x8xf32>
    %94 = vector.shape_cast %93 : vector<1x8xf32> to vector<1x8x1xf32>
    %cst_36 = arith.constant 3.125000e-02 : f32
    %95 = vector.broadcast %cst_36 : f32 to vector<1x8x1xf32>
    %96 = arith.mulf %94, %95 : vector<1x8x1xf32>
    %97 = vector.broadcast %96 : vector<1x8x1xf32> to vector<1x8x128xf32>
    %98 = arith.subf %90, %97 : vector<1x8x128xf32>
    %99 = vector.broadcast %5 : vector<1x1x128xf32> to vector<1x8x128xf32>
    %100 = arith.mulf %98, %99 : vector<1x8x128xf32>
    %101 = arith.mulf %100, %100 : vector<1x8x128xf32>
    %cst_37 = arith.constant dense<0.000000e+00> : vector<1x8xf32>
    %102 = vector.multi_reduction <add>, %101, %cst_37 [2] : vector<1x8x128xf32> to vector<1x8xf32>
    %103 = vector.shape_cast %102 : vector<1x8xf32> to vector<1x8x1xf32>
    %cst_38 = arith.constant 3.125000e-02 : f32
    %104 = vector.broadcast %cst_38 : f32 to vector<1x8x1xf32>
    %105 = arith.mulf %103, %104 : vector<1x8x1xf32>
    %cst_39 = arith.constant 9.99999974E-6 : f32
    %106 = vector.broadcast %cst_39 : f32 to vector<1x8x1xf32>
    %107 = arith.addf %105, %106 : vector<1x8x1xf32>
    %108 = math.rsqrt %107 : vector<1x8x1xf32>
    %109 = vector.broadcast %108 : vector<1x8x1xf32> to vector<1x8x128xf32>
    %110 = arith.mulf %100, %109 : vector<1x8x128xf32>
    %c0_40 = arith.constant 0 : index
    %c0_41 = arith.constant 0 : index
    %111 = vector.load %arg8[%c0_40, %c0_41] : memref<1x128xf32, #tpu.memory_space<vmem>>, vector<1x128xf32>
    %112 = vector.shape_cast %111 : vector<1x128xf32> to vector<1x1x128xf32>
    %113 = vector.broadcast %112 : vector<1x1x128xf32> to vector<1x8x128xf32>
    %114 = arith.mulf %110, %113 : vector<1x8x128xf32>
    %c0_42 = arith.constant 0 : index
    %c0_43 = arith.constant 0 : index
    %115 = vector.load %arg9[%c0_42, %c0_43] : memref<1x128xf32, #tpu.memory_space<vmem>>, vector<1x128xf32>
    %116 = vector.shape_cast %115 : vector<1x128xf32> to vector<1x1x128xf32>
    %117 = vector.broadcast %116 : vector<1x1x128xf32> to vector<1x8x128xf32>
    %118 = arith.addf %114, %117 : vector<1x8x128xf32>
    %119 = vector.shape_cast %118 : vector<1x8x128xf32> to vector<8x128xf32>
    %c0_44 = arith.constant 0 : index
    %c0_45 = arith.constant 0 : index
    %120 = vector.load %arg10[%c0_44, %c0_45] : memref<128x128xf32, #tpu.memory_space<vmem>>, vector<128x128xf32>
    %cst_46 = arith.constant dense<0.000000e+00> : vector<8x128xf32>
    %121 = tpu.matmul %119, %120, %cst_46 {dimension_numbers = #tpu.dot_dimension_numbers<[1], [0], [0], [1], [0, 0, 1, 1], [], []>, precision = #tpu.contract_precision<fp32>} : vector<8x128xf32>, vector<128x128xf32>, vector<8x128xf32> -> vector<8x128xf32>
    %c0_47 = arith.constant 0 : index
    %c0_48 = arith.constant 0 : index
    %122 = vector.load %arg11[%c0_47, %c0_48] : memref<1x128xf32, #tpu.memory_space<vmem>>, vector<1x128xf32>
    %123 = vector.broadcast %122 : vector<1x128xf32> to vector<8x128xf32>
    %124 = arith.addf %121, %123 : vector<8x128xf32>
    %cst_49 = arith.constant 5.000000e-01 : f32
    %125 = vector.broadcast %cst_49 : f32 to vector<8x128xf32>
    %126 = arith.mulf %125, %124 : vector<8x128xf32>
    %cst_50 = arith.constant 0.707106769 : f32
    %127 = vector.broadcast %cst_50 : f32 to vector<8x128xf32>
    %128 = arith.mulf %124, %127 : vector<8x128xf32>
    %129 = math.absf %128 : vector<8x128xf32>
    %cst_51 = arith.constant 0.327591091 : f32
    %130 = vector.broadcast %cst_51 : f32 to vector<8x128xf32>
    %131 = arith.mulf %130, %129 : vector<8x128xf32>
    %cst_52 = arith.constant 1.000000e+00 : f32
    %132 = vector.broadcast %cst_52 : f32 to vector<8x128xf32>
    %133 = arith.addf %132, %131 : vector<8x128xf32>
    %cst_53 = arith.constant 1.000000e+00 : f32
    %134 = vector.broadcast %cst_53 : f32 to vector<8x128xf32>
    %135 = arith.divf %134, %133 : vector<8x128xf32>
    %cst_54 = arith.constant 1.06140542 : f32
    %136 = vector.broadcast %cst_54 : f32 to vector<8x128xf32>
    %137 = arith.mulf %136, %135 : vector<8x128xf32>
    %cst_55 = arith.constant -1.45315206 : f32
    %138 = vector.broadcast %cst_55 : f32 to vector<8x128xf32>
    %139 = arith.addf %137, %138 : vector<8x128xf32>
    %140 = arith.mulf %139, %135 : vector<8x128xf32>
    %cst_56 = arith.constant 1.42141378 : f32
    %141 = vector.broadcast %cst_56 : f32 to vector<8x128xf32>
    %142 = arith.addf %140, %141 : vector<8x128xf32>
    %143 = arith.mulf %142, %135 : vector<8x128xf32>
    %cst_57 = arith.constant -0.284496725 : f32
    %144 = vector.broadcast %cst_57 : f32 to vector<8x128xf32>
    %145 = arith.addf %143, %144 : vector<8x128xf32>
    %146 = arith.mulf %145, %135 : vector<8x128xf32>
    %cst_58 = arith.constant 0.254829586 : f32
    %147 = vector.broadcast %cst_58 : f32 to vector<8x128xf32>
    %148 = arith.addf %146, %147 : vector<8x128xf32>
    %149 = arith.mulf %148, %135 : vector<8x128xf32>
    %cst_59 = arith.constant 0.000000e+00 : f32
    %150 = vector.broadcast %cst_59 : f32 to vector<8x128xf32>
    %151 = arith.subf %150, %129 : vector<8x128xf32>
    %152 = arith.mulf %151, %129 : vector<8x128xf32>
    %153 = math.exp %152 : vector<8x128xf32>
    %154 = arith.mulf %149, %153 : vector<8x128xf32>
    %cst_60 = arith.constant 1.000000e+00 : f32
    %155 = vector.broadcast %cst_60 : f32 to vector<8x128xf32>
    %156 = arith.subf %155, %154 : vector<8x128xf32>
    %cst_61 = arith.constant 0.000000e+00 : f32
    %157 = vector.broadcast %cst_61 : f32 to vector<8x128xf32>
    %158 = arith.cmpf oge, %128, %157 : vector<8x128xf32>
    %cst_62 = arith.constant 0.000000e+00 : f32
    %159 = vector.broadcast %cst_62 : f32 to vector<8x128xf32>
    %160 = arith.subf %159, %156 : vector<8x128xf32>
    %161 = arith.select %158, %156, %160 : vector<8x128xi1>, vector<8x128xf32>
    %cst_63 = arith.constant 1.000000e+00 : f32
    %162 = vector.broadcast %cst_63 : f32 to vector<8x128xf32>
    %163 = arith.addf %162, %161 : vector<8x128xf32>
    %164 = arith.mulf %126, %163 : vector<8x128xf32>
    %c0_64 = arith.constant 0 : index
    %c0_65 = arith.constant 0 : index
    %165 = vector.load %arg12[%c0_64, %c0_65] : memref<128x128xf32, #tpu.memory_space<vmem>>, vector<128x128xf32>
    %cst_66 = arith.constant dense<0.000000e+00> : vector<8x128xf32>
    %166 = tpu.matmul %164, %165, %cst_66 {dimension_numbers = #tpu.dot_dimension_numbers<[1], [0], [0], [1], [0, 0, 1, 1], [], []>, precision = #tpu.contract_precision<fp32>} : vector<8x128xf32>, vector<128x128xf32>, vector<8x128xf32> -> vector<8x128xf32>
    %c0_67 = arith.constant 0 : index
    %c0_68 = arith.constant 0 : index
    %167 = vector.load %arg13[%c0_67, %c0_68] : memref<1x128xf32, #tpu.memory_space<vmem>>, vector<1x128xf32>
    %168 = vector.broadcast %167 : vector<1x128xf32> to vector<8x128xf32>
    %169 = arith.addf %166, %168 : vector<8x128xf32>
    %170 = vector.shape_cast %169 : vector<8x128xf32> to vector<1x8x128xf32>
    %171 = arith.addf %90, %170 : vector<1x8x128xf32>
    %c0_69 = arith.constant 0 : index
    %c0_70 = arith.constant 0 : index
    %c0_71 = arith.constant 0 : index
    %172 = vector.load %arg14[%c0_69, %c0_70, %c0_71] : memref<1x8x128xf32, #tpu.memory_space<vmem>>, vector<1x8x128xf32>
    tpu.vector_store %arg14[%c0_69, %c0_70, %c0_71], %171 {strides = array<i32>} : memref<1x8x128xf32, #tpu.memory_space<vmem>>, vector<1x8x128xf32>,
    return
  }
  func.func @transform_0(%arg0: i32) -> (i32, i32, i32) {
    %c0_i32 = arith.constant 0 : i32
    %c0_i32_0 = arith.constant 0 : i32
    %c0_i32_1 = arith.constant 0 : i32
    return %arg0, %c0_i32, %c0_i32_0 : i32, i32, i32
  }
  func.func @transform_1(%arg0: i32) -> (i32, i32) {
    %c0_i32 = arith.constant 0 : i32
    %c0_i32_0 = arith.constant 0 : i32
    %c0_i32_1 = arith.constant 0 : i32
    return %c0_i32, %c0_i32_0 : i32, i32
  }
  func.func @transform_2(%arg0: i32) -> (i32, i32) {
    %c0_i32 = arith.constant 0 : i32
    %c0_i32_0 = arith.constant 0 : i32
    %c0_i32_1 = arith.constant 0 : i32
    return %c0_i32, %c0_i32_0 : i32, i32
  }
  func.func @transform_3(%arg0: i32) -> (i32, i32) {
    %c0_i32 = arith.constant 0 : i32
    %c0_i32_0 = arith.constant 0 : i32
    %c0_i32_1 = arith.constant 0 : i32
    return %c0_i32, %c0_i32_0 : i32, i32
  }
  func.func @transform_4(%arg0: i32) -> (i32, i32) {
    %c0_i32 = arith.constant 0 : i32
    %c0_i32_0 = arith.constant 0 : i32
    %c0_i32_1 = arith.constant 0 : i32
    return %c0_i32, %c0_i32_0 : i32, i32
  }
  func.func @transform_5(%arg0: i32) -> (i32, i32) {
    %c0_i32 = arith.constant 0 : i32
    %c0_i32_0 = arith.constant 0 : i32
    %c0_i32_1 = arith.constant 0 : i32
    return %c0_i32, %c0_i32_0 : i32, i32
  }
  func.func @transform_6(%arg0: i32) -> (i32, i32) {
    %c0_i32 = arith.constant 0 : i32
    %c0_i32_0 = arith.constant 0 : i32
    %c0_i32_1 = arith.constant 0 : i32
    return %c0_i32, %c0_i32_0 : i32, i32
  }
  func.func @transform_7(%arg0: i32) -> (i32, i32) {
    %c0_i32 = arith.constant 0 : i32
    %c0_i32_0 = arith.constant 0 : i32
    %c0_i32_1 = arith.constant 0 : i32
    return %c0_i32, %c0_i32_0 : i32, i32
  }
  func.func @transform_8(%arg0: i32) -> (i32, i32) {
    %c0_i32 = arith.constant 0 : i32
    %c0_i32_0 = arith.constant 0 : i32
    %c0_i32_1 = arith.constant 0 : i32
    return %c0_i32, %c0_i32_0 : i32, i32
  }
  func.func @transform_9(%arg0: i32) -> (i32, i32) {
    %c0_i32 = arith.constant 0 : i32
    %c0_i32_0 = arith.constant 0 : i32
    %c0_i32_1 = arith.constant 0 : i32
    return %c0_i32, %c0_i32_0 : i32, i32
  }
  func.func @transform_10(%arg0: i32) -> (i32, i32) {
    %c0_i32 = arith.constant 0 : i32
    %c0_i32_0 = arith.constant 0 : i32
    %c0_i32_1 = arith.constant 0 : i32
    return %c0_i32, %c0_i32_0 : i32, i32
  }
  func.func @transform_11(%arg0: i32) -> (i32, i32) {
    %c0_i32 = arith.constant 0 : i32
    %c0_i32_0 = arith.constant 0 : i32
    %c0_i32_1 = arith.constant 0 : i32
    return %c0_i32, %c0_i32_0 : i32, i32
  }
  func.func @transform_12(%arg0: i32) -> (i32, i32) {
    %c0_i32 = arith.constant 0 : i32
    %c0_i32_0 = arith.constant 0 : i32
    %c0_i32_1 = arith.constant 0 : i32
    return %c0_i32, %c0_i32_0 : i32, i32
  }
  func.func @transform_13(%arg0: i32) -> (i32, i32, i32) {
    %c0_i32 = arith.constant 0 : i32
    %c0_i32_0 = arith.constant 0 : i32
    %c0_i32_1 = arith.constant 0 : i32
    return %arg0, %c0_i32, %c0_i32_0 : i32, i32, i32
  }
}

module attributes {stable_mosaic.version = 11 : i64} {
  func.func @_mixer_block_kernel(%arg0: i32, %arg1: memref<1x8x128xf32, #tpu.memory_space<vmem>>, %arg2: memref<1x128xf32, #tpu.memory_space<vmem>>, %arg3: memref<1x128xf32, #tpu.memory_space<vmem>>, %arg4: memref<24x8xf32, #tpu.memory_space<vmem>>, %arg5: memref<24x1xf32, #tpu.memory_space<vmem>>, %arg6: memref<8x24xf32, #tpu.memory_space<vmem>>, %arg7: memref<8x1xf32, #tpu.memory_space<vmem>>, %arg8: memref<1x128xf32, #tpu.memory_space<vmem>>, %arg9: memref<1x128xf32, #tpu.memory_space<vmem>>, %arg10: memref<128x128xf32, #tpu.memory_space<vmem>>, %arg11: memref<1x128xf32, #tpu.memory_space<vmem>>, %arg12: memref<128x128xf32, #tpu.memory_space<vmem>>, %arg13: memref<1x128xf32, #tpu.memory_space<vmem>>, %arg14: memref<1x8x128xf32, #tpu.memory_space<vmem>>) attributes {dimension_semantics = [#tpu.dimension_semantics<parallel>], iteration_bounds = array<i64: 2>, scalar_prefetch = 0 : i64, scratch_operands = 0 : i64, tpu.core_type = #tpu.core_type<tc>, window_params = [{transform_indices = @transform_0, window_bounds = array<i64: 1, 8, 128>}, {pipeline_mode = #tpu.pipeline_mode<synchronous>, transform_indices = @transform_1, window_bounds = array<i64: 1, 128>}, {pipeline_mode = #tpu.pipeline_mode<synchronous>, transform_indices = @transform_2, window_bounds = array<i64: 1, 128>}, {pipeline_mode = #tpu.pipeline_mode<synchronous>, transform_indices = @transform_3, window_bounds = array<i64: 24, 8>}, {pipeline_mode = #tpu.pipeline_mode<synchronous>, transform_indices = @transform_4, window_bounds = array<i64: 24, 1>}, {pipeline_mode = #tpu.pipeline_mode<synchronous>, transform_indices = @transform_5, window_bounds = array<i64: 8, 24>}, {pipeline_mode = #tpu.pipeline_mode<synchronous>, transform_indices = @transform_6, window_bounds = array<i64: 8, 1>}, {pipeline_mode = #tpu.pipeline_mode<synchronous>, transform_indices = @transform_7, window_bounds = array<i64: 1, 128>}, {pipeline_mode = #tpu.pipeline_mode<synchronous>, transform_indices = @transform_8, window_bounds = array<i64: 1, 128>}, {pipeline_mode = #tpu.pipeline_mode<synchronous>, transform_indices = @transform_9, window_bounds = array<i64: 128, 128>}, {pipeline_mode = #tpu.pipeline_mode<synchronous>, transform_indices = @transform_10, window_bounds = array<i64: 1, 128>}, {pipeline_mode = #tpu.pipeline_mode<synchronous>, transform_indices = @transform_11, window_bounds = array<i64: 128, 128>}, {pipeline_mode = #tpu.pipeline_mode<synchronous>, transform_indices = @transform_12, window_bounds = array<i64: 1, 128>}, {transform_indices = @transform_13, window_bounds = array<i64: 1, 8, 128>}]} {
    %c0 = arith.constant 0 : index
    %c0_0 = arith.constant 0 : index
    %c0_1 = arith.constant 0 : index
    %0 = vector.load %arg1[%c0, %c0_0, %c0_1] : memref<1x8x128xf32, #tpu.memory_space<vmem>>, vector<1x8x128xf32>
    %1 = tpu.iota {dimensions = array<i32: 2>} : vector<1x1x128xi32>
    %c32_i32 = arith.constant 32 : i32
    %2 = vector.broadcast %c32_i32 : i32 to vector<1x1x128xi32>
    %3 = arith.cmpi slt, %1, %2 : vector<1x1x128xi32>
    %4 = arith.extui %3 : vector<1x1x128xi1> to vector<1x1x128xi32>
    %5 = arith.sitofp %4 : vector<1x1x128xi32> to vector<1x1x128xf32>
    %6 = vector.broadcast %5 : vector<1x1x128xf32> to vector<1x8x128xf32>
    %7 = arith.mulf %0, %6 : vector<1x8x128xf32>
    %cst = arith.constant dense<0.000000e+00> : vector<1x8xf32>
    %8 = vector.multi_reduction <add>, %7, %cst [2] : vector<1x8x128xf32> to vector<1x8xf32>
    %9 = vector.shape_cast %8 : vector<1x8xf32> to vector<1x8x1xf32>
    %cst_2 = arith.constant 3.125000e-02 : f32
    %10 = vector.broadcast %cst_2 : f32 to vector<1x8x1xf32>
    %11 = arith.mulf %9, %10 : vector<1x8x1xf32>
    %12 = vector.broadcast %11 : vector<1x8x1xf32> to vector<1x8x128xf32>
    %13 = arith.subf %0, %12 : vector<1x8x128xf32>
    %14 = vector.broadcast %5 : vector<1x1x128xf32> to vector<1x8x128xf32>
    %15 = arith.mulf %13, %14 : vector<1x8x128xf32>
    %16 = arith.mulf %15, %15 : vector<1x8x128xf32>
    %cst_3 = arith.constant dense<0.000000e+00> : vector<1x8xf32>
    %17 = vector.multi_reduction <add>, %16, %cst_3 [2] : vector<1x8x128xf32> to vector<1x8xf32>
    %18 = vector.shape_cast %17 : vector<1x8xf32> to vector<1x8x1xf32>
    %cst_4 = arith.constant 3.125000e-02 : f32
    %19 = vector.broadcast %cst_4 : f32 to vector<1x8x1xf32>
    %20 = arith.mulf %18, %19 : vector<1x8x1xf32>
    %cst_5 = arith.constant 9.99999974E-6 : f32
    %21 = vector.broadcast %cst_5 : f32 to vector<1x8x1xf32>
    %22 = arith.addf %20, %21 : vector<1x8x1xf32>
    %23 = math.rsqrt %22 : vector<1x8x1xf32>
    %24 = vector.broadcast %23 : vector<1x8x1xf32> to vector<1x8x128xf32>
    %25 = arith.mulf %15, %24 : vector<1x8x128xf32>
    %c0_6 = arith.constant 0 : index
    %c0_7 = arith.constant 0 : index
    %26 = vector.load %arg2[%c0_6, %c0_7] : memref<1x128xf32, #tpu.memory_space<vmem>>, vector<1x128xf32>
    %27 = vector.shape_cast %26 : vector<1x128xf32> to vector<1x1x128xf32>
    %28 = vector.broadcast %27 : vector<1x1x128xf32> to vector<1x8x128xf32>
    %29 = arith.mulf %25, %28 : vector<1x8x128xf32>
    %c0_8 = arith.constant 0 : index
    %c0_9 = arith.constant 0 : index
    %30 = vector.load %arg3[%c0_8, %c0_9] : memref<1x128xf32, #tpu.memory_space<vmem>>, vector<1x128xf32>
    %31 = vector.shape_cast %30 : vector<1x128xf32> to vector<1x1x128xf32>
    %32 = vector.broadcast %31 : vector<1x1x128xf32> to vector<1x8x128xf32>
    %33 = arith.addf %29, %32 : vector<1x8x128xf32>
    %c0_10 = arith.constant 0 : index
    %c0_11 = arith.constant 0 : index
    %34 = vector.load %arg4[%c0_10, %c0_11] : memref<24x8xf32, #tpu.memory_space<vmem>>, vector<24x8xf32>
    %35 = vector.shape_cast %34 : vector<24x8xf32> to vector<1x24x8xf32>
    "tpu.trace_start"() <{level = 10 : i32, message = "bts,bsh->bth"}> : () -> ()
    %cst_12 = arith.constant dense<0.000000e+00> : vector<1x24x128xf32>
    %36 = tpu.matmul %35, %33, %cst_12 {dimension_numbers = #tpu.dot_dimension_numbers<[2], [1], [1], [2], [0, 0, 0, 1, 1, 2], [0], [0]>, precision = #tpu.contract_precision<fp32>} : vector<1x24x8xf32>, vector<1x8x128xf32>, vector<1x24x128xf32> -> vector<1x24x128xf32>
    "tpu.trace_stop"() : () -> ()
    %c0_13 = arith.constant 0 : index
    %c0_14 = arith.constant 0 : index
    %37 = vector.load %arg5[%c0_13, %c0_14] : memref<24x1xf32, #tpu.memory_space<vmem>>, vector<24x1xf32>
    %38 = vector.shape_cast %37 : vector<24x1xf32> to vector<1x24x1xf32>
    %39 = vector.broadcast %38 : vector<1x24x1xf32> to vector<1x24x128xf32>
    %40 = arith.addf %36, %39 : vector<1x24x128xf32>
    %cst_15 = arith.constant 5.000000e-01 : f32
    %41 = vector.broadcast %cst_15 : f32 to vector<1x24x128xf32>
    %42 = arith.mulf %41, %40 : vector<1x24x128xf32>
    %cst_16 = arith.constant 0.707106769 : f32
    %43 = vector.broadcast %cst_16 : f32 to vector<1x24x128xf32>
    %44 = arith.mulf %40, %43 : vector<1x24x128xf32>
    %45 = math.absf %44 : vector<1x24x128xf32>
    %cst_17 = arith.constant 0.327591091 : f32
    %46 = vector.broadcast %cst_17 : f32 to vector<1x24x128xf32>
    %47 = arith.mulf %46, %45 : vector<1x24x128xf32>
    %cst_18 = arith.constant 1.000000e+00 : f32
    %48 = vector.broadcast %cst_18 : f32 to vector<1x24x128xf32>
    %49 = arith.addf %48, %47 : vector<1x24x128xf32>
    %cst_19 = arith.constant 1.000000e+00 : f32
    %50 = vector.broadcast %cst_19 : f32 to vector<1x24x128xf32>
    %51 = arith.divf %50, %49 : vector<1x24x128xf32>
    %cst_20 = arith.constant 1.06140542 : f32
    %52 = vector.broadcast %cst_20 : f32 to vector<1x24x128xf32>
    %53 = arith.mulf %52, %51 : vector<1x24x128xf32>
    %cst_21 = arith.constant -1.45315206 : f32
    %54 = vector.broadcast %cst_21 : f32 to vector<1x24x128xf32>
    %55 = arith.addf %53, %54 : vector<1x24x128xf32>
    %56 = arith.mulf %55, %51 : vector<1x24x128xf32>
    %cst_22 = arith.constant 1.42141378 : f32
    %57 = vector.broadcast %cst_22 : f32 to vector<1x24x128xf32>
    %58 = arith.addf %56, %57 : vector<1x24x128xf32>
    %59 = arith.mulf %58, %51 : vector<1x24x128xf32>
    %cst_23 = arith.constant -0.284496725 : f32
    %60 = vector.broadcast %cst_23 : f32 to vector<1x24x128xf32>
    %61 = arith.addf %59, %60 : vector<1x24x128xf32>
    %62 = arith.mulf %61, %51 : vector<1x24x128xf32>
    %cst_24 = arith.constant 0.254829586 : f32
    %63 = vector.broadcast %cst_24 : f32 to vector<1x24x128xf32>
    %64 = arith.addf %62, %63 : vector<1x24x128xf32>
    %65 = arith.mulf %64, %51 : vector<1x24x128xf32>
    %cst_25 = arith.constant 0.000000e+00 : f32
    %66 = vector.broadcast %cst_25 : f32 to vector<1x24x128xf32>
    %67 = arith.subf %66, %45 : vector<1x24x128xf32>
    %68 = arith.mulf %67, %45 : vector<1x24x128xf32>
    %69 = math.exp %68 : vector<1x24x128xf32>
    %70 = arith.mulf %65, %69 : vector<1x24x128xf32>
    %cst_26 = arith.constant 1.000000e+00 : f32
    %71 = vector.broadcast %cst_26 : f32 to vector<1x24x128xf32>
    %72 = arith.subf %71, %70 : vector<1x24x128xf32>
    %cst_27 = arith.constant 0.000000e+00 : f32
    %73 = vector.broadcast %cst_27 : f32 to vector<1x24x128xf32>
    %74 = arith.cmpf oge, %44, %73 : vector<1x24x128xf32>
    %cst_28 = arith.constant 0.000000e+00 : f32
    %75 = vector.broadcast %cst_28 : f32 to vector<1x24x128xf32>
    %76 = arith.subf %75, %72 : vector<1x24x128xf32>
    %77 = arith.select %74, %72, %76 : vector<1x24x128xi1>, vector<1x24x128xf32>
    %cst_29 = arith.constant 1.000000e+00 : f32
    %78 = vector.broadcast %cst_29 : f32 to vector<1x24x128xf32>
    %79 = arith.addf %78, %77 : vector<1x24x128xf32>
    %80 = arith.mulf %42, %79 : vector<1x24x128xf32>
    %c0_30 = arith.constant 0 : index
    %c0_31 = arith.constant 0 : index
    %81 = vector.load %arg6[%c0_30, %c0_31] : memref<8x24xf32, #tpu.memory_space<vmem>>, vector<8x24xf32>
    %82 = vector.shape_cast %81 : vector<8x24xf32> to vector<1x8x24xf32>
    "tpu.trace_start"() <{level = 10 : i32, message = "bst,bth->bsh"}> : () -> ()
    %cst_32 = arith.constant dense<0.000000e+00> : vector<1x8x128xf32>
    %83 = tpu.matmul %82, %80, %cst_32 {dimension_numbers = #tpu.dot_dimension_numbers<[2], [1], [1], [2], [0, 0, 0, 1, 1, 2], [0], [0]>, precision = #tpu.contract_precision<fp32>} : vector<1x8x24xf32>, vector<1x24x128xf32>, vector<1x8x128xf32> -> vector<1x8x128xf32>
    "tpu.trace_stop"() : () -> ()
    %c0_33 = arith.constant 0 : index
    %c0_34 = arith.constant 0 : index
    %84 = vector.load %arg7[%c0_33, %c0_34] : memref<8x1xf32, #tpu.memory_space<vmem>>, vector<8x1xf32>
    %85 = vector.shape_cast %84 : vector<8x1xf32> to vector<1x8x1xf32>
    %86 = vector.broadcast %85 : vector<1x8x1xf32> to vector<1x8x128xf32>
    %87 = arith.addf %83, %86 : vector<1x8x128xf32>
    %88 = vector.broadcast %5 : vector<1x1x128xf32> to vector<1x8x128xf32>
    %89 = arith.mulf %87, %88 : vector<1x8x128xf32>
    %90 = arith.addf %0, %89 : vector<1x8x128xf32>
    %91 = vector.broadcast %5 : vector<1x1x128xf32> to vector<1x8x128xf32>
    %92 = arith.mulf %90, %91 : vector<1x8x128xf32>
    %cst_35 = arith.constant dense<0.000000e+00> : vector<1x8xf32>
    %93 = vector.multi_reduction <add>, %92, %cst_35 [2] : vector<1x8x128xf32> to vector<1x8xf32>
    %94 = vector.shape_cast %93 : vector<1x8xf32> to vector<1x8x1xf32>
    %cst_36 = arith.constant 3.125000e-02 : f32
    %95 = vector.broadcast %cst_36 : f32 to vector<1x8x1xf32>
    %96 = arith.mulf %94, %95 : vector<1x8x1xf32>
    %97 = vector.broadcast %96 : vector<1x8x1xf32> to vector<1x8x128xf32>
    %98 = arith.subf %90, %97 : vector<1x8x128xf32>
    %99 = vector.broadcast %5 : vector<1x1x128xf32> to vector<1x8x128xf32>
    %100 = arith.mulf %98, %99 : vector<1x8x128xf32>
    %101 = arith.mulf %100, %100 : vector<1x8x128xf32>
    %cst_37 = arith.constant dense<0.000000e+00> : vector<1x8xf32>
    %102 = vector.multi_reduction <add>, %101, %cst_37 [2] : vector<1x8x128xf32> to vector<1x8xf32>
    %103 = vector.shape_cast %102 : vector<1x8xf32> to vector<1x8x1xf32>
    %cst_38 = arith.constant 3.125000e-02 : f32
    %104 = vector.broadcast %cst_38 : f32 to vector<1x8x1xf32>
    %105 = arith.mulf %103, %104 : vector<1x8x1xf32>
    %cst_39 = arith.constant 9.99999974E-6 : f32
    %106 = vector.broadcast %cst_39 : f32 to vector<1x8x1xf32>
    %107 = arith.addf %105, %106 : vector<1x8x1xf32>
    %108 = math.rsqrt %107 : vector<1x8x1xf32>
    %109 = vector.broadcast %108 : vector<1x8x1xf32> to vector<1x8x128xf32>
    %110 = arith.mulf %100, %109 : vector<1x8x128xf32>
    %c0_40 = arith.constant 0 : index
    %c0_41 = arith.constant 0 : index
    %111 = vector.load %arg8[%c0_40, %c0_41] : memref<1x128xf32, #tpu.memory_space<vmem>>, vector<1x128xf32>
    %112 = vector.shape_cast %111 : vector<1x128xf32> to vector<1x1x128xf32>
    %113 = vector.broadcast %112 : vector<1x1x128xf32> to vector<1x8x128xf32>
    %114 = arith.mulf %110, %113 : vector<1x8x128xf32>
    %c0_42 = arith.constant 0 : index
    %c0_43 = arith.constant 0 : index
    %115 = vector.load %arg9[%c0_42, %c0_43] : memref<1x128xf32, #tpu.memory_space<vmem>>, vector<1x128xf32>
    %116 = vector.shape_cast %115 : vector<1x128xf32> to vector<1x1x128xf32>
    %117 = vector.broadcast %116 : vector<1x1x128xf32> to vector<1x8x128xf32>
    %118 = arith.addf %114, %117 : vector<1x8x128xf32>
    %119 = vector.shape_cast %118 : vector<1x8x128xf32> to vector<8x128xf32>
    %c0_44 = arith.constant 0 : index
    %c0_45 = arith.constant 0 : index
    %120 = vector.load %arg10[%c0_44, %c0_45] : memref<128x128xf32, #tpu.memory_space<vmem>>, vector<128x128xf32>
    %cst_46 = arith.constant dense<0.000000e+00> : vector<8x128xf32>
    %121 = tpu.matmul %119, %120, %cst_46 {dimension_numbers = #tpu.dot_dimension_numbers<[1], [0], [0], [1], [0, 0, 1, 1], [], []>, precision = #tpu.contract_precision<fp32>} : vector<8x128xf32>, vector<128x128xf32>, vector<8x128xf32> -> vector<8x128xf32>
    %c0_47 = arith.constant 0 : index
    %c0_48 = arith.constant 0 : index
    %122 = vector.load %arg11[%c0_47, %c0_48] : memref<1x128xf32, #tpu.memory_space<vmem>>, vector<1x128xf32>
    %123 = vector.broadcast %122 : vector<1x128xf32> to vector<8x128xf32>
    %124 = arith.addf %121, %123 : vector<8x128xf32>
    %cst_49 = arith.constant 5.000000e-01 : f32
    %125 = vector.broadcast %cst_49 : f32 to vector<8x128xf32>
    %126 = arith.mulf %125, %124 : vector<8x128xf32>
    %cst_50 = arith.constant 0.707106769 : f32
    %127 = vector.broadcast %cst_50 : f32 to vector<8x128xf32>
    %128 = arith.mulf %124, %127 : vector<8x128xf32>
    %129 = math.absf %128 : vector<8x128xf32>
    %cst_51 = arith.constant 0.327591091 : f32
    %130 = vector.broadcast %cst_51 : f32 to vector<8x128xf32>
    %131 = arith.mulf %130, %129 : vector<8x128xf32>
    %cst_52 = arith.constant 1.000000e+00 : f32
    %132 = vector.broadcast %cst_52 : f32 to vector<8x128xf32>
    %133 = arith.addf %132, %131 : vector<8x128xf32>
    %cst_53 = arith.constant 1.000000e+00 : f32
    %134 = vector.broadcast %cst_53 : f32 to vector<8x128xf32>
    %135 = arith.divf %134, %133 : vector<8x128xf32>
    %cst_54 = arith.constant 1.06140542 : f32
    %136 = vector.broadcast %cst_54 : f32 to vector<8x128xf32>
    %137 = arith.mulf %136, %135 : vector<8x128xf32>
    %cst_55 = arith.constant -1.45315206 : f32
    %138 = vector.broadcast %cst_55 : f32 to vector<8x128xf32>
    %139 = arith.addf %137, %138 : vector<8x128xf32>
    %140 = arith.mulf %139, %135 : vector<8x128xf32>
    %cst_56 = arith.constant 1.42141378 : f32
    %141 = vector.broadcast %cst_56 : f32 to vector<8x128xf32>
    %142 = arith.addf %140, %141 : vector<8x128xf32>
    %143 = arith.mulf %142, %135 : vector<8x128xf32>
    %cst_57 = arith.constant -0.284496725 : f32
    %144 = vector.broadcast %cst_57 : f32 to vector<8x128xf32>
    %145 = arith.addf %143, %144 : vector<8x128xf32>
    %146 = arith.mulf %145, %135 : vector<8x128xf32>
    %cst_58 = arith.constant 0.254829586 : f32
    %147 = vector.broadcast %cst_58 : f32 to vector<8x128xf32>
    %148 = arith.addf %146, %147 : vector<8x128xf32>
    %149 = arith.mulf %148, %135 : vector<8x128xf32>
    %cst_59 = arith.constant 0.000000e+00 : f32
    %150 = vector.broadcast %cst_59 : f32 to vector<8x128xf32>
    %151 = arith.subf %150, %129 : vector<8x128xf32>
    %152 = arith.mulf %151, %129 : vector<8x128xf32>
    %153 = math.exp %152 : vector<8x128xf32>
    %154 = arith.mulf %149, %153 : vector<8x128xf32>
    %cst_60 = arith.constant 1.000000e+00 : f32
    %155 = vector.broadcast %cst_60 : f32 to vector<8x128xf32>
    %156 = arith.subf %155, %154 : vector<8x128xf32>
    %cst_61 = arith.constant 0.000000e+00 : f32
    %157 = vector.broadcast %cst_61 : f32 to vector<8x128xf32>
    %158 = arith.cmpf oge, %128, %157 : vector<8x128xf32>
    %cst_62 = arith.constant 0.000000e+00 : f32
    %159 = vector.broadcast %cst_62 : f32 to vector<8x128xf32>
    %160 = arith.subf %159, %156 : vector<8x128xf32>
    %161 = arith.select %158, %156, %160 : vector<8x128xi1>, vector<8x128xf32>
    %cst_63 = arith.constant 1.000000e+00 : f32
    %162 = vector.broadcast %cst_63 : f32 to vector<8x128xf32>
    %163 = arith.addf %162, %161 : vector<8x128xf32>
    %164 = arith.mulf %126, %163 : vector<8x128xf32>
    %c0_64 = arith.constant 0 : index
    %c0_65 = arith.constant 0 : index
    %165 = vector.load %arg12[%c0_64, %c0_65] : memref<128x128xf32, #tpu.memory_space<vmem>>, vector<128x128xf32>
    %cst_66 = arith.constant dense<0.000000e+00> : vector<8x128xf32>
    %166 = tpu.matmul %164, %165, %cst_66 {dimension_numbers = #tpu.dot_dimension_numbers<[1], [0], [0], [1], [0, 0, 1, 1], [], []>, precision = #tpu.contract_precision<fp32>} : vector<8x128xf32>, vector<128x128xf32>, vector<8x128xf32> -> vector<8x128xf32>
    %c0_67 = arith.constant 0 : index
    %c0_68 = arith.constant 0 : index
    %167 = vector.load %arg13[%c0_67, %c0_68] : memref<1x128xf32, #tpu.memory_space<vmem>>, vector<1x128xf32>
    %168 = vector.broadcast %167 : vector<1x128xf32> to vector<8x128xf32>
    %169 = arith.addf %166, %168 : vector<8x128xf32>
    %170 = vector.shape_cast %169 : vector<8x128xf32> to vector<1x8x128xf32>
    %171 = arith.addf %90, %170 : vector<1x8x128xf32>
    %c0_69 = arith.constant 0 : index
    %c0_70 = arith.constant 0 : index
    %c0_71 = arith.constant 0 : index
    %172 = vector.load %arg14[%c0_69, %c0_70, %c0_71] : memref<1x8x128xf32, #tpu.memory_space<vmem>>, vector<1x8x128xf32>
    tpu.vector_store %arg14[%c0_69, %c0_70, %c0_71], %171 {strides = array<i32>} : memref<1x8x128xf32, #tpu.memory_space<vmem>>, vector<1x8x128xf32>,
    return
  }
  func.func @transform_0(%arg0: i32) -> (i32, i32, i32) {
    %c0_i32 = arith.constant 0 : i32
    %c0_i32_0 = arith.constant 0 : i32
    %c0_i32_1 = arith.constant 0 : i32
    return %arg0, %c0_i32, %c0_i32_0 : i32, i32, i32
  }
  func.func @transform_1(%arg0: i32) -> (i32, i32) {
    %c0_i32 = arith.constant 0 : i32
    %c0_i32_0 = arith.constant 0 : i32
    %c0_i32_1 = arith.constant 0 : i32
    return %c0_i32, %c0_i32_0 : i32, i32
  }
  func.func @transform_2(%arg0: i32) -> (i32, i32) {
    %c0_i32 = arith.constant 0 : i32
    %c0_i32_0 = arith.constant 0 : i32
    %c0_i32_1 = arith.constant 0 : i32
    return %c0_i32, %c0_i32_0 : i32, i32
  }
  func.func @transform_3(%arg0: i32) -> (i32, i32) {
    %c0_i32 = arith.constant 0 : i32
    %c0_i32_0 = arith.constant 0 : i32
    %c0_i32_1 = arith.constant 0 : i32
    return %c0_i32, %c0_i32_0 : i32, i32
  }
  func.func @transform_4(%arg0: i32) -> (i32, i32) {
    %c0_i32 = arith.constant 0 : i32
    %c0_i32_0 = arith.constant 0 : i32
    %c0_i32_1 = arith.constant 0 : i32
    return %c0_i32, %c0_i32_0 : i32, i32
  }
  func.func @transform_5(%arg0: i32) -> (i32, i32) {
    %c0_i32 = arith.constant 0 : i32
    %c0_i32_0 = arith.constant 0 : i32
    %c0_i32_1 = arith.constant 0 : i32
    return %c0_i32, %c0_i32_0 : i32, i32
  }
  func.func @transform_6(%arg0: i32) -> (i32, i32) {
    %c0_i32 = arith.constant 0 : i32
    %c0_i32_0 = arith.constant 0 : i32
    %c0_i32_1 = arith.constant 0 : i32
    return %c0_i32, %c0_i32_0 : i32, i32
  }
  func.func @transform_7(%arg0: i32) -> (i32, i32) {
    %c0_i32 = arith.constant 0 : i32
    %c0_i32_0 = arith.constant 0 : i32
    %c0_i32_1 = arith.constant 0 : i32
    return %c0_i32, %c0_i32_0 : i32, i32
  }
  func.func @transform_8(%arg0: i32) -> (i32, i32) {
    %c0_i32 = arith.constant 0 : i32
    %c0_i32_0 = arith.constant 0 : i32
    %c0_i32_1 = arith.constant 0 : i32
    return %c0_i32, %c0_i32_0 : i32, i32
  }
  func.func @transform_9(%arg0: i32) -> (i32, i32) {
    %c0_i32 = arith.constant 0 : i32
    %c0_i32_0 = arith.constant 0 : i32
    %c0_i32_1 = arith.constant 0 : i32
    return %c0_i32, %c0_i32_0 : i32, i32
  }
  func.func @transform_10(%arg0: i32) -> (i32, i32) {
    %c0_i32 = arith.constant 0 : i32
    %c0_i32_0 = arith.constant 0 : i32
    %c0_i32_1 = arith.constant 0 : i32
    return %c0_i32, %c0_i32_0 : i32, i32
  }
  func.func @transform_11(%arg0: i32) -> (i32, i32) {
    %c0_i32 = arith.constant 0 : i32
    %c0_i32_0 = arith.constant 0 : i32
    %c0_i32_1 = arith.constant 0 : i32
    return %c0_i32, %c0_i32_0 : i32, i32
  }
  func.func @transform_12(%arg0: i32) -> (i32, i32) {
    %c0_i32 = arith.constant 0 : i32
    %c0_i32_0 = arith.constant 0 : i32
    %c0_i32_1 = arith.constant 0 : i32
    return %c0_i32, %c0_i32_0 : i32, i32
  }
  func.func @transform_13(%arg0: i32) -> (i32, i32, i32) {
    %c0_i32 = arith.constant 0 : i32
    %c0_i32_0 = arith.constant 0 : i32
    %c0_i32_1 = arith.constant 0 : i32
    return %arg0, %c0_i32, %c0_i32_0 : i32, i32, i32
  }
}

</mosaic_0001>

<bundles_post_ra>
// kernel: _lambda_.3
= control target key start
LH: loop header
LB: loop body
LE: loop exit
PB: predicated region body
PF: predicated region fallthrough
CT: control target
= control target key end

     0   :  { %s4321_s25 = smov 0   ;;  %s5168_s0 = inlined_call_operand.vmem [shape: f32[2,8,128], index: 0, kind: input, shape index: {}]   ;;  %s5169_s1 = inlined_call_operand.vmem [shape: f32[1,128], index: 1, kind: input, shape index: {}]   ;;  %s5170_s2 = inlined_call_operand.vmem [shape: f32[1,128], index: 2, kind: input, shape index: {}]   ;;  %s5171_s3 = inlined_call_operand.vmem [shape: f32[24,8], index: 3, kind: input, shape index: {}]   ;;  %s5172_s4 = inlined_call_operand.vmem [shape: f32[24,1], index: 4, kind: input, shape index: {}]   ;;  %s5173_s5 = inlined_call_operand.vmem [shape: f32[8,24], index: 5, kind: input, shape index: {}]   ;;  %s5174_s6 = inlined_call_operand.vmem [shape: f32[8,1], index: 6, kind: input, shape index: {}]   ;;  %s5175_s7 = inlined_call_operand.vmem [shape: f32[1,128], index: 7, kind: input, shape index: {}]   ;;  %s5176_s8 = inlined_call_operand.vmem [shape: f32[1,128], index: 8, kind: input, shape index: {}]   ;;  %s5177_s9 = inlined_call_operand.vmem [shape: f32[128,128], index: 9, kind: input, shape index: {}]   ;;  %s5178_s10 = inlined_call_operand.vmem [shape: f32[1,128], index: 10, kind: input, shape index: {}]   ;;  %s5179_s11 = inlined_call_operand.vmem [shape: f32[128,128], index: 11, kind: input, shape index: {}]   ;;  %s5180_s12 = inlined_call_operand.vmem [shape: f32[1,128], index: 12, kind: input, shape index: {}]   ;;  %s5181_s13 = inlined_call_operand.vmem [shape: f32[2,8,128], index: 13, kind: output, shape index: {}]  }
   0x1 LB: > { %s3039_s26 = sadd.s32 4294967295, %s4245_s25   ;;  %p3043_p0 = scmp.ge.s32.totalorder %s4245_s25, 1  ;;  %s4245_s25 = sphi %s4321_s25, %s23_s25  }
   0x2   : > { %p386_p1 = scmp.lt.s32.totalorder %s4245_s25, 3 }
   0x4   : > { %p387_p2 = pnand %p3043_p0, %p386_p1 }
   0x5   : > { %p428_p3 = scmp.lt.s32.totalorder (!%p387_p2), %s3039_s26, 1  ;;  %v437_v0 = vlaneseq (!%p387_p2)  ;;  %v4247_v1 = vmov (!%p387_p2), 0.0   ;;  %vm4248_vm1 = vmmov (!%p387_p2), 0   ;;  %v474_v11 = vld [vmem:[%s5172_s4] sm:$0xff] (!%p387_p2)  ;;  %v4249_v12 = vmov (!%p387_p2), 0   ;;  %v476_v13 = vld [vmem:[%s5172_s4 + $0x10] sm:$0xff] (!%p387_p2) }
   0x6   : > { %390 = sbr.rel (%p387_p2) target bundleno = 2058 (0x80a), region = 72  ;;  %3307 = vmatprep.subr.mxu1 (!%p387_p2), %v4247_v1  ;;  %3318 = vmatprep.subr.mxu0 (!%p387_p2), %v4247_v1  ;;  %v475_v14 = vld [vmem:[%s5172_s4 + $0x8] sm:$0xff] (!%p387_p2)  ;;  %v1116_v15 = vld [vmem:[%s5174_s6] sm:$0xff] (!%p387_p2)  ;;  %vm492_vm2 = vcmask (!%p387_p2), 64512   ;;  %v473_v28 = vld [vmem:[%s5171_s3 + $0x10] sm:$0xff] (!%p387_p2)  ;;  %v4250_v51 = vmov (!%p387_p2), 0.0|0.0  }
   0x7   : > { %v438_v2 = vand.u32 (!%p387_p2), 127, %v437_v0  ;;  %3320 = vmatprep.mubr.msk.f32.mxu0 (!%p387_p2), %vm4248_vm1, %v4247_v1  ;;  %3309 = vmatprep.mubr.msk.f32.mxu1 (!%p387_p2), %vm4248_vm1, %v4247_v1  ;;  %v471_v19 = vld [vmem:[%s5171_s3] sm:$0xff] (!%p387_p2)  ;;  %v472_v21 = vld [vmem:[%s5171_s3 + $0x8] sm:$0xff] (!%p387_p2)  ;;  %v500_v35 = vsel (!%p387_p2), %vm492_vm2, %v473_v28, 0  ;;  %vm1122_vm3 = vcmask (!%p387_p2), 195584  }
   0x8   : > { %4217 = vset.pattern.permute.xlu1 (!%p387_p2), %v4249_v12  ;;  %4218 = vset.pattern.permute.xlu0 (!%p387_p2), %v4249_v12  ;;  %v494_v20 = vsel (!%p387_p2), %vm492_vm2, %v471_v19, 0  ;;  %v497_v23 = vsel (!%p387_p2), %vm492_vm2, %v472_v21, 0  ;;  %v3047_v26 = vld [vmem:[%s5169_s1] ss:$0 sm:$0xff] (!%p387_p2)  ;;  %v588_v38 = vand.u32 (!%p387_p2), 4294901760, %v500_v35 }
   0x9   : > { %vm439_vm0 = vcmp.lt.s32.totalorder (!%p387_p2), %v438_v2, 32  ;;  %479 = vperm.xlu1 (!%p387_p2), %4217, %v474_v11   ;;  %v4371_v22 = vand.u32 (!%p387_p2), 4294901760, %v494_v20  ;;  %v4378_v27 = vand.u32 (!%p387_p2), 4294901760, %v497_v23  ;;  %v3048_v31 = vld [vmem:[%s5170_s2] ss:$0 sm:$0xff] (!%p387_p2) }
   0xa   : > { %v4340_v3 = vsel (!%p387_p2), %vm439_vm0, 1.0, %v4247_v1  ;;  %v589_v42 = vsub.f32 (!%p387_p2), %v500_v35, %v588_v38 }
   0xb   : > { %v569_v24 = vsub.f32 (!%p387_p2), %v494_v20, %v4371_v22  ;;  %v579_v32 = vsub.f32 (!%p387_p2), %v497_v23, %v4378_v27 }
   0xc   : > { %v590_v44 = vand.u32 (!%p387_p2), 4294901760, %v589_v42 }
   0xd   : > { %s5231_s26 = smov (!%p428_p3, %s3039_s26), 1  ;;  %484 = vperm.xlu1 %4217, %v475_v14   ;;  %v570_v29 = vand.u32 4294901760, %v569_v24  ;;  %v580_v36 = vand.u32 4294901760, %v579_v32 }
   0xe   : > { %s3044_s27 = sshll.u32 %s5231_s26, 3  ;;  %v591_v47 = vsub.f32 %v589_v42, %v590_v44 }
   0xf   : > { %s431_s30 = scalar_lea.vmem %s5168_s0, %s3044_s27  ;;  %v571_v33 = vsub.f32 %v569_v24, %v570_v29  ;;  %v581_v40 = vsub.f32 %v579_v32, %v580_v36  ;;  %s435_s24 = scalar_lea.vmem %s5181_s13, %s3044_s27 }
  0x10   : > { %v4342_v4 = vld [vmem:[%s431_s30] sm:$0xff]  ;;  %v592_v50 = vand.u32 4294901760, %v591_v47 }
  0x11   : > { %v442_v5 = vmul.f32 %v4340_v3, %v4342_v4  ;;  %1119 = vperm.xlu1 %4217, %v1116_v15   ;;  %v572_v39 = vand.u32 4294901760, %v571_v33  ;;  %v582_v45 = vand.u32 4294901760, %v581_v40 }
  0x13   : > { %443 = vadd.xlane.f32.xlu0 %v442_v5 }
  0x88   : > { %v480_v58 = vpop.permute.xlu1 %479 }
  0x8c   : > { %v485_v63 = vpop.permute.xlu1 %484 }
  0xa0   : > { %v444_v6 = vpop.xlane.xlu0 %443 }
  0xa1   : > { %v445_v7 = vmul.f32 0.03125, %v444_v6 }
  0xa3   : > { %v446_v8 = vsub.f32 %v4342_v4, %v445_v7 }
  0xa5   : > { %v447_v9 = vmul.f32 %v4340_v3, %v446_v8 }
  0xa7   : > { %v448_v10 = vmul.f32 %v447_v9, %v447_v9 }
  0xa9   : > { %449 = vadd.xlane.f32.xlu0 %v448_v10 }
  0xbf   : > { %489 = vperm.xlu0 %4218, %v476_v13  }
 0x136   : > { %v450_v16 = vpop.xlane.xlu0 %449 }
 0x137   : > { %v451_v17 = vmul.f32 0.03125, %v450_v16 }
 0x139   : > { %v452_v18 = vadd.f32 1e-05, %v451_v17 }
 0x13b   : > { %4219 = vrsqrt.f32 %v452_v18 }
 0x13e   : > { %v490_v5 = vpop.permute.xlu0 %489 }
 0x145   : > { %v4220_v25 = vpop.eup %4219 }
 0x146   : > { %v454_v30 = vmul.f32 %v4220_v25, %v447_v9 }
 0x148   : > { %v462_v34 = vmul.f32 %v3047_v26, %v454_v30 }
 0x14a   : > { %v470_v37 = vadd.f32 %v3048_v31, %v462_v34 }
 0x14c   : > { %v503_v41 = vand.u32 4294901760, %v470_v37 }
 0x14e   : > { %3308 = vmatpush3.msra.mxu1 %v503_v41  ;;  %v600_v43 = vsub.f32 %v470_v37, %v503_v41 }
 0x14f   : > { %3310 = vmatmul.mubr.f32.vlgmr.msra.gmra.mrb[0].mxu1 %v572_v39  ;;  %3847 = vmatprep.subr.bf16.mxu1 %v4250_v51 }
 0x150   : > { %v601_v46 = vand.u32 4294901760, %v600_v43  ;;  %3312 = vmatprep.mubr.msk.f32.mxu1 %vm4248_vm1, %v4247_v1 }
 0x152   : > { %v602_v48 = vsub.f32 %v600_v43, %v601_v46 }
 0x153   : > { %3313 = vmatmul.mubr.f32.gmra.mrb[2].mxu1 %v582_v45 }
 0x154   : > { %v603_v49 = vand.u32 4294901760, %v602_v48  ;;  %3315 = vmatprep.mubr.msk.f32.mxu1 %vm4248_vm1, %v4247_v1 }
 0x156   : > { %3319 = vmatpush3.msra.mxu0 %v603_v49 }
 0x157   : > { %3321 = vmatmul.mubr.f32.vlgmr.msra.gmra.mrb[0].mxu0 %v4371_v22  ;;  %3329 = vmatprep.subr.mxu0 %v4247_v1 }
 0x158   : > { %3330 = vmatpush3.msra.mxu0 %v600_v43  ;;  %3323 = vmatprep.mubr.msk.f32.mxu0 %vm4248_vm1, %v4247_v1 }
 0x159   : > { %3340 = vmatprep.subr.mxu0 %v4247_v1  ;;  %3316 = vmatmul.mubr.f32.gmra.mrb[4].mxu1 %v592_v50 }
 0x15a   : > { %3379 = vmatprep.mubr.msk.f32.mxu1 %vm4248_vm1, %v4247_v1 }
 0x15b   : > { %3324 = vmatmul.mubr.f32.gmra.mrb[2].mxu0 %v4378_v27 }
 0x15c   : > { %3326 = vmatprep.mubr.msk.f32.mxu0 %vm4248_vm1, %v4247_v1 }
 0x15f   : > { %3327 = vmatmul.mubr.f32.gmra.mrb[4].mxu0 %v588_v38 }
 0x160   : > { %3331 = vmatprep.mubr.msk.f32.mxu0 %vm4248_vm1, %v4247_v1 }
 0x163   : > { %3332 = vmatmul.mubr.f32.vlgmr.msra.gmra.mrb[0].mxu0 %v569_v24 }
 0x164   : > { %3341 = vmatpush3.msra.mxu0 %v503_v41  ;;  %3334 = vmatprep.mubr.msk.f32.mxu0 %vm4248_vm1, %v4247_v1 }
 0x165   : > { %3351 = vmatprep.subr.mxu0 %v4247_v1 }
 0x167   : > { %3335 = vmatmul.mubr.f32.gmra.mrb[2].mxu0 %v579_v32 }
 0x168   : > { %3337 = vmatprep.mubr.msk.f32.mxu0 %vm4248_vm1, %v4247_v1 }
 0x16b   : > { %3338 = vmatmul.mubr.f32.gmra.mrb[4].mxu0 %v589_v42 }
 0x16c   : > { %3342 = vmatprep.mubr.msk.f32.mxu0 %vm4248_vm1, %v4247_v1 }
 0x16f   : > { %3343 = vmatmul.mubr.f32.vlgmr.msra.gmra.mrb[0].mxu0 %v570_v29 }
 0x170   : > { %3352 = vmatpush3.msra.mxu0 %v601_v46  ;;  %3345 = vmatprep.mubr.msk.f32.mxu0 %vm4248_vm1, %v4247_v1 }
 0x171   : > { %3362 = vmatprep.subr.mxu0 %v4247_v1 }
 0x173   : > { %3346 = vmatmul.mubr.f32.gmra.mrb[2].mxu0 %v580_v36 }
 0x174   : > { %3348 = vmatprep.mubr.msk.f32.mxu0 %vm4248_vm1, %v4247_v1 }
 0x177   : > { %3349 = vmatmul.mubr.f32.gmra.mrb[4].mxu0 %v590_v44 }
 0x178   : > { %3353 = vmatprep.mubr.msk.f32.mxu0 %vm4248_vm1, %v4247_v1 }
 0x17b   : > { %3354 = vmatmul.mubr.f32.vlgmr.msra.gmra.mrb[0].mxu0 %v4371_v22 }
 0x17c   : > { %3363 = vmatpush3.msra.mxu0 %v503_v41  ;;  %3356 = vmatprep.mubr.msk.f32.mxu0 %vm4248_vm1, %v4247_v1 }
 0x17d   : > { %4009 = vmatprep.subr.bf16.mxu0 %v4250_v51 }
 0x17f   : > { %3357 = vmatmul.mubr.f32.gmra.mrb[2].mxu0 %v4378_v27 }
 0x180   : > { %3359 = vmatprep.mubr.msk.f32.mxu0 %vm4248_vm1, %v4247_v1 }
 0x183   : > { %3360 = vmatmul.mubr.f32.gmra.mrb[4].mxu0 %v588_v38 }
 0x184   : > { %3364 = vmatprep.mubr.msk.f32.mxu0 %vm4248_vm1, %v4247_v1 }
 0x187   : > { %3365 = vmatmul.mubr.f32.vlgmr.msra.gmra.mrb[0].mxu0 %v4371_v22 }
 0x188   : > { %3367 = vmatprep.mubr.msk.f32.mxu0 %vm4248_vm1, %v4247_v1 }
 0x18b   : > { %3368 = vmatmul.mubr.f32.gmra.mrb[2].mxu0 %v4378_v27 }
 0x18c   : > { %3370 = vmatprep.mubr.msk.f32.mxu0 %vm4248_vm1, %v4247_v1 }
 0x18f   : > { %3371 = vmatmul.mubr.f32.gmra.mrb[4].mxu0 %v588_v38 }
 0x190   : > { %3669 = vmatprep.mubr.msk.f32.mxu0 %vm4248_vm1, %v4247_v1 }
 0x222   : > { %v574_v52 = vpop.f32.mrb[0].mxu1 }
 0x223   : > { %v3311_v53 = vpop.f32.mrb[1].mxu1  ;;  %v575_v59 = vadd.f32 %v574_v52, %v480_v58 }
 0x226   : > { %v584_v54 = vpop.f32.mrb[2].mxu1 }
 0x227   : > { %v3314_v55 = vpop.f32.mrb[3].mxu1  ;;  %v585_v0 = vadd.f32 %v584_v54, %v485_v63 }
 0x22c   : > { %v594_v56 = vpop.f32.mrb[4].mxu1 }
 0x22d   : > { %v3317_v57 = vpop.f32.mrb[5].mxu1  ;;  %v595_v10 = vadd.f32 %v594_v56, %v490_v5 }
 0x22e   : > { %v1115_v57 = vld [vmem:[%s5173_s5] sm:$0xff] }
 0x25a   : > { %v1018_v60 = vpop.f32.mrb[0].mxu0 }
 0x25b   : > { %v4436_v61 = vadd.f32 %v1018_v60, %v575_v59  ;;  %v3366_v62 = vpop.f32.mrb[1].mxu0 }
 0x25d   : > { %v4439_v2 = vmul.f32 0.70710677, %v4436_v61 }
 0x25e   : > { %v1024_v6 = vpop.f32.mrb[2].mxu0 }
 0x25f   : > { %v1040_v7 = vand.u32 2147483647, %v4439_v2  ;;  %v4442_v8 = vadd.f32 %v1024_v6, %v585_v0  ;;  %v3369_v9 = vpop.f32.mrb[3].mxu0  ;;  %v1124_v0 = vsel %vm1122_vm3, %v1115_v57, 0  ;;  %vm1100_vm4 = vcmp.ge.f32.partialorder %v4439_v2, 0.0 }
 0x261   : > { %v1043_v11 = vmul.f32 0.3275911, %v1040_v7  ;;  %v4445_v12 = vmul.f32 0.70710677, %v4442_v8  ;;  %v1082_v23 = vsub.f32 0.0, %v1040_v7 }
 0x262   : > { %v1030_v13 = vpop.f32.mrb[4].mxu0 }
 0x263   : > { %v1046_v14 = vadd.f32 1.0, %v1043_v11  ;;  %v1041_v15 = vand.u32 2147483647, %v4445_v12  ;;  %v3372_v16 = vpop.f32.mrb[5].mxu0  ;;  %v4448_v17 = vadd.f32 %v1030_v13, %v595_v10  ;;  %v1085_v26 = vmul.f32 %v1082_v23, %v1040_v7 }
 0x264   : > { %v4457_v13 = vand.u32 4294901760, %v1124_v0  ;;  %vm1101_vm5 = vcmp.ge.f32.partialorder %v4445_v12, 0.0 }
 0x265   : > { %4221 = vrcp.f32 %v1046_v14  ;;  %v1044_v18 = vmul.f32 0.3275911, %v1041_v15  ;;  %v4451_v19 = vmul.f32 0.70710677, %v4448_v17  ;;  %v1083_v27 = vsub.f32 0.0, %v1041_v15 }
 0x266   : > { %v1088_v31 = vmul.f32 1.442695, %v1085_v26 }
 0x267   : > { %v1047_v20 = vadd.f32 1.0, %v1044_v18  ;;  %v1042_v21 = vand.u32 2147483647, %v4451_v19  ;;  %v1086_v32 = vmul.f32 %v1083_v27, %v1041_v15  ;;  %v1034_v18 = vmul.f32 0.5, %v4436_v61 }
 0x268   : > { %vm1102_vm6 = vcmp.ge.f32.partialorder %v4451_v19, 0.0 }
 0x269   : > { %4223 = vrcp.f32 %v1047_v20  ;;  %v1045_v22 = vmul.f32 0.3275911, %v1042_v21  ;;  %v1084_v35 = vsub.f32 0.0, %v1042_v21  ;;  %v1090_v38 = vmul.f32 1.442695, %v1086_v32 }
 0x26b   : > { %v1048_v24 = vadd.f32 1.0, %v1045_v22  ;;  %v1087_v42 = vmul.f32 %v1084_v35, %v1042_v21 }
 0x26d   : > { %4225 = vrcp.f32 %v1048_v24  ;;  %v1092_v49 = vmul.f32 1.442695, %v1087_v42  ;;  %v1195_v24 = vsub.f32 %v1124_v0, %v4457_v13 }
 0x26e   : > { %4227 = vpow2.f32 %v1088_v31 }
 0x26f   : > { %v4222_v25 = vpop.eup %4221  ;;  %4229 = vpow2.f32 %v1090_v38  ;;  %v1196_v31 = vand.u32 4294901760, %v1195_v24 }
 0x270   : > { %v1055_v28 = vmul.f32 1.0614054, %v4222_v25  ;;  %4231 = vpow2.f32 %v1092_v49 }
 0x271   : > { %v1197_v12 = vsub.f32 %v1195_v24, %v1196_v31 }
 0x272   : > { %v1058_v29 = vadd.f32 -1.4531521, %v1055_v28 }
 0x273   : > { %v4224_v30 = vpop.eup %4223 }
 0x274   : > { %v1061_v33 = vmul.f32 %v4222_v25, %v1058_v29  ;;  %v1056_v34 = vmul.f32 1.0614054, %v4224_v30  ;;  %v1035_v29 = vmul.f32 0.5, %v4442_v8 }
 0x276   : > { %v1064_v36 = vadd.f32 1.4214138, %v1061_v33  ;;  %v1059_v37 = vadd.f32 -1.4531521, %v1056_v34 }
 0x277   : > { %v4226_v39 = vpop.eup %4225 }
 0x278   : > { %v1067_v40 = vmul.f32 %v4222_v25, %v1064_v36  ;;  %v1062_v41 = vmul.f32 %v4224_v30, %v1059_v37  ;;  %v1057_v43 = vmul.f32 1.0614054, %v4226_v39  ;;  %v4228_v58 = vpop.eup %4227  ;;  %v1036_v37 = vmul.f32 0.5, %v4448_v17 }
 0x279   : > { %v4230_v7 = vpop.eup %4229 }
 0x27a   : > { %v1070_v44 = vadd.f32 -0.28449672, %v1067_v40  ;;  %v1065_v45 = vadd.f32 1.4214138, %v1062_v41  ;;  %v1060_v46 = vadd.f32 -1.4531521, %v1057_v43  ;;  %v4232_v22 = vpop.eup %4231 }
 0x27c   : > { %v1073_v47 = vmul.f32 %v4222_v25, %v1070_v44  ;;  %v1068_v48 = vmul.f32 %v4224_v30, %v1065_v45  ;;  %v1063_v50 = vmul.f32 %v4226_v39, %v1060_v46  ;;  %v1198_v45 = vand.u32 4294901760, %v1197_v12 }
 0x27e   : > { %v1076_v52 = vadd.f32 0.2548296, %v1073_v47  ;;  %v1071_v53 = vadd.f32 -0.28449672, %v1068_v48  ;;  %v1066_v54 = vadd.f32 1.4214138, %v1063_v50 }
 0x280   : > { %v1079_v55 = vmul.f32 %v4222_v25, %v1076_v52  ;;  %v1074_v56 = vmul.f32 %v4224_v30, %v1071_v53  ;;  %v1069_v59 = vmul.f32 %v4226_v39, %v1066_v54  ;;  %v1120_v54 = vpop.permute.xlu1 %1119 }
 0x282   : > { %v1094_v60 = vmul.f32 %v4228_v58, %v1079_v55  ;;  %v1077_v62 = vadd.f32 0.2548296, %v1074_v56  ;;  %v1072_v63 = vadd.f32 -0.28449672, %v1069_v59 }
 0x284   : > { %v1097_v5 = vsub.f32 1.0, %v1094_v60  ;;  %v1080_v6 = vmul.f32 %v4224_v30, %v1077_v62  ;;  %v1075_v9 = vmul.f32 %v4226_v39, %v1072_v63  ;;  %v1629_v62 = vld [vmem:[%s5177_s9] sm:$0xff]  ;;  %v1630_v63 = vld [vmem:[%s5177_s9 + $0x8] sm:$0xff] }
 0x285   : > { %v1653_v0 = vand.u32 4294901760, %v1629_v62 }
 0x286   : > { %v1103_v10 = vsub.f32 0.0, %v1097_v5  ;;  %v1095_v11 = vmul.f32 %v4230_v7, %v1080_v6  ;;  %v1078_v14 = vadd.f32 0.2548296, %v1075_v9 }
 0x287   : > { %v4507_v7 = vsub.f32 %v1629_v62, %v1653_v0 }
 0x288   : > { %v1106_v15 = vsel %vm1100_vm4, %v1097_v5, %v1103_v10  ;;  %v1098_v16 = vsub.f32 1.0, %v1095_v11  ;;  %v1081_v21 = vmul.f32 %v4226_v39, %v1078_v14  ;;  %v1656_v5 = vand.u32 4294901760, %v1630_v63 }
 0x289   : > { %v1109_v20 = vadd.f32 1.0, %v1106_v15  ;;  %v1631_v15 = vld [vmem:[%s5177_s9 + $0x10] sm:$0xff] }
 0x28a   : > { %v1104_v23 = vsub.f32 0.0, %v1098_v16  ;;  %v1096_v26 = vmul.f32 %v4232_v22, %v1081_v21  ;;  %v4505_v6 = vpack.c.bf16 %v1656_v5, %v1653_v0  ;;  %v1634_v22 = vld [vmem:[%s5177_s9 + $0x28] sm:$0xff] }
 0x28b   : > { %v1112_v25 = vmul.f32 %v1109_v20, %v1034_v18  ;;  %v1659_v18 = vand.u32 4294901760, %v1631_v15 }
 0x28c   : > { %v1107_v27 = vsel %vm1101_vm5, %v1098_v16, %v1104_v23  ;;  %v1099_v30 = vsub.f32 1.0, %v1096_v26  ;;  %v1632_v16 = vld [vmem:[%s5177_s9 + $0x18] sm:$0xff]  ;;  %v1635_v26 = vld [vmem:[%s5177_s9 + $0x30] sm:$0xff] }
 0x28d   : > { %v1127_v28 = vand.u32 4294901760, %v1112_v25  ;;  %v1110_v2 = vadd.f32 1.0, %v1107_v27  ;;  %v1662_v20 = vand.u32 4294901760, %v1632_v16  ;;  %v1636_v27 = vld [vmem:[%s5177_s9 + $0x38] sm:$0xff] }
 0x28e   : > { %v1105_v61 = vsub.f32 0.0, %v1099_v30 }
 0x28f   : > { %v1206_v32 = vsub.f32 %v1112_v25, %v1127_v28  ;;  %v1113_v33 = vmul.f32 %v1110_v2, %v1035_v29  ;;  %v4525_v21 = vpack.c.bf16 %v1662_v20, %v1659_v18  ;;  %v1674_v29 = vand.u32 4294901760, %v1636_v27 }
 0x290   : > { %v1108_v36 = vsel %vm1102_vm6, %v1099_v30, %v1105_v61  ;;  %v1637_v30 = vld [vmem:[%s5177_s9 + $0x40] sm:$0xff]  ;;  %v4566_v12 = vsub.f32 %v1632_v16, %v1662_v20 }
 0x291   : > { %v1207_v34 = vand.u32 4294901760, %v1206_v32  ;;  %v1130_v35 = vand.u32 4294901760, %v1113_v33  ;;  %v1111_v38 = vadd.f32 1.0, %v1108_v36 }
 0x293   : > { %v1213_v39 = vsub.f32 %v1113_v33, %v1130_v35  ;;  %v3848_v40 = vpack.c.bf16 %v1130_v35, %v1127_v28  ;;  %v1114_v41 = vmul.f32 %v1111_v38, %v1036_v37  ;;  %v1208_v8 = vsub.f32 %v1206_v32, %v1207_v34  ;;  %v1640_v35 = vld [vmem:[%s5177_s9 + $0x58] sm:$0xff] }
 0x294   : > { %v1671_v28 = vand.u32 4294901760, %v1635_v26  ;;  %v1686_v37 = vand.u32 4294901760, %v1640_v35  ;;  %v4564_v38 = vsub.f32 %v1631_v15, %v1659_v18 }
 0x295   : > { %v1214_v42 = vand.u32 4294901760, %v1213_v39  ;;  %3849 = vmatpush3.bf16.msra.mxu1 %v3848_v40  ;;  %v3854_v43 = vpack.c.bf16 %v1213_v39, %v1206_v32  ;;  %v1133_v44 = vand.u32 4294901760, %v1114_v41  ;;  %v1209_v48 = vand.u32 4294901760, %v1208_v8  ;;  %v1643_v8 = vld [vmem:[%s5177_s9 + $0x70] sm:$0xff] }
 0x296   : > { %3377 = vmatprep.subr.mxu1 %v4247_v1  ;;  %v4545_v2 = vpack.c.bf16 %v1674_v29, %v1671_v28  ;;  %v1677_v32 = vand.u32 4294901760, %v1637_v30 }
 0x297   : > { %v1215_v46 = vsub.f32 %v1213_v39, %v1214_v42  ;;  %v3860_v19 = vpack.c.bf16 %v1214_v42, %v1207_v34  ;;  %v1220_v47 = vsub.f32 %v1114_v41, %v1133_v44  ;;  %v1639_v34 = vld [vmem:[%s5177_s9 + $0x50] sm:$0xff]  ;;  %v1641_v41 = vld [vmem:[%s5177_s9 + $0x60] sm:$0xff]  ;;  %v1642_v42 = vld [vmem:[%s5177_s9 + $0x68] sm:$0xff] }
 0x298   : > { %v1683_v36 = vand.u32 4294901760, %v1639_v34 }
 0x299   : > { %3378 = vmatpush3.msra.mxu1 %v1133_v44  ;;  %v1216_v49 = vand.u32 4294901760, %v1215_v46  ;;  %v1221_v17 = vand.u32 4294901760, %v1220_v47 }
 0x29a   : > { %3380 = vmatmul.mubr.f32.vlgmr.msra.gmra.mrb[6].mxu1 %v1198_v45  ;;  %3850 = vmatprep.subr.bf16.mxu1 %v4250_v51  ;;  %v4586_v45 = vsub.f32 %v1637_v30, %v1677_v32 }
 0x29b   : > { %v3851_v50 = vpack.c.bf16 %v1216_v49, %v1209_v48  ;;  %3388 = vmatprep.mubr.msk.f32.mxu1 %vm4248_vm1, %v4247_v1  ;;  %v1222_v52 = vsub.f32 %v1220_v47, %v1221_v17  ;;  %v4595_v48 = vsub.f32 %v1639_v34, %v1683_v36  ;;  %v4597_v49 = vsub.f32 %v1640_v35, %v1686_v37 }
 0x29d   : > { %3852 = vmatpush3.bf16.msra.mxu1 %v3851_v50  ;;  %v1223_v53 = vand.u32 4294901760, %v1222_v52  ;;  %v1692_v50 = vand.u32 4294901760, %v1642_v42  ;;  %v1695_v52 = vand.u32 4294901760, %v1643_v8 }
 0x29e   : > { %3386 = vmatprep.subr.mxu1 %v4247_v1 }
 0x2a1   : > { %3387 = vmatpush3.msra.mxu1 %v1223_v53 }
 0x2a2   : > { %3389 = vmatmul.mubr.f32.vlgmr.msra.gmra.mrb[6].mxu1 %v4457_v13  ;;  %3853 = vmatprep.subr.bf16.mxu1 %v4250_v51 }
 0x2a3   : > { %3855 = vmatpush3.bf16.msra.mxu1 %v3854_v43  ;;  %3397 = vmatprep.mubr.msk.f32.mxu1 %vm4248_vm1, %v4247_v1  ;;  %v4582_v43 = vsub.f32 %v1635_v26, %v1671_v28 }
 0x2a4   : > { %3395 = vmatprep.subr.mxu1 %v4247_v1 }
 0x2a5   : > { %v1788_v30 = vand.u32 4294901760, %v4582_v43 }
 0x2a7   : > { %3396 = vmatpush3.msra.mxu1 %v1220_v47  ;;  %v4593_v47 = vpack.c.bf16 %v1686_v37, %v1683_v36  ;;  %v1802_v37 = vand.u32 4294901760, %v4586_v45 }
 0x2a8   : > { %3856 = vmatprep.subr.bf16.mxu1 %v4250_v51 }
 0x2aa   : > { %3398 = vmatmul.mubr.f32.vlgmr.msra.gmra.mrb[6].mxu1 %v1195_v24  ;;  %v1668_v24 = vand.u32 4294901760, %v1634_v22 }
 0x2ab   : > { %3858 = vmatpush3.bf16.msra.mxu1 %v3848_v40  ;;  %3406 = vmatprep.mubr.msk.f32.mxu1 %vm4248_vm1, %v4247_v1 }
 0x2ac   : > { %3404 = vmatprep.subr.mxu1 %v4247_v1 }
 0x2af   : > { %3405 = vmatpush3.msra.mxu1 %v1133_v44 }
 0x2b0   : > { %3859 = vmatprep.subr.bf16.mxu1 %v4250_v51 }
 0x2b2   : > { %3407 = vmatmul.mubr.f32.vlgmr.msra.gmra.mrb[6].mxu1 %v1196_v31  ;;  %v1638_v31 = vld [vmem:[%s5177_s9 + $0x48] sm:$0xff] }
 0x2b3   : > { %3861 = vmatpush3.bf16.msra.mxu1 %v3860_v19  ;;  %3415 = vmatprep.mubr.msk.f32.mxu1 %vm4248_vm1, %v4247_v1  ;;  %v1680_v33 = vand.u32 4294901760, %v1638_v31  ;;  %v1644_v19 = vld [vmem:[%s5177_s9 + $0x78] sm:$0xff] }
 0x2b4   : > { %3413 = vmatprep.subr.mxu1 %v4247_v1 }
 0x2b5   : > { %v4555_v61 = vpack.c.bf16 %v1680_v33, %v1677_v32  ;;  %v4588_v46 = vsub.f32 %v1638_v31, %v1680_v33  ;;  %v1789_v33 = vsub.f32 %v4582_v43, %v1788_v30 }
 0x2b7   : > { %3414 = vmatpush3.msra.mxu1 %v1221_v17  ;;  %v1689_v17 = vand.u32 4294901760, %v1641_v41  ;;  %v1790_v35 = vand.u32 4294901760, %v1789_v33 }
 0x2b8   : > { %3862 = vmatprep.subr.bf16.mxu1 %v4250_v51 }
 0x2b9   : > { %v4600_v53 = vsub.f32 %v1641_v41, %v1689_v17  ;;  %v5188_v41 = vand.u32 4294901760, %v4588_v46 }
 0x2ba   : > { %3416 = vmatmul.mubr.f32.vlgmr.msra.gmra.mrb[6].mxu1 %v4457_v13 }
 0x2bb   : > { %3864 = vmatpush3.bf16.msra.mxu1 %v3848_v40  ;;  %3424 = vmatprep.mubr.msk.f32.mxu1 %vm4248_vm1, %v4247_v1  ;;  %v4570_v40 = vsub.f32 %v1634_v22, %v1668_v24 }
 0x2bc   : > { %3422 = vmatprep.subr.mxu1 %v4247_v1 }
 0x2bf   : > { %3423 = vmatpush3.msra.mxu1 %v1133_v44  ;;  %v4584_v44 = vsub.f32 %v1636_v27, %v1674_v29 }
 0x2c0   : > { %3865 = vmatprep.subr.bf16.mxu1 %v4250_v51 }
 0x2c1   : > { %v1795_v31 = vand.u32 4294901760, %v4584_v44 }
 0x2c2   : > { %3425 = vmatmul.mubr.f32.vlgmr.msra.gmra.mrb[6].mxu1 %v4457_v13 }
 0x2c3   : > { %3459 = vmatprep.mubr.msk.f32.mxu1 %vm4248_vm1, %v4247_v1  ;;  %3867 = vmatpush3.bf16.msra.mxu1 %v4505_v6  ;;  %v1796_v34 = vsub.f32 %v4584_v44, %v1795_v31 }
 0x2c4   : > { %3868 = vmatprep.subr.bf16.mxu1 %v4250_v51 }
 0x2c5   : > { %v1797_v36 = vand.u32 4294901760, %v1796_v34 }
 0x2c7   : > { %3870 = vmatpush3.bf16.msra.mxu1 %v4525_v21 }
 0x2c8   : > { %3871 = vmatprep.subr.bf16.mxu1 %v4250_v51 }
 0x395   : > { %v1594_v55 = vpop.f32.mrb[6].mxu1 }
 0x396   : > { %v4159_v56 = vadd.f32 %v1594_v55, %v1120_v54  ;;  %v3426_v57 = vpop.f32.mrb[7].mxu1  ;;  %v1698_v54 = vand.u32 4294901760, %v1644_v19  ;;  %v4603_v55 = vpack.c.bf16 %v1692_v50, %v1689_v17 }
 0x397   : > { %v4607_v57 = vsub.f32 %v1643_v8, %v1695_v52  ;;  %v1803_v8 = vsub.f32 %v4586_v45, %v1802_v37 }
 0x398   : > { %v1598_v58 = vmul.f32 %v4159_v56, %v4340_v3  ;;  %v4605_v56 = vsub.f32 %v1642_v42, %v1692_v50  ;;  %v3899_v42 = vpack.c.bf16 %v1797_v36, %v1790_v35 }
 0x399   : > { %v1804_v17 = vand.u32 4294901760, %v1803_v8  ;;  %v5183_v33 = vand.u32 4294901760, %v4607_v57 }
 0x39a   : > { %v4495_v59 = vadd.f32 %v1598_v58, %v4342_v4  ;;  %v4509_v4 = vsub.f32 %v1630_v63, %v1656_v5  ;;  %v4609_v58 = vsub.f32 %v1644_v19, %v1698_v54  ;;  %v4614_v63 = vpack.c.bf16 %v1698_v54, %v1695_v52 }
 0x39b   : > { %v1810_v19 = vsub.f32 %v4588_v46, %v5188_v41  ;;  %v5187_v52 = vand.u32 4294901760, %v4595_v48  ;;  %v5186_v54 = vand.u32 4294901760, %v4597_v49  ;;  %v1845_v36 = vsub.f32 %v4607_v57, %v5183_v33 }
 0x39c   : > { %v1600_v60 = vmul.f32 %v4340_v3, %v4495_v59  ;;  %v1753_v62 = vand.u32 4294901760, %v4509_v4  ;;  %v5182_v34 = vand.u32 4294901760, %v4609_v58 }
 0x39d   : > { %v1811_v50 = vand.u32 4294901760, %v1810_v19  ;;  %v1846_v19 = vand.u32 4294901760, %v1845_v36 }
 0x39e   : > { %1601 = vadd.xlane.f32.xlu1 %v1600_v60  ;;  %v1746_v60 = vand.u32 4294901760, %v4507_v7  ;;  %v1754_v5 = vsub.f32 %v4509_v4, %v1753_v62  ;;  %v1852_v8 = vsub.f32 %v4609_v58, %v5182_v34  ;;  %v3049_v34 = vld [vmem:[%s5175_s7] ss:$0 sm:$0xff] }
 0x3a0   : > { %v1747_v0 = vsub.f32 %v4507_v7, %v1746_v60 }
 0x42b   : > { %v1602_v9 = vpop.xlane.xlu1 %1601 }
 0x42c   : > { %v1603_v10 = vmul.f32 0.03125, %v1602_v9  ;;  %v1748_v9 = vand.u32 4294901760, %v1747_v0  ;;  %v3902_v0 = vpack.c.bf16 %v1811_v50, %v1804_v17  ;;  %v1853_v17 = vand.u32 4294901760, %v1852_v8 }
 0x42e   : > { %v1604_v11 = vsub.f32 %v4495_v59, %v1603_v10  ;;  %v1755_v10 = vand.u32 4294901760, %v1754_v5  ;;  %v1817_v5 = vsub.f32 %v4595_v48, %v5187_v52  ;;  %v3911_v50 = vpack.c.bf16 %v1853_v17, %v1846_v19 }
 0x430   : > { %v4515_v13 = vmul.f32 %v4340_v3, %v1604_v11  ;;  %v1633_v3 = vld [vmem:[%s5177_s9 + $0x20] sm:$0xff]  ;;  %v1760_v11 = vand.u32 4294901760, %v4564_v38  ;;  %v4627_v15 = vpack.c.bf16 %v1755_v10, %v1748_v9  ;;  %v1824_v9 = vsub.f32 %v4597_v49, %v5186_v54 }
 0x431   : > { %v1665_v23 = vand.u32 4294901760, %v1633_v3  ;;  %v1818_v10 = vand.u32 4294901760, %v1817_v5  ;;  %v3914_v5 = vpack.c.bf16 %v4509_v4, %v4507_v7  ;;  %v3971_v4 = vpack.c.bf16 %v1795_v31, %v1788_v30 }
 0x432   : > { %v1606_v14 = vmul.f32 %v4515_v13, %v4515_v13  ;;  %v1761_v16 = vsub.f32 %v4564_v38, %v1760_v11 }
 0x433   : > { %v4535_v25 = vpack.c.bf16 %v1668_v24, %v1665_v23  ;;  %v4568_v39 = vsub.f32 %v1633_v3, %v1665_v23  ;;  %v1781_v23 = vand.u32 4294901760, %v4570_v40 }
 0x434   : > { %1607 = vadd.xlane.f32.xlu1 %v1606_v14  ;;  %v1767_v14 = vand.u32 4294901760, %v4566_v12  ;;  %v1762_v20 = vand.u32 4294901760, %v1761_v16  ;;  %v1825_v16 = vand.u32 4294901760, %v1824_v9  ;;  %v3917_v9 = vpack.c.bf16 %v4566_v12, %v4564_v38 }
 0x435   : > { %3873 = vmatpush3.bf16.msra.mxu1 %v4535_v25  ;;  %v1774_v22 = vand.u32 4294901760, %v4568_v39  ;;  %v1782_v27 = vsub.f32 %v4570_v40, %v1781_v23  ;;  %v5205_v38 = vand.u32 4294901760, %v4588_v46 }
 0x436   : > { %3874 = vmatprep.subr.bf16.mxu1 %v4250_v51  ;;  %v1768_v18 = vsub.f32 %v4566_v12, %v1767_v14 }
 0x437   : > { %v1775_v26 = vsub.f32 %v4568_v39, %v1774_v22  ;;  %v1783_v29 = vand.u32 4294901760, %v1782_v27  ;;  %v3968_v7 = vpack.c.bf16 %v1781_v23, %v1774_v22  ;;  %v3974_v12 = vpack.c.bf16 %v5205_v38, %v1802_v37  ;;  %v2326_v22 = vld [vmem:[%s5179_s11 + $0x30] sm:$0xff]  ;;  %v2327_v23 = vld [vmem:[%s5179_s11 + $0x38] sm:$0xff]  ;;  %v2329_v37 = vld [vmem:[%s5179_s11 + $0x48] sm:$0xff] }
 0x438   : > { %v1769_v3 = vand.u32 4294901760, %v1768_v18  ;;  %v5185_v18 = vand.u32 4294901760, %v4600_v53  ;;  %v2365_v30 = vand.u32 4294901760, %v2327_v23 }
 0x439   : > { %3876 = vmatpush3.bf16.msra.mxu1 %v4545_v2  ;;  %v1776_v28 = vand.u32 4294901760, %v1775_v26 }
 0x43a   : > { %3877 = vmatprep.subr.bf16.mxu1 %v4250_v51  ;;  %v4637_v24 = vpack.c.bf16 %v1769_v3, %v1762_v20  ;;  %v5184_v20 = vand.u32 4294901760, %v4605_v56  ;;  %v3905_v3 = vpack.c.bf16 %v1825_v16, %v1818_v10  ;;  %v1831_v26 = vsub.f32 %v4600_v53, %v5185_v18 }
 0x43b   : > { %v3896_v32 = vpack.c.bf16 %v1783_v29, %v1776_v28  ;;  %v3920_v10 = vpack.c.bf16 %v4570_v40, %v4568_v39  ;;  %v3923_v16 = vpack.c.bf16 %v4584_v44, %v4582_v43  ;;  %v5206_v39 = vand.u32 4294901760, %v4595_v48 }
 0x43c   : > { %v1838_v27 = vsub.f32 %v4605_v56, %v5184_v20  ;;  %v1832_v28 = vand.u32 4294901760, %v1831_v26  ;;  %v3926_v26 = vpack.c.bf16 %v4588_v46, %v4586_v45  ;;  %v3050_v20 = vld [vmem:[%s5176_s8] ss:$0 sm:$0xff]  ;;  %v5207_v40 = vand.u32 4294901760, %v4597_v49 }
 0x43d   : > { %3879 = vmatpush3.bf16.msra.mxu1 %v4555_v61  ;;  %v5208_v43 = vand.u32 4294901760, %v4600_v53  ;;  %v5209_v44 = vand.u32 4294901760, %v4605_v56  ;;  %v5210_v45 = vand.u32 4294901760, %v4607_v57  ;;  %v5211_v46 = vand.u32 4294901760, %v4609_v58 }
 0x43e   : > { %3880 = vmatprep.subr.bf16.mxu1 %v4250_v51  ;;  %v1839_v29 = vand.u32 4294901760, %v1838_v27  ;;  %v3929_v27 = vpack.c.bf16 %v4597_v49, %v4595_v48  ;;  %v2323_v48 = vld [vmem:[%s5179_s11 + $0x18] sm:$0xff] }
 0x440   : > { %v3908_v35 = vpack.c.bf16 %v1839_v29, %v1832_v28  ;;  %v3932_v28 = vpack.c.bf16 %v4605_v56, %v4600_v53  ;;  %v3935_v29 = vpack.c.bf16 %v4609_v58, %v4607_v57  ;;  %v2353_v53 = vand.u32 4294901760, %v2323_v48  ;;  %v2324_v56 = vld [vmem:[%s5179_s11 + $0x20] sm:$0xff]  ;;  %v2325_v57 = vld [vmem:[%s5179_s11 + $0x28] sm:$0xff] }
 0x441   : > { %3882 = vmatpush3.bf16.msra.mxu1 %v4593_v47  ;;  %v2356_v58 = vand.u32 4294901760, %v2324_v56 }
 0x442   : > { %3883 = vmatprep.subr.bf16.mxu1 %v4250_v51 }
 0x445   : > { %3885 = vmatpush3.bf16.msra.mxu1 %v4603_v55 }
 0x446   : > { %3886 = vmatprep.subr.bf16.mxu1 %v4250_v51 }
 0x449   : > { %3888 = vmatpush3.bf16.msra.mxu1 %v4614_v63 }
 0x44a   : > { %3889 = vmatprep.subr.bf16.mxu1 %v4250_v51 }
 0x4c1   : > { %v1608_v36 = vpop.xlane.xlu1 %1607 }
 0x4c2   : > { %v1609_v8 = vmul.f32 0.03125, %v1608_v36 }
 0x4c4   : > { %v1610_v19 = vadd.f32 1e-05, %v1609_v8 }
 0x4c6   : > { %4233 = vrsqrt.f32 %v1610_v19 }
 0x4d0   : > { %v4234_v17 = vpop.eup %4233 }
 0x4d1   : > { %v1612_v33 = vmul.f32 %v4234_v17, %v4515_v13  ;;  %v3962_v13 = vpack.c.bf16 %v1753_v62, %v1746_v60  ;;  %v3977_v60 = vpack.c.bf16 %v5207_v40, %v5206_v39  ;;  %v3980_v62 = vpack.c.bf16 %v5209_v44, %v5208_v43 }
 0x4d2   : > { %v4911_v39 = vsub.f32 %v2324_v56, %v2356_v58  ;;  %v4917_v43 = vsub.f32 %v2327_v23, %v2365_v30 }
 0x4d3   : > { %v1620_v18 = vmul.f32 %v3049_v34, %v1612_v33  ;;  %v2332_v33 = vld [vmem:[%s5179_s11 + $0x60] sm:$0xff]  ;;  %v2333_v34 = vld [vmem:[%s5179_s11 + $0x68] sm:$0xff] }
 0x4d5   : > { %v1628_v54 = vadd.f32 %v3050_v20, %v1620_v18 }
 0x4d7   : > { %v4708_v52 = vand.u32 4294901760, %v1628_v54 }
 0x4d9   : > { %v1734_v41 = vsub.f32 %v1628_v54, %v4708_v52  ;;  %v2330_v54 = vld [vmem:[%s5179_s11 + $0x50] sm:$0xff] }
 0x4da   : > { %v2374_v18 = vand.u32 4294901760, %v2330_v54 }
 0x4db   : > { %v1735_v36 = vand.u32 4294901760, %v1734_v41 }
 0x4dd   : > { %v1736_v8 = vsub.f32 %v1734_v41, %v1735_v36 }
 0x4df   : > { %v1737_v19 = vand.u32 4294901760, %v1736_v8  ;;  %v4897_v8 = vsub.f32 %v2323_v48, %v2353_v53 }
 0x4e1   : > { %3460 = vmatmul.mubr.f32.vlgmr.msra.gmra.mrb[8].mxu1 %v1737_v19 }
 0x4e2   : > { %3891 = vmatpush3.bf16.msra.mxu1 %v4627_v15  ;;  %3494 = vmatprep.mubr.msk.f32.mxu1 %vm4248_vm1, %v4247_v1  ;;  %v3965_v15 = vpack.c.bf16 %v1767_v14, %v1760_v11  ;;  %v3983_v11 = vpack.c.bf16 %v5211_v46, %v5210_v45  ;;  %v4923_v45 = vsub.f32 %v2330_v54, %v2374_v18 }
 0x4e3   : > { %3892 = vmatprep.subr.bf16.mxu1 %v4250_v51 }
 0x4e6   : > { %3894 = vmatpush3.bf16.msra.mxu1 %v4637_v24  ;;  %v2362_v24 = vand.u32 4294901760, %v2326_v22 }
 0x4e7   : > { %3895 = vmatprep.subr.bf16.mxu1 %v4250_v51 }
 0x4e8   : > { %v4849_v31 = vpack.c.bf16 %v2365_v30, %v2362_v24  ;;  %v5197_v30 = vand.u32 4294901760, %v4917_v43 }
 0x4ea   : > { %3897 = vmatpush3.bf16.msra.mxu1 %v3896_v32  ;;  %v2328_v32 = vld [vmem:[%s5179_s11 + $0x40] sm:$0xff] }
 0x4eb   : > { %3898 = vmatprep.subr.bf16.mxu1 %v4250_v51 }
 0x4ee   : > { %3900 = vmatpush3.bf16.msra.mxu1 %v3899_v42  ;;  %v2371_v42 = vand.u32 4294901760, %v2329_v37 }
 0x4ef   : > { %3901 = vmatprep.subr.bf16.mxu1 %v4250_v51 }
 0x4f2   : > { %3903 = vmatpush3.bf16.msra.mxu1 %v3902_v0  ;;  %v2331_v0 = vld [vmem:[%s5179_s11 + $0x58] sm:$0xff] }
 0x4f3   : > { %3904 = vmatprep.subr.bf16.mxu1 %v4250_v51  ;;  %v2377_v20 = vand.u32 4294901760, %v2331_v0 }
 0x4f5   : > { %v4925_v46 = vsub.f32 %v2331_v0, %v2377_v20 }
 0x4f6   : > { %3906 = vmatpush3.bf16.msra.mxu1 %v3905_v3  ;;  %v4869_v3 = vpack.c.bf16 %v2377_v20, %v2374_v18 }
 0x4f7   : > { %3907 = vmatprep.subr.bf16.mxu1 %v4250_v51 }
 0x4fa   : > { %3909 = vmatpush3.bf16.msra.mxu1 %v3908_v35  ;;  %v2380_v35 = vand.u32 4294901760, %v2332_v33 }
 0x4fb   : > { %3910 = vmatprep.subr.bf16.mxu1 %v4250_v51 }
 0x4fe   : > { %3912 = vmatpush3.bf16.msra.mxu1 %v3911_v50  ;;  %v2383_v50 = vand.u32 4294901760, %v2333_v34 }
 0x4ff   : > { %3913 = vmatprep.subr.bf16.mxu1 %v4250_v51 }
 0x501   : > { %3495 = vmatmul.mubr.f32.vlgmr.msra.gmra.mrb[8].mxu1 %v4708_v52 }
 0x502   : > { %3915 = vmatpush3.bf16.msra.mxu1 %v3914_v5  ;;  %3529 = vmatprep.mubr.msk.f32.mxu1 %vm4248_vm1, %v4247_v1 }
 0x503   : > { %3916 = vmatprep.subr.bf16.mxu1 %v4250_v51 }
 0x506   : > { %3918 = vmatpush3.bf16.msra.mxu1 %v3917_v9 }
 0x507   : > { %3919 = vmatprep.subr.bf16.mxu1 %v4250_v51 }
 0x50a   : > { %3921 = vmatpush3.bf16.msra.mxu1 %v3920_v10  ;;  %v4883_v10 = vpack.c.bf16 %v2383_v50, %v2380_v35 }
 0x50b   : > { %3922 = vmatprep.subr.bf16.mxu1 %v4250_v51 }
 0x50e   : > { %3924 = vmatpush3.bf16.msra.mxu1 %v3923_v16  ;;  %v2334_v16 = vld [vmem:[%s5179_s11 + $0x70] sm:$0xff] }
 0x50f   : > { %3925 = vmatprep.subr.bf16.mxu1 %v4250_v51 }
 0x512   : > { %3927 = vmatpush3.bf16.msra.mxu1 %v3926_v26  ;;  %v2335_v26 = vld [vmem:[%s5179_s11 + $0x78] sm:$0xff] }
 0x513   : > { %3928 = vmatprep.subr.bf16.mxu1 %v4250_v51 }
 0x516   : > { %3930 = vmatpush3.bf16.msra.mxu1 %v3929_v27  ;;  %v2386_v27 = vand.u32 4294901760, %v2334_v16 }
 0x517   : > { %3931 = vmatprep.subr.bf16.mxu1 %v4250_v51 }
 0x51a   : > { %3933 = vmatpush3.bf16.msra.mxu1 %v3932_v28  ;;  %v2389_v28 = vand.u32 4294901760, %v2335_v26 }
 0x51b   : > { %3934 = vmatprep.subr.bf16.mxu1 %v4250_v51 }
 0x51c   : > { %v4899_v19 = vpack.c.bf16 %v2389_v28, %v2386_v27 }
 0x51e   : > { %3936 = vmatpush3.bf16.msra.mxu1 %v3935_v29 }
 0x51f   : > { %3937 = vmatprep.subr.bf16.mxu1 %v4250_v51 }
 0x521   : > { %3530 = vmatmul.mubr.f32.vlgmr.msra.gmra.mrb[8].mxu1 %v1734_v41  ;;  %v2368_v41 = vand.u32 4294901760, %v2328_v32 }
 0x522   : > { %3939 = vmatpush3.bf16.msra.mxu1 %v4505_v6  ;;  %3564 = vmatprep.mubr.msk.f32.mxu1 %vm4248_vm1, %v4247_v1 }
 0x523   : > { %3940 = vmatprep.subr.bf16.mxu1 %v4250_v51  ;;  %v4919_v44 = vsub.f32 %v2328_v32, %v2368_v41 }
 0x525   : > { %v5196_v18 = vand.u32 4294901760, %v4919_v44 }
 0x526   : > { %3942 = vmatpush3.bf16.msra.mxu1 %v4525_v21 }
 0x527   : > { %3943 = vmatprep.subr.bf16.mxu1 %v4250_v51 }
 0x52a   : > { %3945 = vmatpush3.bf16.msra.mxu1 %v4535_v25 }
 0x52b   : > { %3946 = vmatprep.subr.bf16.mxu1 %v4250_v51 }
 0x52e   : > { %3948 = vmatpush3.bf16.msra.mxu1 %v4545_v2 }
 0x52f   : > { %3949 = vmatprep.subr.bf16.mxu1 %v4250_v51 }
 0x532   : > { %3951 = vmatpush3.bf16.msra.mxu1 %v4555_v61 }
 0x533   : > { %3952 = vmatprep.subr.bf16.mxu1 %v4250_v51 }
 0x536   : > { %3954 = vmatpush3.bf16.msra.mxu1 %v4593_v47 }
 0x537   : > { %3955 = vmatprep.subr.bf16.mxu1 %v4250_v51 }
 0x53a   : > { %3957 = vmatpush3.bf16.msra.mxu1 %v4603_v55 }
 0x53b   : > { %3958 = vmatprep.subr.bf16.mxu1 %v4250_v51 }
 0x53e   : > { %3960 = vmatpush3.bf16.msra.mxu1 %v4614_v63 }
 0x53f   : > { %3961 = vmatprep.subr.bf16.mxu1 %v4250_v51 }
 0x541   : > { %3565 = vmatmul.mubr.f32.vlgmr.msra.gmra.mrb[8].mxu1 %v1735_v36 }
 0x542   : > { %3963 = vmatpush3.bf16.msra.mxu1 %v3962_v13  ;;  %3599 = vmatprep.mubr.msk.f32.mxu1 %vm4248_vm1, %v4247_v1 }
 0x543   : > { %3964 = vmatprep.subr.bf16.mxu1 %v4250_v51 }
 0x546   : > { %3966 = vmatpush3.bf16.msra.mxu1 %v3965_v15 }
 0x547   : > { %3967 = vmatprep.subr.bf16.mxu1 %v4250_v51 }
 0x54a   : > { %3969 = vmatpush3.bf16.msra.mxu1 %v3968_v7 }
 0x54b   : > { %3970 = vmatprep.subr.bf16.mxu1 %v4250_v51 }
 0x54e   : > { %3972 = vmatpush3.bf16.msra.mxu1 %v3971_v4 }
 0x54f   : > { %3973 = vmatprep.subr.bf16.mxu1 %v4250_v51 }
 0x552   : > { %3975 = vmatpush3.bf16.msra.mxu1 %v3974_v12  ;;  %v5201_v12 = vand.u32 4294901760, %v4897_v8 }
 0x553   : > { %3976 = vmatprep.subr.bf16.mxu1 %v4250_v51 }
 0x554   : > { %v2459_v48 = vsub.f32 %v4897_v8, %v5201_v12 }
 0x556   : > { %3978 = vmatpush3.bf16.msra.mxu1 %v3977_v60  ;;  %v4915_v60 = vsub.f32 %v2326_v22, %v2362_v24 }
 0x557   : > { %3979 = vmatprep.subr.bf16.mxu1 %v4250_v51 }
 0x558   : > { %v5198_v24 = vand.u32 4294901760, %v4915_v60 }
 0x55a   : > { %3981 = vmatpush3.bf16.msra.mxu1 %v3980_v62  ;;  %v4921_v62 = vsub.f32 %v2329_v37, %v2371_v42  ;;  %v2480_v37 = vsub.f32 %v4915_v60, %v5198_v24 }
 0x55b   : > { %3982 = vmatprep.subr.bf16.mxu1 %v4250_v51 }
 0x55c   : > { %v2481_v54 = vand.u32 4294901760, %v2480_v37  ;;  %v5195_v20 = vand.u32 4294901760, %v4921_v62 }
 0x55e   : > { %3984 = vmatpush3.bf16.msra.mxu1 %v3983_v11  ;;  %v4927_v11 = vsub.f32 %v2332_v33, %v2380_v35  ;;  %v2501_v35 = vsub.f32 %v4921_v62, %v5195_v20 }
 0x55f   : > { %3985 = vmatprep.subr.bf16.mxu1 %v4250_v51 }
 0x561   : > { %3600 = vmatmul.mubr.f32.vlgmr.msra.gmra.mrb[8].mxu1 %v4708_v52 }
 0x562   : > { %3987 = vmatpush3.bf16.msra.mxu1 %v4505_v6  ;;  %3634 = vmatprep.mubr.msk.f32.mxu1 %vm4248_vm1, %v4247_v1  ;;  %v2320_v6 = vld [vmem:[%s5179_s11] sm:$0xff] }
 0x563   : > { %3988 = vmatprep.subr.bf16.mxu1 %v4250_v51 }
 0x566   : > { %3990 = vmatpush3.bf16.msra.mxu1 %v4525_v21  ;;  %v2321_v21 = vld [vmem:[%s5179_s11 + $0x8] sm:$0xff] }
 0x567   : > { %3991 = vmatprep.subr.bf16.mxu1 %v4250_v51 }
 0x56a   : > { %3993 = vmatpush3.bf16.msra.mxu1 %v4535_v25  ;;  %v2344_v25 = vand.u32 4294901760, %v2320_v6 }
 0x56b   : > { %3994 = vmatprep.subr.bf16.mxu1 %v4250_v51 }
 0x56c   : > { %v4879_v5 = vsub.f32 %v2320_v6, %v2344_v25  ;;  %v4929_v6 = vsub.f32 %v2333_v34, %v2383_v50  ;;  %v2494_v34 = vsub.f32 %v4919_v44, %v5196_v18 }
 0x56e   : > { %3996 = vmatpush3.bf16.msra.mxu1 %v4545_v2  ;;  %v2347_v2 = vand.u32 4294901760, %v2321_v21  ;;  %v5204_v29 = vand.u32 4294901760, %v4879_v5  ;;  %v2495_v50 = vand.u32 4294901760, %v2494_v34 }
 0x56f   : > { %3997 = vmatprep.subr.bf16.mxu1 %v4250_v51 }
 0x570   : > { %v4881_v9 = vsub.f32 %v2321_v21, %v2347_v2  ;;  %v2438_v13 = vsub.f32 %v4879_v5, %v5204_v29  ;;  %v4931_v21 = vsub.f32 %v2334_v16, %v2386_v27  ;;  %v2502_v16 = vand.u32 4294901760, %v2501_v35 }
 0x571   : > { %v5193_v27 = vand.u32 4294901760, %v4925_v46 }
 0x572   : > { %3999 = vmatpush3.bf16.msra.mxu1 %v4555_v61  ;;  %v4819_v61 = vpack.c.bf16 %v2347_v2, %v2344_v25  ;;  %v5203_v17 = vand.u32 4294901760, %v4881_v9  ;;  %v2439_v7 = vand.u32 4294901760, %v2438_v13  ;;  %v4933_v25 = vsub.f32 %v2335_v26, %v2389_v28 }
 0x573   : > { %4000 = vmatprep.subr.bf16.mxu1 %v4250_v51  ;;  %v5194_v26 = vand.u32 4294901760, %v4923_v45  ;;  %v4975_v28 = vpack.c.bf16 %v2502_v16, %v2495_v50  ;;  %v4058_v16 = vpack.c.bf16 %v4881_v9, %v4879_v5 }
 0x574   : > { %4011 = vmatpush3.bf16.msra.mxu0 %v4819_v61  ;;  %v2445_v15 = vsub.f32 %v4881_v9, %v5203_v17  ;;  %v5189_v37 = vand.u32 4294901760, %v4933_v25 }
 0x575   : > { %4012 = vmatprep.subr.bf16.mxu0 %v4250_v51  ;;  %v2508_v13 = vsub.f32 %v4923_v45, %v5194_v26 }
 0x576   : > { %4002 = vmatpush3.bf16.msra.mxu1 %v4593_v47  ;;  %v2322_v47 = vld [vmem:[%s5179_s11 + $0x10] sm:$0xff]  ;;  %v2446_v4 = vand.u32 4294901760, %v2445_v15  ;;  %v2515_v15 = vsub.f32 %v4925_v46, %v5193_v27 }
 0x577   : > { %4003 = vmatprep.subr.bf16.mxu1 %v4250_v51  ;;  %v2350_v49 = vand.u32 4294901760, %v2322_v47 }
 0x578   : > { %v4935_v2 = vpack.c.bf16 %v2446_v4, %v2439_v7  ;;  %v2509_v7 = vand.u32 4294901760, %v2508_v13  ;;  %v2516_v4 = vand.u32 4294901760, %v2515_v15 }
 0x579   : > { %v4895_v36 = vsub.f32 %v2322_v47, %v2350_v49 }
 0x57a   : > { %4005 = vmatpush3.bf16.msra.mxu1 %v4603_v55  ;;  %v4829_v55 = vpack.c.bf16 %v2353_v53, %v2350_v49  ;;  %v5200_v49 = vand.u32 4294901760, %v4911_v39 }
 0x57b   : > { %4006 = vmatprep.subr.bf16.mxu1 %v4250_v51  ;;  %v5202_v38 = vand.u32 4294901760, %v4895_v36  ;;  %v4061_v13 = vpack.c.bf16 %v4897_v8, %v4895_v36 }
 0x57c   : > { %4014 = vmatpush3.bf16.msra.mxu0 %v4829_v55 }
 0x57d   : > { %4015 = vmatprep.subr.bf16.mxu0 %v4250_v51  ;;  %v2452_v47 = vsub.f32 %v4895_v36, %v5202_v38 }
 0x57e   : > { %4008 = vmatpush3.bf16.msra.mxu1 %v4614_v63  ;;  %v2359_v63 = vand.u32 4294901760, %v2325_v57 }
 0x57f   : > { %v2453_v56 = vand.u32 4294901760, %v2452_v47  ;;  %v5192_v47 = vand.u32 4294901760, %v4927_v11 }
 0x580   : > { %v4839_v14 = vpack.c.bf16 %v2359_v63, %v2356_v58  ;;  %v4913_v40 = vsub.f32 %v2325_v57, %v2359_v63  ;;  %v2460_v57 = vand.u32 4294901760, %v2459_v48  ;;  %v2466_v58 = vsub.f32 %v4911_v39, %v5200_v49 }
 0x581   : > { %3635 = vmatmul.mubr.f32.vlgmr.msra.gmra.mrb[8].mxu1 %v4708_v52  ;;  %v4859_v52 = vpack.c.bf16 %v2371_v42, %v2368_v41  ;;  %v2487_v41 = vsub.f32 %v4917_v43, %v5197_v30  ;;  %v5191_v48 = vand.u32 4294901760, %v4929_v6 }
 0x582   : > { %4017 = vmatpush3.bf16.msra.mxu0 %v4839_v14  ;;  %v5199_v53 = vand.u32 4294901760, %v4913_v40  ;;  %v4951_v22 = vpack.c.bf16 %v2460_v57, %v2453_v56  ;;  %v2467_v23 = vand.u32 4294901760, %v2466_v58  ;;  %v4985_v56 = vpack.c.bf16 %v2516_v4, %v2509_v7 }
 0x583   : > { %4018 = vmatprep.subr.bf16.mxu0 %v4250_v51  ;;  %v2488_v0 = vand.u32 4294901760, %v2487_v41  ;;  %v2522_v57 = vsub.f32 %v4927_v11, %v5192_v47  ;;  %v2529_v58 = vsub.f32 %v4929_v6, %v5191_v48  ;;  %v4064_v15 = vpack.c.bf16 %v4913_v40, %v4911_v39 }
 0x584   : > { %v2473_v63 = vsub.f32 %v4913_v40, %v5199_v53  ;;  %v4067_v7 = vpack.c.bf16 %v4917_v43, %v4915_v60  ;;  %v4070_v4 = vpack.c.bf16 %v4921_v62, %v4919_v44 }
 0x585   : > { %v4965_v33 = vpack.c.bf16 %v2488_v0, %v2481_v54  ;;  %v2543_v0 = vsub.f32 %v4933_v25, %v5189_v37 }
 0x586   : > { %4020 = vmatpush3.bf16.msra.mxu0 %v4849_v31  ;;  %v2474_v32 = vand.u32 4294901760, %v2473_v63  ;;  %v2523_v63 = vand.u32 4294901760, %v2522_v57  ;;  %v4073_v57 = vpack.c.bf16 %v4925_v46, %v4923_v45 }
 0x587   : > { %4021 = vmatprep.subr.bf16.mxu0 %v4250_v51  ;;  %v2544_v35 = vand.u32 4294901760, %v2543_v0 }
 0x588   : > { %v4961_v42 = vpack.c.bf16 %v2474_v32, %v2467_v23  ;;  %v2530_v23 = vand.u32 4294901760, %v2529_v58  ;;  %v5190_v32 = vand.u32 4294901760, %v4931_v21 }
 0x58a   : > { %4023 = vmatpush3.bf16.msra.mxu0 %v4859_v52  ;;  %v4995_v41 = vpack.c.bf16 %v2530_v23, %v2523_v63  ;;  %v2536_v54 = vsub.f32 %v4931_v21, %v5190_v32  ;;  %v3051_v23 = vld [vmem:[%s5178_s10] ss:$0 sm:$0xff] }
 0x58b   : > { %4024 = vmatprep.subr.bf16.mxu0 %v4250_v51 }
 0x58c   : > { %v2537_v34 = vand.u32 4294901760, %v2536_v54 }
 0x58e   : > { %4026 = vmatpush3.bf16.msra.mxu0 %v4869_v3  ;;  %v4055_v50 = vpack.c.bf16 %v2544_v35, %v2537_v34 }
 0x58f   : > { %4027 = vmatprep.subr.bf16.mxu0 %v4250_v51 }
 0x592   : > { %4029 = vmatpush3.bf16.msra.mxu0 %v4883_v10 }
 0x593   : > { %4030 = vmatprep.subr.bf16.mxu0 %v4250_v51 }
 0x596   : > { %4032 = vmatpush3.bf16.msra.mxu0 %v4899_v19 }
 0x597   : > { %4033 = vmatprep.subr.bf16.mxu0 %v4250_v51 }
 0x654   : > { %v2289_v54 = vpop.f32.mrb[8].mxu1 }
 0x655   : > { %v4160_v0 = vadd.f32 %v3051_v23, %v2289_v54  ;;  %v3636_v34 = vpop.f32.mrb[9].mxu1 }
 0x657   : > { %v2294_v35 = vmul.f32 0.70710677, %v4160_v0 }
 0x659   : > { %v2295_v37 = vand.u32 2147483647, %v2294_v35  ;;  %vm2315_vm7 = vcmp.ge.f32.partialorder %v2294_v35, 0.0 }
 0x65b   : > { %v2296_v32 = vmul.f32 0.3275911, %v2295_v37  ;;  %v2309_v47 = vsub.f32 0.0, %v2295_v37 }
 0x65d   : > { %v2297_v48 = vadd.f32 1.0, %v2296_v32  ;;  %v2310_v26 = vmul.f32 %v2309_v47, %v2295_v37  ;;  %v2293_v32 = vmul.f32 0.5, %v4160_v0 }
 0x65f   : > { %4235 = vrcp.f32 %v2297_v48  ;;  %v2311_v30 = vmul.f32 1.442695, %v2310_v26  ;;  %v5222_v26 = vand.u32 4294901760, %v4919_v44  ;;  %v5228_v44 = vand.u32 4294901760, %v4931_v21 }
 0x661   : > { %4237 = vpow2.f32 %v2311_v30 }
 0x669   : > { %v4236_v27 = vpop.eup %4235 }
 0x66a   : > { %v2300_v20 = vmul.f32 1.0614054, %v4236_v27 }
 0x66b   : > { %v4238_v54 = vpop.eup %4237 }
 0x66c   : > { %v2301_v18 = vadd.f32 -1.4531521, %v2300_v20 }
 0x66e   : > { %v2302_v24 = vmul.f32 %v4236_v27, %v2301_v18 }
 0x670   : > { %v2303_v53 = vadd.f32 1.4214138, %v2302_v24 }
 0x672   : > { %v2304_v49 = vmul.f32 %v4236_v27, %v2303_v53 }
 0x674   : > { %v2305_v12 = vadd.f32 -0.28449672, %v2304_v49  ;;  %v5216_v49 = vand.u32 4294901760, %v4895_v36  ;;  %v5221_v36 = vand.u32 4294901760, %v4917_v43  ;;  %v5227_v43 = vand.u32 4294901760, %v4929_v6 }
 0x676   : > { %v2306_v38 = vmul.f32 %v4236_v27, %v2305_v12  ;;  %v5215_v12 = vand.u32 4294901760, %v4881_v9  ;;  %v5219_v9 = vand.u32 4294901760, %v4913_v40  ;;  %v5225_v40 = vand.u32 4294901760, %v4925_v46 }
 0x678   : > { %v2307_v17 = vadd.f32 0.2548296, %v2306_v38  ;;  %v5214_v38 = vand.u32 4294901760, %v4879_v5  ;;  %v5218_v5 = vand.u32 4294901760, %v4911_v39  ;;  %v5224_v39 = vand.u32 4294901760, %v4923_v45 }
 0x67a   : > { %v2308_v23 = vmul.f32 %v4236_v27, %v2307_v17  ;;  %v5213_v17 = vpack.c.bf16 %v4933_v25, %v4931_v21  ;;  %v4112_v20 = vpack.c.bf16 %v5219_v9, %v5218_v5  ;;  %v5223_v27 = vand.u32 4294901760, %v4921_v62 }
 0x67b   : > { %v5229_v62 = vand.u32 4294901760, %v4933_v25 }
 0x67c   : > { %v2313_v34 = vmul.f32 %v4238_v54, %v2308_v23 }
 0x67e   : > { %v2314_v29 = vsub.f32 1.0, %v2313_v34 }
 0x680   : > { %v2316_v63 = vsub.f32 0.0, %v2314_v29 }
 0x682   : > { %v2317_v48 = vsel %vm2315_vm7, %v2314_v29, %v2316_v63  ;;  %v5212_v29 = vpack.c.bf16 %v4929_v6, %v4927_v11 }
 0x683   : > { %v2318_v58 = vadd.f32 1.0, %v2317_v48 }
 0x685   : > { %v2319_v47 = vmul.f32 %v2318_v58, %v2293_v32 }
 0x687   : > { %v5022_v37 = vand.u32 4294901760, %v2319_v47 }
 0x689   : > { %v2425_v18 = vsub.f32 %v2319_v47, %v5022_v37 }
 0x68b   : > { %v2426_v24 = vand.u32 4294901760, %v2425_v18 }
 0x68d   : > { %v2427_v30 = vsub.f32 %v2425_v18, %v2426_v24 }
 0x68f   : > { %v2428_v53 = vand.u32 4294901760, %v2427_v30 }
 0x691   : > { %3670 = vmatmul.mubr.f32.vlgmr.msra.gmra.mrb[6].mxu0 %v2428_v53 }
 0x692   : > { %4035 = vmatpush3.bf16.msra.mxu0 %v4935_v2  ;;  %3704 = vmatprep.mubr.msk.f32.mxu0 %vm4248_vm1, %v4247_v1  ;;  %v4106_v2 = vpack.c.bf16 %v5215_v12, %v5214_v38 }
 0x693   : > { %4036 = vmatprep.subr.bf16.mxu0 %v4250_v51 }
 0x696   : > { %4038 = vmatpush3.bf16.msra.mxu0 %v4951_v22  ;;  %v5217_v22 = vand.u32 4294901760, %v4897_v8 }
 0x697   : > { %4039 = vmatprep.subr.bf16.mxu0 %v4250_v51 }
 0x69a   : > { %4041 = vmatpush3.bf16.msra.mxu0 %v4961_v42  ;;  %v4109_v42 = vpack.c.bf16 %v5217_v22, %v5216_v49 }
 0x69b   : > { %4042 = vmatprep.subr.bf16.mxu0 %v4250_v51 }
 0x69e   : > { %4044 = vmatpush3.bf16.msra.mxu0 %v4965_v33  ;;  %v5220_v33 = vand.u32 4294901760, %v4915_v60  ;;  %v5226_v60 = vand.u32 4294901760, %v4927_v11 }
 0x69f   : > { %4045 = vmatprep.subr.bf16.mxu0 %v4250_v51 }
 0x6a0   : > { %v4115_v8 = vpack.c.bf16 %v5221_v36, %v5220_v33 }
 0x6a2   : > { %4047 = vmatpush3.bf16.msra.mxu0 %v4975_v28  ;;  %v4118_v28 = vpack.c.bf16 %v5223_v27, %v5222_v26 }
 0x6a3   : > { %4048 = vmatprep.subr.bf16.mxu0 %v4250_v51 }
 0x6a6   : > { %4050 = vmatpush3.bf16.msra.mxu0 %v4985_v56  ;;  %v4121_v56 = vpack.c.bf16 %v5225_v40, %v5224_v39 }
 0x6a7   : > { %4051 = vmatprep.subr.bf16.mxu0 %v4250_v51 }
 0x6aa   : > { %4053 = vmatpush3.bf16.msra.mxu0 %v4995_v41  ;;  %v4124_v41 = vpack.c.bf16 %v5227_v43, %v5226_v60 }
 0x6ab   : > { %4054 = vmatprep.subr.bf16.mxu0 %v4250_v51 }
 0x6ae   : > { %4056 = vmatpush3.bf16.msra.mxu0 %v4055_v50  ;;  %v4127_v50 = vpack.c.bf16 %v5229_v62, %v5228_v44 }
 0x6af   : > { %4057 = vmatprep.subr.bf16.mxu0 %v4250_v51 }
 0x6b1   : > { %3705 = vmatmul.mubr.f32.vlgmr.msra.gmra.mrb[8].mxu0 %v5022_v37 }
 0x6b2   : > { %4059 = vmatpush3.bf16.msra.mxu0 %v4058_v16  ;;  %3739 = vmatprep.mubr.msk.f32.mxu0 %vm4248_vm1, %v4247_v1 }
 0x6b3   : > { %4060 = vmatprep.subr.bf16.mxu0 %v4250_v51 }
 0x6b6   : > { %4062 = vmatpush3.bf16.msra.mxu0 %v4061_v13 }
 0x6b7   : > { %4063 = vmatprep.subr.bf16.mxu0 %v4250_v51 }
 0x6ba   : > { %4065 = vmatpush3.bf16.msra.mxu0 %v4064_v15 }
 0x6bb   : > { %4066 = vmatprep.subr.bf16.mxu0 %v4250_v51 }
 0x6be   : > { %4068 = vmatpush3.bf16.msra.mxu0 %v4067_v7 }
 0x6bf   : > { %4069 = vmatprep.subr.bf16.mxu0 %v4250_v51 }
 0x6c2   : > { %4071 = vmatpush3.bf16.msra.mxu0 %v4070_v4 }
 0x6c3   : > { %4072 = vmatprep.subr.bf16.mxu0 %v4250_v51 }
 0x6c6   : > { %4074 = vmatpush3.bf16.msra.mxu0 %v4073_v57 }
 0x6c7   : > { %4075 = vmatprep.subr.bf16.mxu0 %v4250_v51 }
 0x6ca   : > { %4077 = vmatpush3.bf16.msra.mxu0 %v5212_v29 }
 0x6cb   : > { %4078 = vmatprep.subr.bf16.mxu0 %v4250_v51 }
 0x6ce   : > { %4080 = vmatpush3.bf16.msra.mxu0 %v5213_v17 }
 0x6cf   : > { %4081 = vmatprep.subr.bf16.mxu0 %v4250_v51 }
 0x6d1   : > { %3740 = vmatmul.mubr.f32.vlgmr.msra.gmra.mrb[10].mxu0 %v2425_v18 }
 0x6d2   : > { %4083 = vmatpush3.bf16.msra.mxu0 %v4819_v61  ;;  %3774 = vmatprep.mubr.msk.f32.mxu0 %vm4248_vm1, %v4247_v1 }
 0x6d3   : > { %4084 = vmatprep.subr.bf16.mxu0 %v4250_v51 }
 0x6d6   : > { %4086 = vmatpush3.bf16.msra.mxu0 %v4829_v55 }
 0x6d7   : > { %4087 = vmatprep.subr.bf16.mxu0 %v4250_v51 }
 0x6da   : > { %4089 = vmatpush3.bf16.msra.mxu0 %v4839_v14 }
 0x6db   : > { %4090 = vmatprep.subr.bf16.mxu0 %v4250_v51 }
 0x6de   : > { %4092 = vmatpush3.bf16.msra.mxu0 %v4849_v31 }
 0x6df   : > { %4093 = vmatprep.subr.bf16.mxu0 %v4250_v51 }
 0x6e2   : > { %4095 = vmatpush3.bf16.msra.mxu0 %v4859_v52 }
 0x6e3   : > { %4096 = vmatprep.subr.bf16.mxu0 %v4250_v51 }
 0x6e6   : > { %4098 = vmatpush3.bf16.msra.mxu0 %v4869_v3 }
 0x6e7   : > { %4099 = vmatprep.subr.bf16.mxu0 %v4250_v51 }
 0x6ea   : > { %4101 = vmatpush3.bf16.msra.mxu0 %v4883_v10 }
 0x6eb   : > { %4102 = vmatprep.subr.bf16.mxu0 %v4250_v51 }
 0x6ee   : > { %4104 = vmatpush3.bf16.msra.mxu0 %v4899_v19 }
 0x6ef   : > { %4105 = vmatprep.subr.bf16.mxu0 %v4250_v51 }
 0x6f1   : > { %3775 = vmatmul.mubr.f32.vlgmr.msra.gmra.mrb[12].mxu0 %v2426_v24 }
 0x6f2   : > { %4107 = vmatpush3.bf16.msra.mxu0 %v4106_v2  ;;  %3809 = vmatprep.mubr.msk.f32.mxu0 %vm4248_vm1, %v4247_v1 }
 0x6f3   : > { %4108 = vmatprep.subr.bf16.mxu0 %v4250_v51 }
 0x6f6   : > { %4110 = vmatpush3.bf16.msra.mxu0 %v4109_v42 }
 0x6f7   : > { %4111 = vmatprep.subr.bf16.mxu0 %v4250_v51 }
 0x6fa   : > { %4113 = vmatpush3.bf16.msra.mxu0 %v4112_v20 }
 0x6fb   : > { %4114 = vmatprep.subr.bf16.mxu0 %v4250_v51 }
 0x6fe   : > { %4116 = vmatpush3.bf16.msra.mxu0 %v4115_v8 }
 0x6ff   : > { %4117 = vmatprep.subr.bf16.mxu0 %v4250_v51 }
 0x702   : > { %4119 = vmatpush3.bf16.msra.mxu0 %v4118_v28 }
 0x703   : > { %4120 = vmatprep.subr.bf16.mxu0 %v4250_v51 }
 0x706   : > { %4122 = vmatpush3.bf16.msra.mxu0 %v4121_v56 }
 0x707   : > { %4123 = vmatprep.subr.bf16.mxu0 %v4250_v51 }
 0x70a   : > { %4125 = vmatpush3.bf16.msra.mxu0 %v4124_v41 }
 0x70b   : > { %4126 = vmatprep.subr.bf16.mxu0 %v4250_v51 }
 0x70e   : > { %4128 = vmatpush3.bf16.msra.mxu0 %v4127_v50 }
 0x70f   : > { %4129 = vmatprep.subr.bf16.mxu0 %v4250_v51 }
 0x711   : > { %3810 = vmatmul.mubr.f32.vlgmr.msra.gmra.mrb[14].mxu0 %v5022_v37 }
 0x712   : > { %4131 = vmatpush3.bf16.msra.mxu0 %v4819_v61  ;;  %3844 = vmatprep.mubr.msk.f32.mxu0 %vm4248_vm1, %v4247_v1 }
 0x713   : > { %4132 = vmatprep.subr.bf16.mxu0 %v4250_v51 }
 0x716   : > { %4134 = vmatpush3.bf16.msra.mxu0 %v4829_v55  ;;  %v3052_v55 = vld [vmem:[%s5180_s12] ss:$0 sm:$0xff] }
 0x717   : > { %4135 = vmatprep.subr.bf16.mxu0 %v4250_v51 }
 0x71a   : > { %4137 = vmatpush3.bf16.msra.mxu0 %v4839_v14 }
 0x71b   : > { %4138 = vmatprep.subr.bf16.mxu0 %v4250_v51 }
 0x71e   : > { %4140 = vmatpush3.bf16.msra.mxu0 %v4849_v31 }
 0x71f   : > { %4141 = vmatprep.subr.bf16.mxu0 %v4250_v51 }
 0x722   : > { %4143 = vmatpush3.bf16.msra.mxu0 %v4859_v52 }
 0x723   : > { %4144 = vmatprep.subr.bf16.mxu0 %v4250_v51 }
 0x726   : > { %4146 = vmatpush3.bf16.msra.mxu0 %v4869_v3 }
 0x727   : > { %4147 = vmatprep.subr.bf16.mxu0 %v4250_v51 }
 0x72a   : > { %4149 = vmatpush3.bf16.msra.mxu0 %v4883_v10 }
 0x72b   : > { %4150 = vmatprep.subr.bf16.mxu0 %v4250_v51 }
 0x72e   : > { %4152 = vmatpush3.bf16.msra.mxu0 %v4899_v19 }
 0x731   : > { %3845 = vmatmul.mubr.f32.vlgmr.msra.gmra.mrb[16].mxu0 %v5022_v37 }
 0x764   : > { %v2430_v1 = vpop.f32.mrb[6].mxu0 }
 0x765   : > { %v3671_v61 = vpop.f32.mrb[7].mxu0  ;;  %v2431_v14 = vadd.f32 %v3052_v55, %v2430_v1 }
 0x784   : > { %v2581_v31 = vpop.f32.mrb[8].mxu0 }
 0x785   : > { %v2582_v52 = vadd.f32 %v2581_v31, %v2431_v14  ;;  %v3706_v3 = vpop.f32.mrb[9].mxu0 }
 0x7a4   : > { %v2685_v45 = vpop.f32.mrb[10].mxu0 }
 0x7a5   : > { %v2686_v46 = vadd.f32 %v2685_v45, %v2582_v52  ;;  %v3741_v10 = vpop.f32.mrb[11].mxu0 }
 0x7c4   : > { %v2774_v11 = vpop.f32.mrb[12].mxu0 }
 0x7c5   : > { %v2775_v51 = vadd.f32 %v2774_v11, %v2686_v46  ;;  %v3776_v6 = vpop.f32.mrb[13].mxu0 }
 0x7e4   : > { %v2893_v19 = vpop.f32.mrb[14].mxu0 }
 0x7e5   : > { %v2894_v21 = vadd.f32 %v2893_v19, %v2775_v51  ;;  %v3811_v25 = vpop.f32.mrb[15].mxu0 }
 0x804   : > { %v2980_v16 = vpop.f32.mrb[16].mxu0 }
 0x805   : > { %v2981_v13 = vadd.f32 %v2980_v16, %v2894_v21  ;;  %v3846_v15 = vpop.f32.mrb[17].mxu0 }
 0x807   : > { %v2984_v7 = vadd.f32 %v2981_v13, %v4495_v59 }
 0x809   : > { %2985 = vst [vmem:[%s435_s24] sm:$0xff] %v2984_v7 }
 0x80a PF: > { %s23_s25 = sadd.s32 1, %s4245_s25  }
 0x80b   : > { %p20_p4 = scmp.ge.s32.totalorder %s23_s25, 4  }
 0x80d   :  { %22 = sbr.rel (!%p20_p4) target bundleno = 1 (0x1), region = 102 }

// kernel: _lambda_.2
= control target key start
LH: loop header
LB: loop body
LE: loop exit
PB: predicated region body
PF: predicated region fallthrough
CT: control target
= control target key end

     0   :  { %18 = vsyncpa [#allocation3], 0  ;;  %s5689_s0 = inlined_call_operand.vmem [shape: f32[2,8,128], index: 0, kind: input, shape index: {}]   ;;  %s5690_s1 = inlined_call_operand.hbm [shape: f32[1,128], index: 1, kind: input, shape index: {}]   ;;  %s5691_s2 = inlined_call_operand.hbm [shape: f32[1,128], index: 2, kind: input, shape index: {}]   ;;  %s5692_s3 = inlined_call_operand.vmem [shape: f32[24,8], index: 3, kind: input, shape index: {}]   ;;  %s5693_s4 = inlined_call_operand.vmem [shape: f32[24,1], index: 4, kind: input, shape index: {}]   ;;  %s5694_s5 = inlined_call_operand.hbm [shape: f32[8,24], index: 5, kind: input, shape index: {}]   ;;  %s5695_s6 = inlined_call_operand.hbm [shape: f32[8,1], index: 6, kind: input, shape index: {}]   ;;  %s5696_s7 = inlined_call_operand.hbm [shape: f32[1,128], index: 7, kind: input, shape index: {}]   ;;  %s5697_s8 = inlined_call_operand.vmem [shape: f32[1,128], index: 8, kind: input, shape index: {}]   ;;  %s5698_s9 = inlined_call_operand.hbm [shape: f32[128,128], index: 9, kind: input, shape index: {}]   ;;  %s5699_s10 = inlined_call_operand.vmem [shape: f32[1,128], index: 10, kind: input, shape index: {}]   ;;  %s5700_s11 = inlined_call_operand.vmem [shape: f32[128,128], index: 11, kind: input, shape index: {}]   ;;  %s5701_s12 = inlined_call_operand.vmem [shape: f32[1,128], index: 12, kind: input, shape index: {}]   ;;  %s5702_s13 = inlined_call_operand.vmem [shape: f32[2,8,128], index: 13, kind: output, shape index: {}]  }
   0x1   :  { %19 = vsyncpa [#allocation5], 0 }
   0x2   :  { %20 = vsyncpa [#allocation8], 0 }
   0x3   :  { %21 = vsyncpa [#allocation11], 0  ;;  %s4726_s25 = smov 0  }
   0x4 LB: > { %5732 = sst [smem:[#allocation16_spill]] %s4642_s25  ;;  %s4644_s26 = smov [#allocation4]   ;;  %s4642_s25 = sphi %s4726_s25, %s27_s25  }
   0x5   : > { %s360_s27 = sshll.u32 %s4644_s26, 4  ;;  %s4732_s28 = sadd.s32 4294967295, %s4642_s25   ;;  %s4737_s27 = int_to_ptr.vmem [resolvable:$true] %s360_s27 }
   0x6   : > { %p3179_p0 = scmp.ge.s32.totalorder %s4642_s25, 1  ;;  %p336_p1 = scmp.lt.s32.totalorder %s4642_s25, 3 }
   0x7   : > { %p5704_p2 = scmp.eq.s32.totalorder %s4732_s28, 0  ;;  %s4645_s30 = smov [#allocation7]  }
   0x8   : > { %p4739_p3 = pnand %p3179_p0, %p336_p1  ;;  %s388_s14 = sshll.u32 %s4645_s30, 4  ;;  %s4745_s14 = int_to_ptr.vmem [resolvable:$true] %s388_s14 }
   0x9   : > { %s4646_s15 = smov [#allocation2]   ;;  %s4647_s18 = smov [#allocation6]  }
   0xa   : > { %s5733_s29 = scalar_select %p4739_p3, 1, 0 }
   0xb   : > { %p4379_p4 = pneg %p4739_p3  ;;  %s349_s16 = sshll.u32 %s4646_s15, 4  ;;  %s4753_s16 = int_to_ptr.vmem [resolvable:$true] %s349_s16 }
   0xc   : > { %s377_s19 = sshll.u32 %s4647_s18, 4  ;;  %s4452_s22 = scalar_lea.hbm %s5691_s2, 16  ;;  %s4755_s19 = int_to_ptr.vmem [resolvable:$true] %s377_s19 }
   0xd   : > { %p4749_p5 = pnand %p5704_p2, %p4379_p4  ;;  %p4453_p6 = scmp.ne.s32.totalorder %s5691_s2, %s4452_s22 }
   0xe   : > { %p4459_p10 = scmp.lt.u32.totalorder %s4452_s22, %s5691_s2 }
   0xf   : > { %p4765_p7 = pneg %p4749_p5 }
  0x11   : > { %p4455_p8 = pnand %p4765_p7, %p4453_p6 }
  0x13   : > { %p4456_p9 = pneg %p4455_p8 }
  0x15   : > { %p4461_p11 = pnand %p4459_p10, %p4456_p9 }
  0x17   : > { %4464 = shalt.err (!%p4461_p11)
}
  0x18   : > { %s4465_s18 = scalar_lea.vmem %s4737_s27, 16  ;;  %s4472_s20 = scalar_lea.vmem %s4737_s27, 32 }
  0x19   : > { %p4466_p12 = scmp.ne.s32.totalorder %s4737_s27, %s4465_s18  ;;  %p4473_p1 = scmp.lt.s32.totalorder %s4737_s27, %s4737_s27 }
  0x1a   : > { %p4474_p4 = scmp.lt.s32.totalorder %s4472_s20, %s4465_s18 }
  0x1b   : > { %p4468_p13 = pnand %p4466_p12, %p4765_p7 }
  0x1c   : > { %p4475_p6 = por %p4474_p4, %p4473_p1 }
  0x1d   : > { %p4469_p0 = pneg %p4468_p13 }
  0x1f   : > { %p4476_p8 = pnand %p4475_p6, %p4469_p0 }
  0x21   : > { %4479 = shalt.err (!%p4476_p8)
}
  0x22   : > { %4385 = dma.hbm_to_vmem [thread:$0]  (!%p4749_p5), %s5691_s2, 16, %s4737_s27, [#allocation5]  }
  0x23   : > { %s4480_s30 = scalar_lea.hbm %s5695_s6, 128 }
  0x24   : > { %p4481_p9 = scmp.ne.s32.totalorder %s5695_s6, %s4480_s30  ;;  %p4487_p12 = scmp.lt.u32.totalorder %s4480_s30, %s5695_s6 }
  0x26   : > { %p4483_p10 = pnand %p4481_p9, %p4765_p7 }
  0x28   : > { %p4484_p11 = pneg %p4483_p10 }
  0x2a   : > { %p4489_p13 = pnand %p4487_p12, %p4484_p11 }
  0x2c   : > { %4492 = shalt.err (!%p4489_p13)
}
  0x2d   : > { %s4493_s27 = scalar_lea.vmem %s4745_s14, 128  ;;  %p4501_p6 = scmp.lt.s32.totalorder %s4745_s14, %s4745_s14 }
  0x2e   : > { %p4494_p0 = scmp.ne.s32.totalorder %s4745_s14, %s4493_s27  ;;  %p4502_p8 = scmp.lt.s32.totalorder %s4493_s27, %s4493_s27 }
  0x30   : > { %p4496_p1 = pnand %p4494_p0, %p4765_p7  ;;  %p4503_p9 = por %p4502_p8, %p4501_p6 }
  0x32   : > { %p4497_p4 = pneg %p4496_p1 }
  0x34   : > { %p4504_p10 = pnand %p4503_p9, %p4497_p4 }
  0x36   : > { %4507 = shalt.err (!%p4504_p10)
}
  0x37   : > { %4391 = dma.hbm_to_vmem [thread:$0]  (!%p4749_p5), %s5695_s6, 128, %s4745_s14, [#allocation8]  }
  0x38   : > { %s4508_s24 = scalar_lea.hbm %s5690_s1, 16 }
  0x39   : > { %p4509_p11 = scmp.ne.s32.totalorder %s5690_s1, %s4508_s24  ;;  %p4515_p0 = scmp.lt.u32.totalorder %s4508_s24, %s5690_s1 }
  0x3b   : > { %p4511_p12 = pnand %p4509_p11, %p4765_p7 }
  0x3d   : > { %p4512_p13 = pneg %p4511_p12 }
  0x3f   : > { %p4517_p1 = pnand %p4515_p0, %p4512_p13 }
  0x41   : > { %4520 = shalt.err (!%p4517_p1)
}
  0x42   : > { %s4521_s14 = scalar_lea.vmem %s4753_s16, 16  ;;  %s4528_s27 = scalar_lea.vmem %s4753_s16, 32 }
  0x43   : > { %p4522_p4 = scmp.ne.s32.totalorder %s4753_s16, %s4521_s14  ;;  %p4529_p9 = scmp.lt.s32.totalorder %s4753_s16, %s4753_s16 }
  0x44   : > { %p4530_p10 = scmp.lt.s32.totalorder %s4528_s27, %s4521_s14 }
  0x45   : > { %p4524_p6 = pnand %p4522_p4, %p4765_p7 }
  0x46   : > { %p4531_p11 = por %p4530_p10, %p4529_p9 }
  0x47   : > { %p4525_p8 = pneg %p4524_p6 }
  0x49   : > { %p4532_p12 = pnand %p4531_p11, %p4525_p8 }
  0x4b   : > { %4535 = shalt.err (!%p4532_p12)
}
  0x4c   : > { %4382 = dma.hbm_to_vmem [thread:$0]  (!%p4749_p5), %s5690_s1, 16, %s4753_s16, [#allocation3]  }
  0x4d   : > { %s4536_s24 = scalar_lea.hbm %s5694_s5, 128 }
  0x4e   : > { %p4537_p13 = scmp.ne.s32.totalorder %s5694_s5, %s4536_s24  ;;  %p4543_p4 = scmp.lt.u32.totalorder %s4536_s24, %s5694_s5 }
  0x50   : > { %p4539_p0 = pnand %p4537_p13, %p4765_p7 }
  0x52   : > { %p4540_p1 = pneg %p4539_p0 }
  0x54   : > { %p4545_p6 = pnand %p4543_p4, %p4540_p1 }
  0x56   : > { %4548 = shalt.err (!%p4545_p6)
}
  0x57   : > { %s4549_s16 = scalar_lea.vmem %s4755_s19, 128  ;;  %p4557_p11 = scmp.lt.s32.totalorder %s4755_s19, %s4755_s19 }
  0x58   : > { %p4550_p8 = scmp.ne.s32.totalorder %s4755_s19, %s4549_s16  ;;  %p4558_p12 = scmp.lt.s32.totalorder %s4549_s16, %s4549_s16 }
  0x5a   : > { %p4552_p9 = pnand %p4550_p8, %p4765_p7  ;;  %p4559_p13 = por %p4558_p12, %p4557_p11 }
  0x5c   : > { %p4553_p10 = pneg %p4552_p9 }
  0x5e   : > { %p4560_p0 = pnand %p4559_p13, %p4553_p10 }
  0x60   : > { %4563 = shalt.err (!%p4560_p0)
}
  0x61   : > { %4388 = dma.hbm_to_vmem [thread:$0]  (!%p4749_p5), %s5694_s5, 128, %s4755_s19, [#allocation5]  }
  0x62   : > { %s4648_s25 = smov [#allocation9]   ;;  %s4649_s22 = smov [#allocation10]  }
  0x63   : > { %s399_s21 = sshll.u32 %s4648_s25, 4  ;;  %s412_s23 = sshll.u32 %s4649_s22, 4  ;;  %s400_s21 = int_to_ptr.vmem [resolvable:$true] %s399_s21  ;;  %s413_s23 = int_to_ptr.vmem [resolvable:$true] %s412_s23 }
  0x64   : > { %s4564_s15 = scalar_lea.hbm %s5696_s7, 16 }
  0x65   : > { %p4565_p1 = scmp.ne.s32.totalorder %s5696_s7, %s4564_s15  ;;  %p4571_p8 = scmp.lt.u32.totalorder %s4564_s15, %s5696_s7 }
  0x67   : > { %p4567_p4 = pnand %p4565_p1, %p4765_p7 }
  0x69   : > { %p4568_p6 = pneg %p4567_p4 }
  0x6b   : > { %p4573_p9 = pnand %p4571_p8, %p4568_p6 }
  0x6d   : > { %4576 = shalt.err (!%p4573_p9)
}
  0x6e   : > { %s4577_s19 = scalar_lea.vmem %s400_s21, 16  ;;  %s4584_s27 = scalar_lea.vmem %s400_s21, 32 }
  0x6f   : > { %p4578_p10 = scmp.ne.s32.totalorder %s400_s21, %s4577_s19  ;;  %p4585_p13 = scmp.lt.s32.totalorder %s400_s21, %s400_s21 }
  0x70   : > { %p4586_p0 = scmp.lt.s32.totalorder %s4584_s27, %s4577_s19 }
  0x71   : > { %p4580_p11 = pnand %p4578_p10, %p4765_p7 }
  0x72   : > { %p4587_p2 = por %p4586_p0, %p4585_p13 }
  0x73   : > { %p4581_p12 = pneg %p4580_p11 }
  0x75   : > { %p4588_p3 = pnand %p4587_p2, %p4581_p12 }
  0x77   : > { %4591 = shalt.err (!%p4588_p3)
}
  0x78   : > { %4394 = dma.hbm_to_vmem [thread:$0]  (!%p4749_p5), %s5696_s7, 16, %s400_s21, [#allocation8]  }
  0x79   : > { %s4592_s15 = scalar_lea.hbm %s5698_s9, 2048 }
  0x7a   : > { %p4593_p1 = scmp.ne.s32.totalorder %s5698_s9, %s4592_s15  ;;  %p4599_p3 = scmp.lt.u32.totalorder %s4592_s15, %s5698_s9 }
  0x7c   : > { %p4595_p4 = pnand %p4593_p1, %p4765_p7 }
  0x7e   : > { %p4596_p2 = pneg %p4595_p4 }
  0x80   : > { %p4601_p6 = pnand %p4599_p3, %p4596_p2 }
  0x82   : > { %4604 = shalt.err (!%p4601_p6)
}
  0x83   : > { %s4605_s19 = scalar_lea.vmem %s413_s23, 2048  ;;  %p4613_p11 = scmp.lt.s32.totalorder %s413_s23, %s413_s23 }
  0x84   : > { %p4606_p8 = scmp.ne.s32.totalorder %s413_s23, %s4605_s19  ;;  %p4614_p12 = scmp.lt.s32.totalorder %s4605_s19, %s4605_s19 }
  0x86   : > { %p4608_p9 = pnand %p4606_p8, %p4765_p7  ;;  %p4615_p13 = por %p4614_p12, %p4613_p11 }
  0x88   : > { %p4609_p10 = pneg %p4608_p9 }
  0x8a   : > { %p4616_p0 = pnand %p4615_p13, %p4609_p10 }
  0x8c   : > { %4619 = shalt.err (!%p4616_p0)
}
  0x8d   : > { %s4650_s21 = smov 128   ;;  %s4651_s27 = smov 8  }
  0x8e   : > { %4397 = dma.hbm_to_vmem [thread:$0]  (!%p4749_p5), %s5698_s9, 2048, %s413_s23, [#allocation11], %s4650_s21, %s4650_s21, %s4651_s27  }
  0x8f   : > { %p5736_p1 = scmp.ne.s32.totalorder %s5733_s29, 0 }
  0x90   : > { %p5737_p4 = scmp.eq.s32.totalorder (!%p5736_p1), %s4732_s28, 0 }
  0x91   : > { %444 = sbr.rel (%p5736_p1) target bundleno = 2209 (0x8a1), region = 72 }
  0x98   : > { %4625 = dma.done.wait (%p5737_p4), [#allocation3], 16   ;;  %p5738_p7 = pmov %p5737_p4 }
  0x99   : > { %p5739_p2 = pmov %p5737_p4 }
  0x9a   : > { %4627 = vsyncadd (%p5738_p7), [#allocation3], 4294967280 }
  0x9b   : > { %4629 = dma.done.wait (%p5739_p2), [#allocation5], 144   ;;  %p5740_p3 = pmov %p5739_p2 }
  0x9c   : > { %p5741_p6 = pmov %p5739_p2 }
  0x9d   : > { %4631 = vsyncadd (%p5740_p3), [#allocation5], 4294967152 }
  0x9e   : > { %4633 = dma.done.wait (%p5741_p6), [#allocation8], 144   ;;  %p5742_p5 = pmov %p5739_p2 }
  0x9f   : > { %p5743_p8 = pmov %p5739_p2 }
  0xa0   : > { %4635 = vsyncadd (%p5742_p5), [#allocation8], 4294967152 }
  0xa1   : > { %4637 = dma.done.wait (%p5743_p8), [#allocation11], 2048   ;;  %p5744_p9 = pmov %p5739_p2 }
  0xa2   : > { %p506_p10 = scmp.lt.s32.totalorder %s4732_s28, 1  ;;  %v515_v0 = vlaneseq  ;;  %v4652_v1 = vmov 0.0   ;;  %vm4653_vm1 = vmmov 0   ;;  %v552_v11 = vld [vmem:[%s5693_s4] sm:$0xff]  ;;  %v4654_v12 = vmov 0   ;;  %v554_v13 = vld [vmem:[%s5693_s4 + $0x10] sm:$0xff] }
  0xa3   : > { %4639 = vsyncadd (%p5744_p9), [#allocation11], 4294965248  ;;  %3457 = vmatprep.subr.mxu1 %v4652_v1  ;;  %3468 = vmatprep.subr.mxu0 %v4652_v1  ;;  %v553_v14 = vld [vmem:[%s5693_s4 + $0x8] sm:$0xff]  ;;  %v549_v19 = vld [vmem:[%s5692_s3] sm:$0xff]  ;;  %vm570_vm2 = vcmask 64512   ;;  %v4655_v51 = vmov 0.0|0.0  }
  0xa4   : > { %s5775_s28 = smov (!%p506_p10, %s4732_s28), 1  ;;  %v516_v2 = vand.u32 127, %v515_v0  ;;  %3470 = vmatprep.mubr.msk.f32.mxu0 %vm4653_vm1, %v4652_v1  ;;  %3459 = vmatprep.mubr.msk.f32.mxu1 %vm4653_vm1, %v4652_v1  ;;  %v1194_v15 = vld [vmem:[#allocation7] sm:$0xff]  ;;  %v572_v20 = vsel %vm570_vm2, %v549_v19, 0  ;;  %v3197_v26 = vld [vmem:[#allocation2] ss:$0 sm:$0xff] }
  0xa5   : > { %s3194_s29 = sshll.u32 %s5775_s28, 3  ;;  %4430 = vset.pattern.permute.xlu1 %v4654_v12  ;;  %4431 = vset.pattern.permute.xlu0 %v4654_v12  ;;  %v550_v21 = vld [vmem:[%s5692_s3 + $0x8] sm:$0xff]  ;;  %v4952_v22 = vand.u32 4294901760, %v572_v20  ;;  %v551_v28 = vld [vmem:[%s5692_s3 + $0x10] sm:$0xff]  ;;  %v3198_v31 = vld [vmem:[#allocation4] ss:$0 sm:$0xff] }
  0xa6   : > { %vm517_vm0 = vcmp.lt.s32.totalorder %v516_v2, 32  ;;  %s509_s23 = scalar_lea.vmem %s5689_s0, %s3194_s29  ;;  %557 = vperm.xlu1 %4430, %v552_v11   ;;  %v575_v23 = vsel %vm570_vm2, %v550_v21, 0  ;;  %v578_v35 = vsel %vm570_vm2, %v551_v28, 0  ;;  %vm1200_vm3 = vcmask 195584   ;;  %s513_s19 = scalar_lea.vmem %s5702_s13, %s3194_s29 }
  0xa7   : > { %v4924_v3 = vsel %vm517_vm0, 1.0, %v4652_v1  ;;  %v4926_v4 = vld [vmem:[%s509_s23] sm:$0xff]  ;;  %v647_v24 = vsub.f32 %v572_v20, %v4952_v22  ;;  %v4956_v27 = vand.u32 4294901760, %v575_v23  ;;  %v666_v38 = vand.u32 4294901760, %v578_v35 }
  0xa8   : > { %v520_v5 = vmul.f32 %v4924_v3, %v4926_v4 }
  0xa9   : > { %v648_v29 = vand.u32 4294901760, %v647_v24  ;;  %v657_v32 = vsub.f32 %v575_v23, %v4956_v27  ;;  %v667_v42 = vsub.f32 %v578_v35, %v666_v38 }
  0xaa   : > { %521 = vadd.xlane.f32.xlu0 %v520_v5  ;;  %562 = vperm.xlu1 %4430, %v553_v14  }
  0xab   : > { %v649_v33 = vsub.f32 %v647_v24, %v648_v29  ;;  %v658_v36 = vand.u32 4294901760, %v657_v32  ;;  %v668_v44 = vand.u32 4294901760, %v667_v42 }
  0xad   : > { %v650_v39 = vand.u32 4294901760, %v649_v33  ;;  %v659_v40 = vsub.f32 %v657_v32, %v658_v36  ;;  %v669_v47 = vsub.f32 %v667_v42, %v668_v44 }
  0xae   : > { %1197 = vperm.xlu1 %4430, %v1194_v15  }
  0xaf   : > { %v660_v45 = vand.u32 4294901760, %v659_v40  ;;  %v670_v50 = vand.u32 4294901760, %v669_v47 }
 0x125   : > { %v558_v58 = vpop.permute.xlu1 %557 }
 0x129   : > { %v563_v63 = vpop.permute.xlu1 %562 }
 0x137   : > { %v522_v6 = vpop.xlane.xlu0 %521 }
 0x138   : > { %v523_v7 = vmul.f32 0.03125, %v522_v6 }
 0x13a   : > { %v524_v8 = vsub.f32 %v4926_v4, %v523_v7 }
 0x13c   : > { %v525_v9 = vmul.f32 %v4924_v3, %v524_v8 }
 0x13e   : > { %v526_v10 = vmul.f32 %v525_v9, %v525_v9 }
 0x140   : > { %527 = vadd.xlane.f32.xlu0 %v526_v10 }
 0x156   : > { %567 = vperm.xlu0 %4431, %v554_v13  }
 0x1cd   : > { %v528_v16 = vpop.xlane.xlu0 %527 }
 0x1ce   : > { %v529_v17 = vmul.f32 0.03125, %v528_v16 }
 0x1d0   : > { %v530_v18 = vadd.f32 1e-05, %v529_v17 }
 0x1d2   : > { %4432 = vrsqrt.f32 %v530_v18 }
 0x1d5   : > { %v568_v5 = vpop.permute.xlu0 %567 }
 0x1dc   : > { %v4433_v25 = vpop.eup %4432 }
 0x1dd   : > { %v532_v30 = vmul.f32 %v4433_v25, %v525_v9 }
 0x1df   : > { %v540_v34 = vmul.f32 %v3197_v26, %v532_v30 }
 0x1e1   : > { %v548_v37 = vadd.f32 %v3198_v31, %v540_v34 }
 0x1e3   : > { %v581_v41 = vand.u32 4294901760, %v548_v37 }
 0x1e5   : > { %3458 = vmatpush3.msra.mxu1 %v581_v41  ;;  %v678_v43 = vsub.f32 %v548_v37, %v581_v41 }
 0x1e6   : > { %3460 = vmatmul.mubr.f32.vlgmr.msra.gmra.mrb[0].mxu1 %v650_v39  ;;  %3997 = vmatprep.subr.bf16.mxu1 %v4655_v51 }
 0x1e7   : > { %v679_v46 = vand.u32 4294901760, %v678_v43  ;;  %3462 = vmatprep.mubr.msk.f32.mxu1 %vm4653_vm1, %v4652_v1 }
 0x1e9   : > { %v680_v48 = vsub.f32 %v678_v43, %v679_v46 }
 0x1ea   : > { %3463 = vmatmul.mubr.f32.gmra.mrb[2].mxu1 %v660_v45 }
 0x1eb   : > { %v681_v49 = vand.u32 4294901760, %v680_v48  ;;  %3465 = vmatprep.mubr.msk.f32.mxu1 %vm4653_vm1, %v4652_v1 }
 0x1ed   : > { %3469 = vmatpush3.msra.mxu0 %v681_v49 }
 0x1ee   : > { %3471 = vmatmul.mubr.f32.vlgmr.msra.gmra.mrb[0].mxu0 %v4952_v22  ;;  %3479 = vmatprep.subr.mxu0 %v4652_v1 }
 0x1ef   : > { %3480 = vmatpush3.msra.mxu0 %v678_v43  ;;  %3473 = vmatprep.mubr.msk.f32.mxu0 %vm4653_vm1, %v4652_v1 }
 0x1f0   : > { %3490 = vmatprep.subr.mxu0 %v4652_v1  ;;  %3466 = vmatmul.mubr.f32.gmra.mrb[4].mxu1 %v670_v50 }
 0x1f1   : > { %3529 = vmatprep.mubr.msk.f32.mxu1 %vm4653_vm1, %v4652_v1 }
 0x1f2   : > { %3474 = vmatmul.mubr.f32.gmra.mrb[2].mxu0 %v4956_v27 }
 0x1f3   : > { %3476 = vmatprep.mubr.msk.f32.mxu0 %vm4653_vm1, %v4652_v1 }
 0x1f6   : > { %3477 = vmatmul.mubr.f32.gmra.mrb[4].mxu0 %v666_v38 }
 0x1f7   : > { %3481 = vmatprep.mubr.msk.f32.mxu0 %vm4653_vm1, %v4652_v1 }
 0x1fa   : > { %3482 = vmatmul.mubr.f32.vlgmr.msra.gmra.mrb[0].mxu0 %v647_v24 }
 0x1fb   : > { %3491 = vmatpush3.msra.mxu0 %v581_v41  ;;  %3484 = vmatprep.mubr.msk.f32.mxu0 %vm4653_vm1, %v4652_v1 }
 0x1fc   : > { %3501 = vmatprep.subr.mxu0 %v4652_v1 }
 0x1fe   : > { %3485 = vmatmul.mubr.f32.gmra.mrb[2].mxu0 %v657_v32 }
 0x1ff   : > { %3487 = vmatprep.mubr.msk.f32.mxu0 %vm4653_vm1, %v4652_v1 }
 0x202   : > { %3488 = vmatmul.mubr.f32.gmra.mrb[4].mxu0 %v667_v42 }
 0x203   : > { %3492 = vmatprep.mubr.msk.f32.mxu0 %vm4653_vm1, %v4652_v1 }
 0x206   : > { %3493 = vmatmul.mubr.f32.vlgmr.msra.gmra.mrb[0].mxu0 %v648_v29 }
 0x207   : > { %3502 = vmatpush3.msra.mxu0 %v679_v46  ;;  %3495 = vmatprep.mubr.msk.f32.mxu0 %vm4653_vm1, %v4652_v1 }
 0x208   : > { %3512 = vmatprep.subr.mxu0 %v4652_v1 }
 0x20a   : > { %3496 = vmatmul.mubr.f32.gmra.mrb[2].mxu0 %v658_v36 }
 0x20b   : > { %3498 = vmatprep.mubr.msk.f32.mxu0 %vm4653_vm1, %v4652_v1 }
 0x20e   : > { %3499 = vmatmul.mubr.f32.gmra.mrb[4].mxu0 %v668_v44 }
 0x20f   : > { %3503 = vmatprep.mubr.msk.f32.mxu0 %vm4653_vm1, %v4652_v1 }
 0x212   : > { %3504 = vmatmul.mubr.f32.vlgmr.msra.gmra.mrb[0].mxu0 %v4952_v22 }
 0x213   : > { %3513 = vmatpush3.msra.mxu0 %v581_v41  ;;  %3506 = vmatprep.mubr.msk.f32.mxu0 %vm4653_vm1, %v4652_v1 }
 0x214   : > { %4159 = vmatprep.subr.bf16.mxu0 %v4655_v51 }
 0x216   : > { %3507 = vmatmul.mubr.f32.gmra.mrb[2].mxu0 %v4956_v27 }
 0x217   : > { %3509 = vmatprep.mubr.msk.f32.mxu0 %vm4653_vm1, %v4652_v1 }
 0x21a   : > { %3510 = vmatmul.mubr.f32.gmra.mrb[4].mxu0 %v666_v38 }
 0x21b   : > { %3514 = vmatprep.mubr.msk.f32.mxu0 %vm4653_vm1, %v4652_v1 }
 0x21e   : > { %3515 = vmatmul.mubr.f32.vlgmr.msra.gmra.mrb[0].mxu0 %v4952_v22 }
 0x21f   : > { %3517 = vmatprep.mubr.msk.f32.mxu0 %vm4653_vm1, %v4652_v1 }
 0x222   : > { %3518 = vmatmul.mubr.f32.gmra.mrb[2].mxu0 %v4956_v27 }
 0x223   : > { %3520 = vmatprep.mubr.msk.f32.mxu0 %vm4653_vm1, %v4652_v1 }
 0x226   : > { %3521 = vmatmul.mubr.f32.gmra.mrb[4].mxu0 %v666_v38 }
 0x227   : > { %3819 = vmatprep.mubr.msk.f32.mxu0 %vm4653_vm1, %v4652_v1 }
 0x2b9   : > { %v652_v52 = vpop.f32.mrb[0].mxu1 }
 0x2ba   : > { %v3461_v53 = vpop.f32.mrb[1].mxu1  ;;  %v653_v59 = vadd.f32 %v652_v52, %v558_v58 }
 0x2bd   : > { %v662_v54 = vpop.f32.mrb[2].mxu1 }
 0x2be   : > { %v3464_v55 = vpop.f32.mrb[3].mxu1  ;;  %v663_v0 = vadd.f32 %v662_v54, %v563_v63 }
 0x2c3   : > { %v672_v56 = vpop.f32.mrb[4].mxu1 }
 0x2c4   : > { %v3467_v57 = vpop.f32.mrb[5].mxu1  ;;  %v673_v10 = vadd.f32 %v672_v56, %v568_v5 }
 0x2c5   : > { %v1193_v57 = vld [vmem:[#allocation6] sm:$0xff] }
 0x2f1   : > { %v1096_v60 = vpop.f32.mrb[0].mxu0 }
 0x2f2   : > { %v5011_v61 = vadd.f32 %v1096_v60, %v653_v59  ;;  %v3516_v62 = vpop.f32.mrb[1].mxu0 }
 0x2f4   : > { %v5014_v2 = vmul.f32 0.70710677, %v5011_v61 }
 0x2f5   : > { %v1102_v6 = vpop.f32.mrb[2].mxu0 }
 0x2f6   : > { %v1118_v7 = vand.u32 2147483647, %v5014_v2  ;;  %v5017_v8 = vadd.f32 %v1102_v6, %v663_v0  ;;  %v3519_v9 = vpop.f32.mrb[3].mxu0  ;;  %v1202_v0 = vsel %vm1200_vm3, %v1193_v57, 0  ;;  %vm1178_vm4 = vcmp.ge.f32.partialorder %v5014_v2, 0.0 }
 0x2f8   : > { %v1121_v11 = vmul.f32 0.3275911, %v1118_v7  ;;  %v5020_v12 = vmul.f32 0.70710677, %v5017_v8  ;;  %v1160_v23 = vsub.f32 0.0, %v1118_v7 }
 0x2f9   : > { %v1108_v13 = vpop.f32.mrb[4].mxu0 }
 0x2fa   : > { %v1124_v14 = vadd.f32 1.0, %v1121_v11  ;;  %v1119_v15 = vand.u32 2147483647, %v5020_v12  ;;  %v3522_v16 = vpop.f32.mrb[5].mxu0  ;;  %v5023_v17 = vadd.f32 %v1108_v13, %v673_v10  ;;  %v1163_v26 = vmul.f32 %v1160_v23, %v1118_v7 }
 0x2fb   : > { %v5029_v13 = vand.u32 4294901760, %v1202_v0  ;;  %vm1179_vm5 = vcmp.ge.f32.partialorder %v5020_v12, 0.0 }
 0x2fc   : > { %4434 = vrcp.f32 %v1124_v14  ;;  %v1122_v18 = vmul.f32 0.3275911, %v1119_v15  ;;  %v5026_v19 = vmul.f32 0.70710677, %v5023_v17  ;;  %v1161_v27 = vsub.f32 0.0, %v1119_v15 }
 0x2fd   : > { %v1166_v31 = vmul.f32 1.442695, %v1163_v26 }
 0x2fe   : > { %v1125_v20 = vadd.f32 1.0, %v1122_v18  ;;  %v1120_v21 = vand.u32 2147483647, %v5026_v19  ;;  %v1164_v32 = vmul.f32 %v1161_v27, %v1119_v15  ;;  %v1112_v18 = vmul.f32 0.5, %v5011_v61 }
 0x2ff   : > { %vm1180_vm6 = vcmp.ge.f32.partialorder %v5026_v19, 0.0 }
 0x300   : > { %4436 = vrcp.f32 %v1125_v20  ;;  %v1123_v22 = vmul.f32 0.3275911, %v1120_v21  ;;  %v1162_v35 = vsub.f32 0.0, %v1120_v21  ;;  %v1168_v38 = vmul.f32 1.442695, %v1164_v32 }
 0x302   : > { %v1126_v24 = vadd.f32 1.0, %v1123_v22  ;;  %v1165_v42 = vmul.f32 %v1162_v35, %v1120_v21 }
 0x304   : > { %4438 = vrcp.f32 %v1126_v24  ;;  %v1170_v49 = vmul.f32 1.442695, %v1165_v42  ;;  %v1273_v24 = vsub.f32 %v1202_v0, %v5029_v13 }
 0x305   : > { %4440 = vpow2.f32 %v1166_v31 }
 0x306   : > { %v4435_v25 = vpop.eup %4434  ;;  %4442 = vpow2.f32 %v1168_v38  ;;  %v1274_v31 = vand.u32 4294901760, %v1273_v24 }
 0x307   : > { %v1133_v28 = vmul.f32 1.0614054, %v4435_v25  ;;  %4444 = vpow2.f32 %v1170_v49 }
 0x308   : > { %v1275_v12 = vsub.f32 %v1273_v24, %v1274_v31 }
 0x309   : > { %v1136_v29 = vadd.f32 -1.4531521, %v1133_v28 }
 0x30a   : > { %v4437_v30 = vpop.eup %4436 }
 0x30b   : > { %v1139_v33 = vmul.f32 %v4435_v25, %v1136_v29  ;;  %v1134_v34 = vmul.f32 1.0614054, %v4437_v30  ;;  %v1113_v29 = vmul.f32 0.5, %v5017_v8 }
 0x30d   : > { %v1142_v36 = vadd.f32 1.4214138, %v1139_v33  ;;  %v1137_v37 = vadd.f32 -1.4531521, %v1134_v34 }
 0x30e   : > { %v4439_v39 = vpop.eup %4438 }
 0x30f   : > { %v1145_v40 = vmul.f32 %v4435_v25, %v1142_v36  ;;  %v1140_v41 = vmul.f32 %v4437_v30, %v1137_v37  ;;  %v1135_v43 = vmul.f32 1.0614054, %v4439_v39  ;;  %v4441_v58 = vpop.eup %4440  ;;  %v1114_v37 = vmul.f32 0.5, %v5023_v17 }
 0x310   : > { %v4443_v7 = vpop.eup %4442 }
 0x311   : > { %v1148_v44 = vadd.f32 -0.28449672, %v1145_v40  ;;  %v1143_v45 = vadd.f32 1.4214138, %v1140_v41  ;;  %v1138_v46 = vadd.f32 -1.4531521, %v1135_v43  ;;  %v4445_v22 = vpop.eup %4444 }
 0x313   : > { %v1151_v47 = vmul.f32 %v4435_v25, %v1148_v44  ;;  %v1146_v48 = vmul.f32 %v4437_v30, %v1143_v45  ;;  %v1141_v50 = vmul.f32 %v4439_v39, %v1138_v46  ;;  %v1276_v45 = vand.u32 4294901760, %v1275_v12 }
 0x315   : > { %v1154_v52 = vadd.f32 0.2548296, %v1151_v47  ;;  %v1149_v53 = vadd.f32 -0.28449672, %v1146_v48  ;;  %v1144_v54 = vadd.f32 1.4214138, %v1141_v50 }
 0x317   : > { %v1157_v55 = vmul.f32 %v4435_v25, %v1154_v52  ;;  %v1152_v56 = vmul.f32 %v4437_v30, %v1149_v53  ;;  %v1147_v59 = vmul.f32 %v4439_v39, %v1144_v54  ;;  %v1198_v54 = vpop.permute.xlu1 %1197 }
 0x319   : > { %v1172_v60 = vmul.f32 %v4441_v58, %v1157_v55  ;;  %v1155_v62 = vadd.f32 0.2548296, %v1152_v56  ;;  %v1150_v63 = vadd.f32 -0.28449672, %v1147_v59 }
 0x31b   : > { %v1175_v5 = vsub.f32 1.0, %v1172_v60  ;;  %v1158_v6 = vmul.f32 %v4437_v30, %v1155_v62  ;;  %v1153_v9 = vmul.f32 %v4439_v39, %v1150_v63  ;;  %v1707_v62 = vld [vmem:[#allocation10] sm:$0xff]  ;;  %v1708_v63 = vld [vmem:[#allocation10 + $0x8] sm:$0xff] }
 0x31c   : > { %v1731_v0 = vand.u32 4294901760, %v1707_v62 }
 0x31d   : > { %v1181_v10 = vsub.f32 0.0, %v1175_v5  ;;  %v1173_v11 = vmul.f32 %v4443_v7, %v1158_v6  ;;  %v1156_v14 = vadd.f32 0.2548296, %v1153_v9 }
 0x31e   : > { %v5073_v7 = vsub.f32 %v1707_v62, %v1731_v0 }
 0x31f   : > { %v1184_v15 = vsel %vm1178_vm4, %v1175_v5, %v1181_v10  ;;  %v1176_v16 = vsub.f32 1.0, %v1173_v11  ;;  %v1159_v21 = vmul.f32 %v4439_v39, %v1156_v14  ;;  %v1734_v5 = vand.u32 4294901760, %v1708_v63 }
 0x320   : > { %v1187_v20 = vadd.f32 1.0, %v1184_v15  ;;  %v1709_v15 = vld [vmem:[#allocation10 + $0x10] sm:$0xff] }
 0x321   : > { %v1182_v23 = vsub.f32 0.0, %v1176_v16  ;;  %v1174_v26 = vmul.f32 %v4445_v22, %v1159_v21  ;;  %v5071_v6 = vpack.c.bf16 %v1734_v5, %v1731_v0  ;;  %v5075_v9 = vsub.f32 %v1708_v63, %v1734_v5  ;;  %v1711_v22 = vld [vmem:[#allocation10 + $0x20] sm:$0xff] }
 0x322   : > { %v1190_v25 = vmul.f32 %v1187_v20, %v1112_v18  ;;  %v1737_v18 = vand.u32 4294901760, %v1709_v15 }
 0x323   : > { %v1185_v27 = vsel %vm1179_vm5, %v1176_v16, %v1182_v23  ;;  %v1177_v30 = vsub.f32 1.0, %v1174_v26  ;;  %v1710_v16 = vld [vmem:[#allocation10 + $0x18] sm:$0xff]  ;;  %v1712_v23 = vld [vmem:[#allocation10 + $0x28] sm:$0xff]  ;;  %v1713_v26 = vld [vmem:[#allocation10 + $0x30] sm:$0xff]  ;;  %v1831_v62 = vand.u32 4294901760, %v5075_v9 }
 0x324   : > { %v1205_v28 = vand.u32 4294901760, %v1190_v25  ;;  %v1188_v2 = vadd.f32 1.0, %v1185_v27  ;;  %v1740_v20 = vand.u32 4294901760, %v1710_v16  ;;  %v1714_v27 = vld [vmem:[#allocation10 + $0x38] sm:$0xff] }
 0x325   : > { %v1183_v61 = vsub.f32 0.0, %v1177_v30  ;;  %v1832_v5 = vsub.f32 %v5075_v9, %v1831_v62 }
 0x326   : > { %v1284_v32 = vsub.f32 %v1190_v25, %v1205_v28  ;;  %v1191_v33 = vmul.f32 %v1188_v2, %v1113_v29  ;;  %v5085_v21 = vpack.c.bf16 %v1740_v20, %v1737_v18  ;;  %v1746_v25 = vand.u32 4294901760, %v1712_v23 }
 0x327   : > { %v1186_v36 = vsel %vm1180_vm6, %v1177_v30, %v1183_v61  ;;  %v1752_v29 = vand.u32 4294901760, %v1714_v27  ;;  %v1715_v30 = vld [vmem:[#allocation10 + $0x40] sm:$0xff]  ;;  %v5102_v12 = vsub.f32 %v1710_v16, %v1740_v20 }
 0x328   : > { %v1285_v34 = vand.u32 4294901760, %v1284_v32  ;;  %v1208_v35 = vand.u32 4294901760, %v1191_v33  ;;  %v1189_v38 = vadd.f32 1.0, %v1186_v36 }
 0x32a   : > { %v1291_v39 = vsub.f32 %v1191_v33, %v1208_v35  ;;  %v3998_v40 = vpack.c.bf16 %v1208_v35, %v1205_v28  ;;  %v1192_v41 = vmul.f32 %v1189_v38, %v1114_v37  ;;  %v1286_v8 = vsub.f32 %v1284_v32, %v1285_v34  ;;  %v1718_v35 = vld [vmem:[#allocation10 + $0x58] sm:$0xff] }
 0x32b   : > { %v1749_v28 = vand.u32 4294901760, %v1713_v26  ;;  %v1764_v37 = vand.u32 4294901760, %v1718_v35  ;;  %v5100_v38 = vsub.f32 %v1709_v15, %v1737_v18 }
 0x32c   : > { %v1292_v42 = vand.u32 4294901760, %v1291_v39  ;;  %3999 = vmatpush3.bf16.msra.mxu1 %v3998_v40  ;;  %v4004_v43 = vpack.c.bf16 %v1291_v39, %v1284_v32  ;;  %v1211_v44 = vand.u32 4294901760, %v1192_v41  ;;  %v1287_v48 = vand.u32 4294901760, %v1286_v8  ;;  %v1721_v8 = vld [vmem:[#allocation10 + $0x70] sm:$0xff] }
 0x32d   : > { %3527 = vmatprep.subr.mxu1 %v4652_v1  ;;  %v5093_v2 = vpack.c.bf16 %v1752_v29, %v1749_v28  ;;  %v1755_v32 = vand.u32 4294901760, %v1715_v30 }
 0x32e   : > { %v1293_v46 = vsub.f32 %v1291_v39, %v1292_v42  ;;  %v4010_v19 = vpack.c.bf16 %v1292_v42, %v1285_v34  ;;  %v1298_v47 = vsub.f32 %v1192_v41, %v1211_v44  ;;  %v1717_v34 = vld [vmem:[#allocation10 + $0x50] sm:$0xff]  ;;  %v1719_v41 = vld [vmem:[#allocation10 + $0x60] sm:$0xff]  ;;  %v1720_v42 = vld [vmem:[#allocation10 + $0x68] sm:$0xff] }
 0x32f   : > { %v1761_v36 = vand.u32 4294901760, %v1717_v34 }
 0x330   : > { %3528 = vmatpush3.msra.mxu1 %v1211_v44  ;;  %v1294_v49 = vand.u32 4294901760, %v1293_v46  ;;  %v1299_v17 = vand.u32 4294901760, %v1298_v47 }
 0x331   : > { %3530 = vmatmul.mubr.f32.vlgmr.msra.gmra.mrb[6].mxu1 %v1276_v45  ;;  %4000 = vmatprep.subr.bf16.mxu1 %v4655_v51  ;;  %v5113_v45 = vsub.f32 %v1715_v30, %v1755_v32 }
 0x332   : > { %v4001_v50 = vpack.c.bf16 %v1294_v49, %v1287_v48  ;;  %3538 = vmatprep.mubr.msk.f32.mxu1 %vm4653_vm1, %v4652_v1  ;;  %v1300_v52 = vsub.f32 %v1298_v47, %v1299_v17  ;;  %v5119_v48 = vsub.f32 %v1717_v34, %v1761_v36  ;;  %v5121_v49 = vsub.f32 %v1718_v35, %v1764_v37 }
 0x334   : > { %4002 = vmatpush3.bf16.msra.mxu1 %v4001_v50  ;;  %v1301_v53 = vand.u32 4294901760, %v1300_v52  ;;  %v1770_v50 = vand.u32 4294901760, %v1720_v42  ;;  %v1773_v52 = vand.u32 4294901760, %v1721_v8 }
 0x335   : > { %3536 = vmatprep.subr.mxu1 %v4652_v1 }
 0x338   : > { %3537 = vmatpush3.msra.mxu1 %v1301_v53 }
 0x339   : > { %3539 = vmatmul.mubr.f32.vlgmr.msra.gmra.mrb[6].mxu1 %v5029_v13  ;;  %4003 = vmatprep.subr.bf16.mxu1 %v4655_v51 }
 0x33a   : > { %4005 = vmatpush3.bf16.msra.mxu1 %v4004_v43  ;;  %3547 = vmatprep.mubr.msk.f32.mxu1 %vm4653_vm1, %v4652_v1  ;;  %v5109_v43 = vsub.f32 %v1713_v26, %v1749_v28 }
 0x33b   : > { %3545 = vmatprep.subr.mxu1 %v4652_v1 }
 0x33c   : > { %v5715_v30 = vand.u32 4294901760, %v5109_v43 }
 0x33e   : > { %3546 = vmatpush3.msra.mxu1 %v1298_v47  ;;  %v5117_v47 = vpack.c.bf16 %v1764_v37, %v1761_v36  ;;  %v5713_v37 = vand.u32 4294901760, %v5113_v45 }
 0x33f   : > { %4006 = vmatprep.subr.bf16.mxu1 %v4655_v51 }
 0x341   : > { %3548 = vmatmul.mubr.f32.vlgmr.msra.gmra.mrb[6].mxu1 %v1273_v24  ;;  %v1743_v24 = vand.u32 4294901760, %v1711_v22 }
 0x342   : > { %4008 = vmatpush3.bf16.msra.mxu1 %v3998_v40  ;;  %3556 = vmatprep.mubr.msk.f32.mxu1 %vm4653_vm1, %v4652_v1 }
 0x343   : > { %3554 = vmatprep.subr.mxu1 %v4652_v1  ;;  %v5104_v39 = vsub.f32 %v1711_v22, %v1743_v24 }
 0x346   : > { %3555 = vmatpush3.msra.mxu1 %v1211_v44 }
 0x347   : > { %4009 = vmatprep.subr.bf16.mxu1 %v4655_v51 }
 0x349   : > { %3557 = vmatmul.mubr.f32.vlgmr.msra.gmra.mrb[6].mxu1 %v1274_v31  ;;  %v1716_v31 = vld [vmem:[#allocation10 + $0x48] sm:$0xff] }
 0x34a   : > { %4011 = vmatpush3.bf16.msra.mxu1 %v4010_v19  ;;  %3565 = vmatprep.mubr.msk.f32.mxu1 %vm4653_vm1, %v4652_v1  ;;  %v1758_v33 = vand.u32 4294901760, %v1716_v31  ;;  %v1722_v19 = vld [vmem:[#allocation10 + $0x78] sm:$0xff] }
 0x34b   : > { %3563 = vmatprep.subr.mxu1 %v4652_v1 }
 0x34c   : > { %v5097_v61 = vpack.c.bf16 %v1758_v33, %v1755_v32  ;;  %v5115_v46 = vsub.f32 %v1716_v31, %v1758_v33  ;;  %v1867_v33 = vsub.f32 %v5109_v43, %v5715_v30 }
 0x34e   : > { %3564 = vmatpush3.msra.mxu1 %v1299_v17  ;;  %v1767_v17 = vand.u32 4294901760, %v1719_v41  ;;  %v1868_v35 = vand.u32 4294901760, %v1867_v33 }
 0x34f   : > { %4012 = vmatprep.subr.bf16.mxu1 %v4655_v51 }
 0x350   : > { %v5124_v53 = vsub.f32 %v1719_v41, %v1767_v17  ;;  %v5712_v41 = vand.u32 4294901760, %v5115_v46 }
 0x351   : > { %3566 = vmatmul.mubr.f32.vlgmr.msra.gmra.mrb[6].mxu1 %v5029_v13 }
 0x352   : > { %4014 = vmatpush3.bf16.msra.mxu1 %v3998_v40  ;;  %3574 = vmatprep.mubr.msk.f32.mxu1 %vm4653_vm1, %v4652_v1  ;;  %v5106_v40 = vsub.f32 %v1712_v23, %v1746_v25  ;;  %v1852_v23 = vand.u32 4294901760, %v5104_v39 }
 0x353   : > { %3572 = vmatprep.subr.mxu1 %v4652_v1 }
 0x354   : > { %v1853_v26 = vsub.f32 %v5104_v39, %v1852_v23 }
 0x356   : > { %3573 = vmatpush3.msra.mxu1 %v1211_v44  ;;  %v5111_v44 = vsub.f32 %v1714_v27, %v1752_v29  ;;  %v1854_v28 = vand.u32 4294901760, %v1853_v26 }
 0x357   : > { %4015 = vmatprep.subr.bf16.mxu1 %v4655_v51 }
 0x358   : > { %v5714_v31 = vand.u32 4294901760, %v5111_v44 }
 0x359   : > { %3575 = vmatmul.mubr.f32.vlgmr.msra.gmra.mrb[6].mxu1 %v5029_v13 }
 0x35a   : > { %3609 = vmatprep.mubr.msk.f32.mxu1 %vm4653_vm1, %v4652_v1  ;;  %4017 = vmatpush3.bf16.msra.mxu1 %v5071_v6  ;;  %v1874_v34 = vsub.f32 %v5111_v44, %v5714_v31 }
 0x35b   : > { %4018 = vmatprep.subr.bf16.mxu1 %v4655_v51 }
 0x35c   : > { %v1875_v36 = vand.u32 4294901760, %v1874_v34 }
 0x35e   : > { %4020 = vmatpush3.bf16.msra.mxu1 %v5085_v21 }
 0x35f   : > { %4021 = vmatprep.subr.bf16.mxu1 %v4655_v51 }
 0x42c   : > { %v1672_v55 = vpop.f32.mrb[6].mxu1 }
 0x42d   : > { %v4309_v56 = vadd.f32 %v1672_v55, %v1198_v54  ;;  %v3576_v57 = vpop.f32.mrb[7].mxu1  ;;  %v1776_v54 = vand.u32 4294901760, %v1722_v19  ;;  %v5127_v55 = vpack.c.bf16 %v1770_v50, %v1767_v17 }
 0x42e   : > { %v5131_v57 = vsub.f32 %v1721_v8, %v1773_v52  ;;  %v1881_v8 = vsub.f32 %v5113_v45, %v5713_v37 }
 0x42f   : > { %v1676_v58 = vmul.f32 %v4309_v56, %v4924_v3  ;;  %v5129_v56 = vsub.f32 %v1720_v42, %v1770_v50  ;;  %v5138_v63 = vpack.c.bf16 %v1776_v54, %v1773_v52  ;;  %v4049_v42 = vpack.c.bf16 %v1875_v36, %v1868_v35 }
 0x430   : > { %v1882_v17 = vand.u32 4294901760, %v1881_v8  ;;  %v5711_v52 = vand.u32 4294901760, %v5119_v48  ;;  %v5707_v33 = vand.u32 4294901760, %v5131_v57 }
 0x431   : > { %v5067_v59 = vadd.f32 %v1676_v58, %v4926_v4  ;;  %v5133_v58 = vsub.f32 %v1722_v19, %v1776_v54  ;;  %v1888_v19 = vsub.f32 %v5115_v46, %v5712_v41  ;;  %v5710_v54 = vand.u32 4294901760, %v5121_v49 }
 0x432   : > { %v1923_v36 = vsub.f32 %v5131_v57, %v5707_v33 }
 0x433   : > { %v1678_v60 = vmul.f32 %v4924_v3, %v5067_v59  ;;  %v1889_v50 = vand.u32 4294901760, %v1888_v19  ;;  %v5706_v34 = vand.u32 4294901760, %v5133_v58 }
 0x434   : > { %v1924_v19 = vand.u32 4294901760, %v1923_v36 }
 0x435   : > { %1679 = vadd.xlane.f32.xlu1 %v1678_v60  ;;  %v1824_v60 = vand.u32 4294901760, %v5073_v7  ;;  %v1930_v8 = vsub.f32 %v5133_v58, %v5706_v34  ;;  %v3199_v34 = vld [vmem:[#allocation9] ss:$0 sm:$0xff] }
 0x437   : > { %v1825_v0 = vsub.f32 %v5073_v7, %v1824_v60 }
 0x4c2   : > { %v1680_v4 = vpop.xlane.xlu1 %1679 }
 0x4c3   : > { %v1681_v10 = vmul.f32 0.03125, %v1680_v4  ;;  %v1826_v4 = vand.u32 4294901760, %v1825_v0  ;;  %v4052_v0 = vpack.c.bf16 %v1889_v50, %v1882_v17  ;;  %v1931_v17 = vand.u32 4294901760, %v1930_v8 }
 0x4c5   : > { %v1682_v11 = vsub.f32 %v5067_v59, %v1681_v10  ;;  %v1833_v10 = vand.u32 4294901760, %v1832_v5  ;;  %v1895_v5 = vsub.f32 %v5119_v48, %v5711_v52  ;;  %v4061_v50 = vpack.c.bf16 %v1931_v17, %v1924_v19 }
 0x4c7   : > { %v5081_v13 = vmul.f32 %v4924_v3, %v1682_v11  ;;  %v5089_v3 = vpack.c.bf16 %v1746_v25, %v1743_v24  ;;  %v1838_v11 = vand.u32 4294901760, %v5100_v38  ;;  %v5151_v15 = vpack.c.bf16 %v1833_v10, %v1826_v4 }
 0x4c8   : > { %v1859_v24 = vand.u32 4294901760, %v5106_v40  ;;  %v1902_v4 = vsub.f32 %v5121_v49, %v5710_v54  ;;  %v1896_v10 = vand.u32 4294901760, %v1895_v5  ;;  %v4064_v5 = vpack.c.bf16 %v5075_v9, %v5073_v7 }
 0x4c9   : > { %v1684_v14 = vmul.f32 %v5081_v13, %v5081_v13  ;;  %4023 = vmatpush3.bf16.msra.mxu1 %v5089_v3  ;;  %v1839_v16 = vsub.f32 %v5100_v38, %v1838_v11  ;;  %v5745_v9 = vand.u32 4294901760, %v5109_v43 }
 0x4ca   : > { %4024 = vmatprep.subr.bf16.mxu1 %v4655_v51  ;;  %v1860_v27 = vsub.f32 %v5106_v40, %v1859_v24  ;;  %v4118_v7 = vpack.c.bf16 %v1859_v24, %v1852_v23 }
 0x4cb   : > { %1685 = vadd.xlane.f32.xlu1 %v1684_v14  ;;  %v1845_v14 = vand.u32 4294901760, %v5102_v12  ;;  %v1840_v20 = vand.u32 4294901760, %v1839_v16  ;;  %v1903_v16 = vand.u32 4294901760, %v1902_v4  ;;  %v4067_v4 = vpack.c.bf16 %v5102_v12, %v5100_v38 }
 0x4cc   : > { %v1861_v29 = vand.u32 4294901760, %v1860_v27  ;;  %v5746_v38 = vand.u32 4294901760, %v5111_v44 }
 0x4cd   : > { %4026 = vmatpush3.bf16.msra.mxu1 %v5093_v2  ;;  %v1846_v18 = vsub.f32 %v5102_v12, %v1845_v14 }
 0x4ce   : > { %4027 = vmatprep.subr.bf16.mxu1 %v4655_v51  ;;  %v4046_v32 = vpack.c.bf16 %v1861_v29, %v1854_v28  ;;  %v4121_v12 = vpack.c.bf16 %v5746_v38, %v5745_v9 }
 0x4cf   : > { %v1847_v22 = vand.u32 4294901760, %v1846_v18  ;;  %v5709_v18 = vand.u32 4294901760, %v5124_v53 }
 0x4d1   : > { %4029 = vmatpush3.bf16.msra.mxu1 %v5097_v61  ;;  %v5161_v25 = vpack.c.bf16 %v1847_v22, %v1840_v20  ;;  %v5708_v20 = vand.u32 4294901760, %v5129_v56  ;;  %v4055_v22 = vpack.c.bf16 %v1903_v16, %v1896_v10  ;;  %v1909_v26 = vsub.f32 %v5124_v53, %v5709_v18 }
 0x4d2   : > { %4030 = vmatprep.subr.bf16.mxu1 %v4655_v51  ;;  %v4070_v10 = vpack.c.bf16 %v5106_v40, %v5104_v39  ;;  %v4073_v16 = vpack.c.bf16 %v5111_v44, %v5109_v43  ;;  %v5749_v39 = vand.u32 4294901760, %v5119_v48  ;;  %v5750_v40 = vand.u32 4294901760, %v5121_v49 }
 0x4d3   : > { %v1916_v27 = vsub.f32 %v5129_v56, %v5708_v20  ;;  %v1910_v28 = vand.u32 4294901760, %v1909_v26  ;;  %v4076_v26 = vpack.c.bf16 %v5115_v46, %v5113_v45  ;;  %v3200_v20 = vld [vmem:[%s5697_s8] ss:$0 sm:$0xff]  ;;  %v5751_v43 = vand.u32 4294901760, %v5124_v53 }
 0x4d4   : > { %v5752_v44 = vand.u32 4294901760, %v5129_v56 }
 0x4d5   : > { %4032 = vmatpush3.bf16.msra.mxu1 %v5117_v47  ;;  %v1917_v29 = vand.u32 4294901760, %v1916_v27  ;;  %v4079_v27 = vpack.c.bf16 %v5121_v49, %v5119_v48  ;;  %v2401_v48 = vld [vmem:[%s5700_s11 + $0x18] sm:$0xff] }
 0x4d6   : > { %4033 = vmatprep.subr.bf16.mxu1 %v4655_v51  ;;  %v4130_v23 = vpack.c.bf16 %v5752_v44, %v5751_v43 }
 0x4d7   : > { %v4058_v35 = vpack.c.bf16 %v1917_v29, %v1910_v28  ;;  %v4082_v28 = vpack.c.bf16 %v5129_v56, %v5124_v53  ;;  %v4085_v29 = vpack.c.bf16 %v5133_v58, %v5131_v57  ;;  %v2431_v53 = vand.u32 4294901760, %v2401_v48  ;;  %v2402_v56 = vld [vmem:[%s5700_s11 + $0x20] sm:$0xff] }
 0x4d9   : > { %4035 = vmatpush3.bf16.msra.mxu1 %v5127_v55 }
 0x4da   : > { %4036 = vmatprep.subr.bf16.mxu1 %v4655_v51 }
 0x4dd   : > { %4038 = vmatpush3.bf16.msra.mxu1 %v5138_v63 }
 0x4de   : > { %4039 = vmatprep.subr.bf16.mxu1 %v4655_v51 }
 0x558   : > { %v1686_v36 = vpop.xlane.xlu1 %1685 }
 0x559   : > { %v1687_v8 = vmul.f32 0.03125, %v1686_v36 }
 0x55b   : > { %v1688_v19 = vadd.f32 1e-05, %v1687_v8 }
 0x55d   : > { %4446 = vrsqrt.f32 %v1688_v19 }
 0x567   : > { %v4447_v17 = vpop.eup %4446 }
 0x568   : > { %v1690_v33 = vmul.f32 %v4447_v17, %v5081_v13  ;;  %v4112_v13 = vpack.c.bf16 %v1831_v62, %v1824_v60  ;;  %v5747_v60 = vand.u32 4294901760, %v5113_v45  ;;  %v5748_v62 = vand.u32 4294901760, %v5115_v46 }
 0x569   : > { %v5753_v45 = vand.u32 4294901760, %v5131_v57  ;;  %v5754_v46 = vand.u32 4294901760, %v5133_v58  ;;  %v2403_v57 = vld [vmem:[%s5700_s11 + $0x28] sm:$0xff]  ;;  %v2434_v58 = vand.u32 4294901760, %v2402_v56 }
 0x56a   : > { %v1698_v18 = vmul.f32 %v3199_v34, %v1690_v33 }
 0x56b   : > { %v4133_v24 = vpack.c.bf16 %v5754_v46, %v5753_v45 }
 0x56c   : > { %v1706_v54 = vadd.f32 %v3200_v20, %v1698_v18  ;;  %v2408_v20 = vld [vmem:[%s5700_s11 + $0x50] sm:$0xff] }
 0x56d   : > { %v2452_v33 = vand.u32 4294901760, %v2408_v20 }
 0x56e   : > { %v5229_v52 = vand.u32 4294901760, %v1706_v54 }
 0x56f   : > { %v5444_v45 = vsub.f32 %v2408_v20, %v2452_v33 }
 0x570   : > { %v1812_v41 = vsub.f32 %v1706_v54, %v5229_v52 }
 0x572   : > { %v1813_v37 = vand.u32 4294901760, %v1812_v41 }
 0x574   : > { %v1814_v31 = vsub.f32 %v1812_v41, %v1813_v37 }
 0x576   : > { %v1815_v30 = vand.u32 4294901760, %v1814_v31  ;;  %v2405_v31 = vld [vmem:[%s5700_s11 + $0x38] sm:$0xff] }
 0x578   : > { %3610 = vmatmul.mubr.f32.vlgmr.msra.gmra.mrb[8].mxu1 %v1815_v30  ;;  %v2404_v30 = vld [vmem:[%s5700_s11 + $0x30] sm:$0xff] }
 0x579   : > { %4041 = vmatpush3.bf16.msra.mxu1 %v5151_v15  ;;  %3644 = vmatprep.mubr.msk.f32.mxu1 %vm4653_vm1, %v4652_v1  ;;  %v4115_v15 = vpack.c.bf16 %v1845_v14, %v1838_v11  ;;  %v4124_v11 = vpack.c.bf16 %v5748_v62, %v5747_v60  ;;  %v4127_v14 = vpack.c.bf16 %v5750_v40, %v5749_v39 }
 0x57a   : > { %4042 = vmatprep.subr.bf16.mxu1 %v4655_v51  ;;  %v5432_v39 = vsub.f32 %v2402_v56, %v2434_v58 }
 0x57d   : > { %4044 = vmatpush3.bf16.msra.mxu1 %v5161_v25 }
 0x57e   : > { %4045 = vmatprep.subr.bf16.mxu1 %v4655_v51 }
 0x581   : > { %4047 = vmatpush3.bf16.msra.mxu1 %v4046_v32  ;;  %v2440_v32 = vand.u32 4294901760, %v2404_v30 }
 0x582   : > { %4048 = vmatprep.subr.bf16.mxu1 %v4655_v51 }
 0x585   : > { %4050 = vmatpush3.bf16.msra.mxu1 %v4049_v42  ;;  %v2406_v42 = vld [vmem:[%s5700_s11 + $0x40] sm:$0xff] }
 0x586   : > { %4051 = vmatprep.subr.bf16.mxu1 %v4655_v51  ;;  %v2446_v54 = vand.u32 4294901760, %v2406_v42 }
 0x588   : > { %v5440_v44 = vsub.f32 %v2406_v42, %v2446_v54 }
 0x589   : > { %4053 = vmatpush3.bf16.msra.mxu1 %v4052_v0 }
 0x58a   : > { %4054 = vmatprep.subr.bf16.mxu1 %v4655_v51 }
 0x58d   : > { %4056 = vmatpush3.bf16.msra.mxu1 %v4055_v22  ;;  %v2409_v22 = vld [vmem:[%s5700_s11 + $0x58] sm:$0xff] }
 0x58e   : > { %4057 = vmatprep.subr.bf16.mxu1 %v4655_v51  ;;  %v2455_v34 = vand.u32 4294901760, %v2409_v22 }
 0x590   : > { %v5446_v46 = vsub.f32 %v2409_v22, %v2455_v34 }
 0x591   : > { %4059 = vmatpush3.bf16.msra.mxu1 %v4058_v35  ;;  %v5390_v35 = vpack.c.bf16 %v2455_v34, %v2452_v33  ;;  %v5723_v33 = vand.u32 4294901760, %v5440_v44 }
 0x592   : > { %4060 = vmatprep.subr.bf16.mxu1 %v4655_v51 }
 0x595   : > { %4062 = vmatpush3.bf16.msra.mxu1 %v4061_v50  ;;  %v2410_v50 = vld [vmem:[%s5700_s11 + $0x60] sm:$0xff] }
 0x596   : > { %4063 = vmatprep.subr.bf16.mxu1 %v4655_v51 }
 0x598   : > { %3645 = vmatmul.mubr.f32.vlgmr.msra.gmra.mrb[8].mxu1 %v5229_v52 }
 0x599   : > { %4065 = vmatpush3.bf16.msra.mxu1 %v4064_v5  ;;  %3679 = vmatprep.mubr.msk.f32.mxu1 %vm4653_vm1, %v4652_v1  ;;  %v2411_v5 = vld [vmem:[%s5700_s11 + $0x68] sm:$0xff] }
 0x59a   : > { %4066 = vmatprep.subr.bf16.mxu1 %v4655_v51 }
 0x59d   : > { %4068 = vmatpush3.bf16.msra.mxu1 %v4067_v4  ;;  %v2458_v4 = vand.u32 4294901760, %v2410_v50 }
 0x59e   : > { %4069 = vmatprep.subr.bf16.mxu1 %v4655_v51 }
 0x5a1   : > { %4071 = vmatpush3.bf16.msra.mxu1 %v4070_v10  ;;  %v2461_v10 = vand.u32 4294901760, %v2411_v5 }
 0x5a2   : > { %4072 = vmatprep.subr.bf16.mxu1 %v4655_v51 }
 0x5a5   : > { %4074 = vmatpush3.bf16.msra.mxu1 %v4073_v16 }
 0x5a6   : > { %4075 = vmatprep.subr.bf16.mxu1 %v4655_v51 }
 0x5a9   : > { %4077 = vmatpush3.bf16.msra.mxu1 %v4076_v26 }
 0x5aa   : > { %4078 = vmatprep.subr.bf16.mxu1 %v4655_v51 }
 0x5ad   : > { %4080 = vmatpush3.bf16.msra.mxu1 %v4079_v27  ;;  %v5404_v27 = vpack.c.bf16 %v2461_v10, %v2458_v4 }
 0x5ae   : > { %4081 = vmatprep.subr.bf16.mxu1 %v4655_v51 }
 0x5b1   : > { %4083 = vmatpush3.bf16.msra.mxu1 %v4082_v28  ;;  %v2412_v28 = vld [vmem:[%s5700_s11 + $0x70] sm:$0xff] }
 0x5b2   : > { %4084 = vmatprep.subr.bf16.mxu1 %v4655_v51  ;;  %v2464_v36 = vand.u32 4294901760, %v2412_v28 }
 0x5b5   : > { %4086 = vmatpush3.bf16.msra.mxu1 %v4085_v29  ;;  %v2413_v29 = vld [vmem:[%s5700_s11 + $0x78] sm:$0xff] }
 0x5b6   : > { %4087 = vmatprep.subr.bf16.mxu1 %v4655_v51  ;;  %v2467_v8 = vand.u32 4294901760, %v2413_v29 }
 0x5b8   : > { %3680 = vmatmul.mubr.f32.vlgmr.msra.gmra.mrb[8].mxu1 %v1812_v41 }
 0x5b9   : > { %4089 = vmatpush3.bf16.msra.mxu1 %v5071_v6  ;;  %3714 = vmatprep.mubr.msk.f32.mxu1 %vm4653_vm1, %v4652_v1 }
 0x5ba   : > { %4090 = vmatprep.subr.bf16.mxu1 %v4655_v51 }
 0x5bd   : > { %4092 = vmatpush3.bf16.msra.mxu1 %v5085_v21 }
 0x5be   : > { %4093 = vmatprep.subr.bf16.mxu1 %v4655_v51 }
 0x5c1   : > { %4095 = vmatpush3.bf16.msra.mxu1 %v5089_v3 }
 0x5c2   : > { %4096 = vmatprep.subr.bf16.mxu1 %v4655_v51 }
 0x5c5   : > { %4098 = vmatpush3.bf16.msra.mxu1 %v5093_v2 }
 0x5c6   : > { %4099 = vmatprep.subr.bf16.mxu1 %v4655_v51 }
 0x5c9   : > { %4101 = vmatpush3.bf16.msra.mxu1 %v5097_v61 }
 0x5ca   : > { %4102 = vmatprep.subr.bf16.mxu1 %v4655_v51 }
 0x5cd   : > { %4104 = vmatpush3.bf16.msra.mxu1 %v5117_v47 }
 0x5ce   : > { %4105 = vmatprep.subr.bf16.mxu1 %v4655_v51 }
 0x5d1   : > { %4107 = vmatpush3.bf16.msra.mxu1 %v5127_v55 }
 0x5d2   : > { %4108 = vmatprep.subr.bf16.mxu1 %v4655_v51 }
 0x5d5   : > { %4110 = vmatpush3.bf16.msra.mxu1 %v5138_v63 }
 0x5d6   : > { %4111 = vmatprep.subr.bf16.mxu1 %v4655_v51 }
 0x5d8   : > { %3715 = vmatmul.mubr.f32.vlgmr.msra.gmra.mrb[8].mxu1 %v1813_v37  ;;  %v2443_v37 = vand.u32 4294901760, %v2405_v31 }
 0x5d9   : > { %4113 = vmatpush3.bf16.msra.mxu1 %v4112_v13  ;;  %3749 = vmatprep.mubr.msk.f32.mxu1 %vm4653_vm1, %v4652_v1 }
 0x5da   : > { %4114 = vmatprep.subr.bf16.mxu1 %v4655_v51  ;;  %v5370_v41 = vpack.c.bf16 %v2443_v37, %v2440_v32  ;;  %v5438_v43 = vsub.f32 %v2405_v31, %v2443_v37 }
 0x5dc   : > { %v5724_v37 = vand.u32 4294901760, %v5438_v43 }
 0x5dd   : > { %4116 = vmatpush3.bf16.msra.mxu1 %v4115_v15  ;;  %v5418_v15 = vsub.f32 %v2401_v48, %v2431_v53 }
 0x5de   : > { %4117 = vmatprep.subr.bf16.mxu1 %v4655_v51 }
 0x5e1   : > { %4119 = vmatpush3.bf16.msra.mxu1 %v4118_v7  ;;  %v5420_v7 = vpack.c.bf16 %v2467_v8, %v2464_v36 }
 0x5e2   : > { %4120 = vmatprep.subr.bf16.mxu1 %v4655_v51 }
 0x5e5   : > { %4122 = vmatpush3.bf16.msra.mxu1 %v4121_v12 }
 0x5e6   : > { %4123 = vmatprep.subr.bf16.mxu1 %v4655_v51 }
 0x5e9   : > { %4125 = vmatpush3.bf16.msra.mxu1 %v4124_v11  ;;  %v5728_v11 = vand.u32 4294901760, %v5418_v15 }
 0x5ea   : > { %4126 = vmatprep.subr.bf16.mxu1 %v4655_v51 }
 0x5eb   : > { %v2537_v48 = vsub.f32 %v5418_v15, %v5728_v11 }
 0x5ed   : > { %4128 = vmatpush3.bf16.msra.mxu1 %v4127_v14  ;;  %v5436_v14 = vsub.f32 %v2404_v30, %v2440_v32 }
 0x5ee   : > { %4129 = vmatprep.subr.bf16.mxu1 %v4655_v51 }
 0x5ef   : > { %v5725_v32 = vand.u32 4294901760, %v5436_v14 }
 0x5f1   : > { %4131 = vmatpush3.bf16.msra.mxu1 %v4130_v23 }
 0x5f2   : > { %4132 = vmatprep.subr.bf16.mxu1 %v4655_v51 }
 0x5f5   : > { %4134 = vmatpush3.bf16.msra.mxu1 %v4133_v24  ;;  %v5448_v24 = vsub.f32 %v2410_v50, %v2458_v4 }
 0x5f6   : > { %4135 = vmatprep.subr.bf16.mxu1 %v4655_v51 }
 0x5f8   : > { %3750 = vmatmul.mubr.f32.vlgmr.msra.gmra.mrb[8].mxu1 %v5229_v52 }
 0x5f9   : > { %4137 = vmatpush3.bf16.msra.mxu1 %v5071_v6  ;;  %3784 = vmatprep.mubr.msk.f32.mxu1 %vm4653_vm1, %v4652_v1  ;;  %v2398_v6 = vld [vmem:[%s5700_s11] sm:$0xff] }
 0x5fa   : > { %4138 = vmatprep.subr.bf16.mxu1 %v4655_v51 }
 0x5fd   : > { %4140 = vmatpush3.bf16.msra.mxu1 %v5085_v21  ;;  %v2399_v21 = vld [vmem:[%s5700_s11 + $0x8] sm:$0xff] }
 0x5fe   : > { %4141 = vmatprep.subr.bf16.mxu1 %v4655_v51 }
 0x601   : > { %4143 = vmatpush3.bf16.msra.mxu1 %v5089_v3  ;;  %v2422_v3 = vand.u32 4294901760, %v2398_v6 }
 0x602   : > { %4144 = vmatprep.subr.bf16.mxu1 %v4655_v51 }
 0x603   : > { %v5400_v16 = vsub.f32 %v2398_v6, %v2422_v3  ;;  %v5450_v6 = vsub.f32 %v2411_v5, %v2461_v10  ;;  %v2572_v5 = vsub.f32 %v5440_v44, %v5723_v33 }
 0x605   : > { %4146 = vmatpush3.bf16.msra.mxu1 %v5093_v2  ;;  %v2425_v2 = vand.u32 4294901760, %v2399_v21  ;;  %v5731_v19 = vand.u32 4294901760, %v5400_v16  ;;  %v2573_v10 = vand.u32 4294901760, %v2572_v5 }
 0x606   : > { %4147 = vmatprep.subr.bf16.mxu1 %v4655_v51 }
 0x607   : > { %v5402_v26 = vsub.f32 %v2399_v21, %v2425_v2  ;;  %v2516_v9 = vsub.f32 %v5400_v16, %v5731_v19  ;;  %v5452_v21 = vsub.f32 %v2412_v28, %v2464_v36  ;;  %v5720_v36 = vand.u32 4294901760, %v5446_v46 }
 0x609   : > { %4149 = vmatpush3.bf16.msra.mxu1 %v5097_v61  ;;  %v5340_v61 = vpack.c.bf16 %v2425_v2, %v2422_v3  ;;  %v5730_v17 = vand.u32 4294901760, %v5402_v26  ;;  %v2517_v12 = vand.u32 4294901760, %v2516_v9  ;;  %v5454_v3 = vsub.f32 %v2413_v29, %v2467_v8 }
 0x60a   : > { %4150 = vmatprep.subr.bf16.mxu1 %v4655_v51  ;;  %v5721_v29 = vand.u32 4294901760, %v5444_v45 }
 0x60b   : > { %4161 = vmatpush3.bf16.msra.mxu0 %v5340_v61  ;;  %v2523_v38 = vsub.f32 %v5402_v26, %v5730_v17 }
 0x60c   : > { %4162 = vmatprep.subr.bf16.mxu0 %v4655_v51  ;;  %v2586_v9 = vsub.f32 %v5444_v45, %v5721_v29 }
 0x60d   : > { %4152 = vmatpush3.bf16.msra.mxu1 %v5117_v47  ;;  %v2400_v47 = vld [vmem:[%s5700_s11 + $0x10] sm:$0xff]  ;;  %v2524_v60 = vand.u32 4294901760, %v2523_v38  ;;  %v2593_v38 = vsub.f32 %v5446_v46, %v5720_v36 }
 0x60e   : > { %4153 = vmatprep.subr.bf16.mxu1 %v4655_v51  ;;  %v2428_v49 = vand.u32 4294901760, %v2400_v47 }
 0x60f   : > { %v5456_v2 = vpack.c.bf16 %v2524_v60, %v2517_v12  ;;  %v2587_v12 = vand.u32 4294901760, %v2586_v9  ;;  %v2594_v60 = vand.u32 4294901760, %v2593_v38 }
 0x610   : > { %v5416_v13 = vsub.f32 %v2400_v47, %v2428_v49 }
 0x611   : > { %4155 = vmatpush3.bf16.msra.mxu1 %v5127_v55  ;;  %v5350_v55 = vpack.c.bf16 %v2431_v53, %v2428_v49  ;;  %v5727_v49 = vand.u32 4294901760, %v5432_v39 }
 0x612   : > { %4156 = vmatprep.subr.bf16.mxu1 %v4655_v51  ;;  %v5729_v62 = vand.u32 4294901760, %v5416_v13  ;;  %v4211_v9 = vpack.c.bf16 %v5418_v15, %v5416_v13 }
 0x613   : > { %4164 = vmatpush3.bf16.msra.mxu0 %v5350_v55 }
 0x614   : > { %4165 = vmatprep.subr.bf16.mxu0 %v4655_v51  ;;  %v2530_v47 = vsub.f32 %v5416_v13, %v5729_v62 }
 0x615   : > { %4158 = vmatpush3.bf16.msra.mxu1 %v5138_v63  ;;  %v2437_v63 = vand.u32 4294901760, %v2403_v57 }
 0x616   : > { %v2531_v56 = vand.u32 4294901760, %v2530_v47  ;;  %v5719_v47 = vand.u32 4294901760, %v5448_v24 }
 0x617   : > { %v5360_v25 = vpack.c.bf16 %v2437_v63, %v2434_v58  ;;  %v5434_v40 = vsub.f32 %v2403_v57, %v2437_v63  ;;  %v2538_v57 = vand.u32 4294901760, %v2537_v48  ;;  %v2544_v58 = vsub.f32 %v5432_v39, %v5727_v49 }
 0x618   : > { %3785 = vmatmul.mubr.f32.vlgmr.msra.gmra.mrb[8].mxu1 %v5229_v52  ;;  %v2407_v52 = vld [vmem:[%s5700_s11 + $0x48] sm:$0xff]  ;;  %v5718_v48 = vand.u32 4294901760, %v5450_v6 }
 0x619   : > { %4167 = vmatpush3.bf16.msra.mxu0 %v5360_v25  ;;  %v2449_v0 = vand.u32 4294901760, %v2407_v52  ;;  %v5726_v53 = vand.u32 4294901760, %v5434_v40  ;;  %v5472_v30 = vpack.c.bf16 %v2538_v57, %v2531_v56  ;;  %v2545_v31 = vand.u32 4294901760, %v2544_v58 }
 0x61a   : > { %4168 = vmatprep.subr.bf16.mxu0 %v4655_v51  ;;  %v5506_v56 = vpack.c.bf16 %v2594_v60, %v2587_v12  ;;  %v2600_v57 = vsub.f32 %v5448_v24, %v5719_v47  ;;  %v2607_v58 = vsub.f32 %v5450_v6, %v5718_v48  ;;  %v4214_v38 = vpack.c.bf16 %v5434_v40, %v5432_v39 }
 0x61b   : > { %v5380_v18 = vpack.c.bf16 %v2449_v0, %v2446_v54  ;;  %v5442_v23 = vsub.f32 %v2407_v52, %v2449_v0  ;;  %v2551_v63 = vsub.f32 %v5434_v40, %v5726_v53  ;;  %v2558_v52 = vsub.f32 %v5436_v14, %v5725_v32 }
 0x61c   : > { %v2565_v54 = vsub.f32 %v5438_v43, %v5724_v37  ;;  %v4217_v12 = vpack.c.bf16 %v5438_v43, %v5436_v14 }
 0x61d   : > { %4170 = vmatpush3.bf16.msra.mxu0 %v5370_v41  ;;  %v2552_v42 = vand.u32 4294901760, %v2551_v63  ;;  %v2559_v20 = vand.u32 4294901760, %v2558_v52  ;;  %v5722_v34 = vand.u32 4294901760, %v5442_v23  ;;  %v2601_v63 = vand.u32 4294901760, %v2600_v57 }
 0x61e   : > { %4171 = vmatprep.subr.bf16.mxu0 %v4655_v51  ;;  %v2566_v22 = vand.u32 4294901760, %v2565_v54  ;;  %v5716_v52 = vand.u32 4294901760, %v5454_v3  ;;  %v4220_v60 = vpack.c.bf16 %v5442_v23, %v5440_v44  ;;  %v4223_v57 = vpack.c.bf16 %v5446_v46, %v5444_v45 }
 0x61f   : > { %v5482_v0 = vpack.c.bf16 %v2552_v42, %v2545_v31  ;;  %v2579_v4 = vsub.f32 %v5442_v23, %v5722_v34  ;;  %v2608_v31 = vand.u32 4294901760, %v2607_v58  ;;  %v5717_v42 = vand.u32 4294901760, %v5452_v21 }
 0x620   : > { %v5486_v50 = vpack.c.bf16 %v2566_v22, %v2559_v20  ;;  %v2621_v22 = vsub.f32 %v5454_v3, %v5716_v52 }
 0x621   : > { %4173 = vmatpush3.bf16.msra.mxu0 %v5380_v18  ;;  %v2580_v28 = vand.u32 4294901760, %v2579_v4  ;;  %v5516_v54 = vpack.c.bf16 %v2608_v31, %v2601_v63  ;;  %v2614_v20 = vsub.f32 %v5452_v21, %v5717_v42  ;;  %v3201_v31 = vld [vmem:[%s5699_s10] ss:$0 sm:$0xff] }
 0x622   : > { %4174 = vmatprep.subr.bf16.mxu0 %v4655_v51  ;;  %v2622_v4 = vand.u32 4294901760, %v2621_v22 }
 0x623   : > { %v5496_v8 = vpack.c.bf16 %v2580_v28, %v2573_v10  ;;  %v2615_v5 = vand.u32 4294901760, %v2614_v20  ;;  %v4208_v28 = vpack.c.bf16 %v5402_v26, %v5400_v16 }
 0x625   : > { %4176 = vmatpush3.bf16.msra.mxu0 %v5390_v35  ;;  %v4205_v10 = vpack.c.bf16 %v2622_v4, %v2615_v5 }
 0x626   : > { %4177 = vmatprep.subr.bf16.mxu0 %v4655_v51 }
 0x629   : > { %4179 = vmatpush3.bf16.msra.mxu0 %v5404_v27 }
 0x62a   : > { %4180 = vmatprep.subr.bf16.mxu0 %v4655_v51 }
 0x62d   : > { %4182 = vmatpush3.bf16.msra.mxu0 %v5420_v7 }
 0x62e   : > { %4183 = vmatprep.subr.bf16.mxu0 %v4655_v51 }
 0x6eb   : > { %v2367_v20 = vpop.f32.mrb[8].mxu1 }
 0x6ec   : > { %v4310_v22 = vadd.f32 %v3201_v31, %v2367_v20  ;;  %v3786_v5 = vpop.f32.mrb[9].mxu1 }
 0x6ee   : > { %v2372_v4 = vmul.f32 0.70710677, %v4310_v22 }
 0x6f0   : > { %v2373_v52 = vand.u32 2147483647, %v2372_v4  ;;  %vm2393_vm7 = vcmp.ge.f32.partialorder %v2372_v4, 0.0 }
 0x6f2   : > { %v2374_v42 = vmul.f32 0.3275911, %v2373_v52  ;;  %v2387_v47 = vsub.f32 0.0, %v2373_v52 }
 0x6f4   : > { %v2375_v48 = vadd.f32 1.0, %v2374_v42  ;;  %v2388_v29 = vmul.f32 %v2387_v47, %v2373_v52  ;;  %v2371_v42 = vmul.f32 0.5, %v4310_v22 }
 0x6f6   : > { %4448 = vrcp.f32 %v2375_v48  ;;  %v2389_v37 = vmul.f32 1.442695, %v2388_v29  ;;  %v5765_v29 = vand.u32 4294901760, %v5440_v44  ;;  %v5771_v44 = vand.u32 4294901760, %v5452_v21 }
 0x6f8   : > { %4450 = vpow2.f32 %v2389_v37 }
 0x700   : > { %v4449_v36 = vpop.eup %4448 }
 0x701   : > { %v2378_v34 = vmul.f32 1.0614054, %v4449_v36 }
 0x702   : > { %v4451_v20 = vpop.eup %4450 }
 0x703   : > { %v2379_v33 = vadd.f32 -1.4531521, %v2378_v34 }
 0x705   : > { %v2380_v32 = vmul.f32 %v4449_v36, %v2379_v33 }
 0x707   : > { %v2381_v53 = vadd.f32 1.4214138, %v2380_v32 }
 0x709   : > { %v2382_v49 = vmul.f32 %v4449_v36, %v2381_v53 }
 0x70b   : > { %v2383_v11 = vadd.f32 -0.28449672, %v2382_v49  ;;  %v5759_v49 = vand.u32 4294901760, %v5416_v13  ;;  %v5764_v13 = vand.u32 4294901760, %v5438_v43  ;;  %v5770_v43 = vand.u32 4294901760, %v5450_v6 }
 0x70d   : > { %v2384_v62 = vmul.f32 %v4449_v36, %v2383_v11  ;;  %v5758_v11 = vand.u32 4294901760, %v5402_v26  ;;  %v5762_v26 = vand.u32 4294901760, %v5434_v40  ;;  %v5768_v40 = vand.u32 4294901760, %v5446_v46 }
 0x70f   : > { %v2385_v17 = vadd.f32 0.2548296, %v2384_v62  ;;  %v5757_v62 = vand.u32 4294901760, %v5400_v16  ;;  %v5761_v16 = vand.u32 4294901760, %v5432_v39  ;;  %v5767_v39 = vand.u32 4294901760, %v5444_v45 }
 0x711   : > { %v2386_v31 = vmul.f32 %v4449_v36, %v2385_v17  ;;  %v5756_v17 = vpack.c.bf16 %v5454_v3, %v5452_v21  ;;  %v4262_v34 = vpack.c.bf16 %v5762_v26, %v5761_v16  ;;  %v5766_v36 = vand.u32 4294901760, %v5442_v23 }
 0x712   : > { %v5772_v23 = vand.u32 4294901760, %v5454_v3 }
 0x713   : > { %v2391_v5 = vmul.f32 %v4451_v20, %v2386_v31 }
 0x715   : > { %v2392_v19 = vsub.f32 1.0, %v2391_v5 }
 0x717   : > { %v2394_v63 = vsub.f32 0.0, %v2392_v19 }
 0x719   : > { %v2395_v48 = vsel %vm2393_vm7, %v2392_v19, %v2394_v63  ;;  %v5755_v19 = vpack.c.bf16 %v5450_v6, %v5448_v24 }
 0x71a   : > { %v2396_v58 = vadd.f32 1.0, %v2395_v48 }
 0x71c   : > { %v2397_v47 = vmul.f32 %v2396_v58, %v2371_v42 }
 0x71e   : > { %v5543_v52 = vand.u32 4294901760, %v2397_v47 }
 0x720   : > { %v2503_v33 = vsub.f32 %v2397_v47, %v5543_v52 }
 0x722   : > { %v2504_v32 = vand.u32 4294901760, %v2503_v33 }
 0x724   : > { %v2505_v37 = vsub.f32 %v2503_v33, %v2504_v32 }
 0x726   : > { %v2506_v53 = vand.u32 4294901760, %v2505_v37 }
 0x728   : > { %3820 = vmatmul.mubr.f32.vlgmr.msra.gmra.mrb[6].mxu0 %v2506_v53 }
 0x729   : > { %4185 = vmatpush3.bf16.msra.mxu0 %v5456_v2  ;;  %3854 = vmatprep.mubr.msk.f32.mxu0 %vm4653_vm1, %v4652_v1  ;;  %v4256_v2 = vpack.c.bf16 %v5758_v11, %v5757_v62 }
 0x72a   : > { %4186 = vmatprep.subr.bf16.mxu0 %v4655_v51 }
 0x72d   : > { %4188 = vmatpush3.bf16.msra.mxu0 %v5472_v30  ;;  %v5760_v30 = vand.u32 4294901760, %v5418_v15 }
 0x72e   : > { %4189 = vmatprep.subr.bf16.mxu0 %v4655_v51 }
 0x731   : > { %4191 = vmatpush3.bf16.msra.mxu0 %v5482_v0  ;;  %v4259_v0 = vpack.c.bf16 %v5760_v30, %v5759_v49 }
 0x732   : > { %4192 = vmatprep.subr.bf16.mxu0 %v4655_v51 }
 0x735   : > { %4194 = vmatpush3.bf16.msra.mxu0 %v5486_v50  ;;  %v5763_v50 = vand.u32 4294901760, %v5436_v14  ;;  %v5769_v14 = vand.u32 4294901760, %v5448_v24 }
 0x736   : > { %4195 = vmatprep.subr.bf16.mxu0 %v4655_v51 }
 0x737   : > { %v4265_v15 = vpack.c.bf16 %v5764_v13, %v5763_v50 }
 0x739   : > { %4197 = vmatpush3.bf16.msra.mxu0 %v5496_v8  ;;  %v4268_v8 = vpack.c.bf16 %v5766_v36, %v5765_v29 }
 0x73a   : > { %4198 = vmatprep.subr.bf16.mxu0 %v4655_v51 }
 0x73d   : > { %4200 = vmatpush3.bf16.msra.mxu0 %v5506_v56  ;;  %v4271_v56 = vpack.c.bf16 %v5768_v40, %v5767_v39 }
 0x73e   : > { %4201 = vmatprep.subr.bf16.mxu0 %v4655_v51 }
 0x741   : > { %4203 = vmatpush3.bf16.msra.mxu0 %v5516_v54  ;;  %v4274_v54 = vpack.c.bf16 %v5770_v43, %v5769_v14 }
 0x742   : > { %4204 = vmatprep.subr.bf16.mxu0 %v4655_v51 }
 0x745   : > { %4206 = vmatpush3.bf16.msra.mxu0 %v4205_v10  ;;  %v4277_v10 = vpack.c.bf16 %v5772_v23, %v5771_v44 }
 0x746   : > { %4207 = vmatprep.subr.bf16.mxu0 %v4655_v51 }
 0x748   : > { %3855 = vmatmul.mubr.f32.vlgmr.msra.gmra.mrb[8].mxu0 %v5543_v52 }
 0x749   : > { %4209 = vmatpush3.bf16.msra.mxu0 %v4208_v28  ;;  %3889 = vmatprep.mubr.msk.f32.mxu0 %vm4653_vm1, %v4652_v1 }
 0x74a   : > { %4210 = vmatprep.subr.bf16.mxu0 %v4655_v51 }
 0x74d   : > { %4212 = vmatpush3.bf16.msra.mxu0 %v4211_v9 }
 0x74e   : > { %4213 = vmatprep.subr.bf16.mxu0 %v4655_v51 }
 0x751   : > { %4215 = vmatpush3.bf16.msra.mxu0 %v4214_v38 }
 0x752   : > { %4216 = vmatprep.subr.bf16.mxu0 %v4655_v51 }
 0x755   : > { %4218 = vmatpush3.bf16.msra.mxu0 %v4217_v12 }
 0x756   : > { %4219 = vmatprep.subr.bf16.mxu0 %v4655_v51 }
 0x759   : > { %4221 = vmatpush3.bf16.msra.mxu0 %v4220_v60 }
 0x75a   : > { %4222 = vmatprep.subr.bf16.mxu0 %v4655_v51 }
 0x75d   : > { %4224 = vmatpush3.bf16.msra.mxu0 %v4223_v57 }
 0x75e   : > { %4225 = vmatprep.subr.bf16.mxu0 %v4655_v51 }
 0x761   : > { %4227 = vmatpush3.bf16.msra.mxu0 %v5755_v19 }
 0x762   : > { %4228 = vmatprep.subr.bf16.mxu0 %v4655_v51 }
 0x765   : > { %4230 = vmatpush3.bf16.msra.mxu0 %v5756_v17 }
 0x766   : > { %4231 = vmatprep.subr.bf16.mxu0 %v4655_v51 }
 0x768   : > { %3890 = vmatmul.mubr.f32.vlgmr.msra.gmra.mrb[10].mxu0 %v2503_v33 }
 0x769   : > { %4233 = vmatpush3.bf16.msra.mxu0 %v5340_v61  ;;  %3924 = vmatprep.mubr.msk.f32.mxu0 %vm4653_vm1, %v4652_v1 }
 0x76a   : > { %4234 = vmatprep.subr.bf16.mxu0 %v4655_v51 }
 0x76d   : > { %4236 = vmatpush3.bf16.msra.mxu0 %v5350_v55 }
 0x76e   : > { %4237 = vmatprep.subr.bf16.mxu0 %v4655_v51 }
 0x771   : > { %4239 = vmatpush3.bf16.msra.mxu0 %v5360_v25 }
 0x772   : > { %4240 = vmatprep.subr.bf16.mxu0 %v4655_v51 }
 0x775   : > { %4242 = vmatpush3.bf16.msra.mxu0 %v5370_v41 }
 0x776   : > { %4243 = vmatprep.subr.bf16.mxu0 %v4655_v51 }
 0x779   : > { %4245 = vmatpush3.bf16.msra.mxu0 %v5380_v18 }
 0x77a   : > { %4246 = vmatprep.subr.bf16.mxu0 %v4655_v51 }
 0x77d   : > { %4248 = vmatpush3.bf16.msra.mxu0 %v5390_v35 }
 0x77e   : > { %4249 = vmatprep.subr.bf16.mxu0 %v4655_v51 }
 0x781   : > { %4251 = vmatpush3.bf16.msra.mxu0 %v5404_v27 }
 0x782   : > { %4252 = vmatprep.subr.bf16.mxu0 %v4655_v51 }
 0x785   : > { %4254 = vmatpush3.bf16.msra.mxu0 %v5420_v7 }
 0x786   : > { %4255 = vmatprep.subr.bf16.mxu0 %v4655_v51 }
 0x788   : > { %3925 = vmatmul.mubr.f32.vlgmr.msra.gmra.mrb[12].mxu0 %v2504_v32 }
 0x789   : > { %4257 = vmatpush3.bf16.msra.mxu0 %v4256_v2  ;;  %3959 = vmatprep.mubr.msk.f32.mxu0 %vm4653_vm1, %v4652_v1 }
 0x78a   : > { %4258 = vmatprep.subr.bf16.mxu0 %v4655_v51 }
 0x78d   : > { %4260 = vmatpush3.bf16.msra.mxu0 %v4259_v0 }
 0x78e   : > { %4261 = vmatprep.subr.bf16.mxu0 %v4655_v51 }
 0x791   : > { %4263 = vmatpush3.bf16.msra.mxu0 %v4262_v34 }
 0x792   : > { %4264 = vmatprep.subr.bf16.mxu0 %v4655_v51 }
 0x795   : > { %4266 = vmatpush3.bf16.msra.mxu0 %v4265_v15 }
 0x796   : > { %4267 = vmatprep.subr.bf16.mxu0 %v4655_v51 }
 0x799   : > { %4269 = vmatpush3.bf16.msra.mxu0 %v4268_v8 }
 0x79a   : > { %4270 = vmatprep.subr.bf16.mxu0 %v4655_v51 }
 0x79d   : > { %4272 = vmatpush3.bf16.msra.mxu0 %v4271_v56 }
 0x79e   : > { %4273 = vmatprep.subr.bf16.mxu0 %v4655_v51 }
 0x7a1   : > { %4275 = vmatpush3.bf16.msra.mxu0 %v4274_v54 }
 0x7a2   : > { %4276 = vmatprep.subr.bf16.mxu0 %v4655_v51 }
 0x7a5   : > { %4278 = vmatpush3.bf16.msra.mxu0 %v4277_v10 }
 0x7a6   : > { %4279 = vmatprep.subr.bf16.mxu0 %v4655_v51 }
 0x7a8   : > { %3960 = vmatmul.mubr.f32.vlgmr.msra.gmra.mrb[14].mxu0 %v5543_v52 }
 0x7a9   : > { %4281 = vmatpush3.bf16.msra.mxu0 %v5340_v61  ;;  %3994 = vmatprep.mubr.msk.f32.mxu0 %vm4653_vm1, %v4652_v1 }
 0x7aa   : > { %4282 = vmatprep.subr.bf16.mxu0 %v4655_v51 }
 0x7ad   : > { %4284 = vmatpush3.bf16.msra.mxu0 %v5350_v55  ;;  %v3202_v55 = vld [vmem:[%s5701_s12] ss:$0 sm:$0xff] }
 0x7ae   : > { %4285 = vmatprep.subr.bf16.mxu0 %v4655_v51 }
 0x7b1   : > { %4287 = vmatpush3.bf16.msra.mxu0 %v5360_v25 }
 0x7b2   : > { %4288 = vmatprep.subr.bf16.mxu0 %v4655_v51 }
 0x7b5   : > { %4290 = vmatpush3.bf16.msra.mxu0 %v5370_v41 }
 0x7b6   : > { %4291 = vmatprep.subr.bf16.mxu0 %v4655_v51 }
 0x7b9   : > { %4293 = vmatpush3.bf16.msra.mxu0 %v5380_v18 }
 0x7ba   : > { %4294 = vmatprep.subr.bf16.mxu0 %v4655_v51 }
 0x7bd   : > { %4296 = vmatpush3.bf16.msra.mxu0 %v5390_v35 }
 0x7be   : > { %4297 = vmatprep.subr.bf16.mxu0 %v4655_v51 }
 0x7c1   : > { %4299 = vmatpush3.bf16.msra.mxu0 %v5404_v27 }
 0x7c2   : > { %4300 = vmatprep.subr.bf16.mxu0 %v4655_v51 }
 0x7c5   : > { %4302 = vmatpush3.bf16.msra.mxu0 %v5420_v7 }
 0x7c8   : > { %3995 = vmatmul.mubr.f32.vlgmr.msra.gmra.mrb[16].mxu0 %v5543_v52 }
 0x7fb   : > { %v2508_v1 = vpop.f32.mrb[6].mxu0 }
 0x7fc   : > { %v3821_v61 = vpop.f32.mrb[7].mxu0  ;;  %v2509_v25 = vadd.f32 %v3202_v55, %v2508_v1 }
 0x81b   : > { %v2659_v41 = vpop.f32.mrb[8].mxu0 }
 0x81c   : > { %v2660_v18 = vadd.f32 %v2659_v41, %v2509_v25  ;;  %v3856_v35 = vpop.f32.mrb[9].mxu0 }
 0x83b   : > { %v2763_v45 = vpop.f32.mrb[10].mxu0 }
 0x83c   : > { %v2764_v46 = vadd.f32 %v2763_v45, %v2660_v18  ;;  %v3891_v27 = vpop.f32.mrb[11].mxu0 }
 0x85b   : > { %v2852_v24 = vpop.f32.mrb[12].mxu0 }
 0x85c   : > { %v2853_v51 = vadd.f32 %v2852_v24, %v2764_v46  ;;  %v3926_v6 = vpop.f32.mrb[13].mxu0 }
 0x87b   : > { %v2971_v7 = vpop.f32.mrb[14].mxu0 }
 0x87c   : > { %v2972_v21 = vadd.f32 %v2971_v7, %v2853_v51  ;;  %v3961_v3 = vpop.f32.mrb[15].mxu0 }
 0x89b   : > { %v3058_v28 = vpop.f32.mrb[16].mxu0 }
 0x89c   : > { %v3059_v9 = vadd.f32 %v3058_v28, %v2972_v21  ;;  %v3996_v38 = vpop.f32.mrb[17].mxu0 }
 0x89e   : > { %v3062_v12 = vadd.f32 %v3059_v9, %v5067_v59 }
 0x8a0   : > { %3063 = vst [vmem:[%s513_s19] sm:$0xff] %v3062_v12 }
 0x8a1 PF: > { %s5773_s21 = sld [smem:[#allocation16_spill]] }
 0x8a7   : > { %s27_s25 = sadd.s32 1, %s5773_s21  }
 0x8a8   : > { %p24_p11 = scmp.ge.s32.totalorder %s27_s25, 4  }
 0x8aa   :  { %26 = sbr.rel (!%p24_p11) target bundleno = 4 (0x4), region = 127 }
 0x8b1   :  { %3083 = vsyncpa [#allocation3], 1 }
 0x8b2   :  { %3085 = vsyncpa [#allocation3 + $0x1], 1 }
 0x8b3   :  { %3086 = vsyncpa [#allocation5], 1 }
 0x8b4   :  { %3087 = vsyncpa [#allocation8], 1 }
 0x8b5   :  { %3088 = vsyncpa [#allocation11], 1 }

</bundles_post_ra>
